<compile_context>
chip_gen: v7x
topology: tpu7x:2x2x1
jax: 0.10.0
libtpu: 0.0.40
codegen_flags: <defaults>
</compile_context>

<pallas_src>
import functools

import jax
import jax.numpy as jnp
from jax import lax
from jax.experimental import pallas as pl
from jax.experimental.pallas import tpu as pltpu


_MAX_TILE_ROWS = 512                  # large row tiles -> amortize per-step overhead
_MATMUL_DTYPE = jnp.bfloat16          # MXU-native operand dtype (LN/ReLU stay f32)
_VMEM_LIMIT_BYTES = 32 * 1024 * 1024  # explicit scoped-VMEM limit (safe on v5e/v6e/v7x)


def _round_up(n, m):
    return ((n + m - 1) // m) * m


# ----------------------------------------------------------------------------
# Shared compute helpers (run inside kernels)
# ----------------------------------------------------------------------------
def _affine_ln_act(y, prm, use_ln, use_relu):
    """y: (rows, dout) f32; prm rows = [bias, gamma, beta]."""
    y = y + prm[0:1, :]
    if use_ln:
        mean = jnp.mean(y, axis=-1, keepdims=True)
        var = jnp.mean(jnp.square(y - mean), axis=-1, keepdims=True)
        y = (y - mean) * lax.rsqrt(var + 1e-5) * prm[1:2, :] + prm[2:3, :]
    if use_relu:
        y = jnp.maximum(y, 0.0)
    return y


def _apply_layers(y0_parts_and_w, param_refs, start_idx, n_layers, use_ln, use_relu):
    """Layer 0 = split matmul over parts; remaining layers stay in vregs."""
    parts, = (y0_parts_and_w,)
    idx = start_idx
    y = None
    for p in parts:
        w = param_refs[idx][...]
        idx += 1
        contrib = jnp.dot(p.astype(_MATMUL_DTYPE), w,
                          preferred_element_type=jnp.float32)
        y = contrib if y is None else y + contrib
    prm = param_refs[idx][...]
    idx += 1
    y = _affine_ln_act(y, prm, use_ln[0], use_relu[0])

    for l in range(1, n_layers):
        w = param_refs[idx][...]
        idx += 1
        y = jnp.dot(y.astype(_MATMUL_DTYPE), w, preferred_element_type=jnp.float32)
        prm = param_refs[idx][...]
        idx += 1
        y = _affine_ln_act(y, prm, use_ln[l], use_relu[l])
    return y


def _activation_flags(n_layers, layer_norm, output_activation):
    use_relu = tuple((i < n_layers - 1) or bool(output_activation)
                     for i in range(n_layers))
    use_ln = tuple(bool(layer_norm) and use_relu[i] for i in range(n_layers))
    return use_ln, use_relu


def _layer_param_inputs(layers, part_dims):
    """Flatten MLP params into pallas_call inputs + full-block specs.

    Layer 0's weight is pre-split along its input dim to match `part_dims`.
    """
    inputs, specs = [], []
    w0 = layers[0]["w"].astype(_MATMUL_DTYPE)
    off = 0
    for d in part_dims:
        w_slice = w0[off:off + d]
        off += d
        inputs.append(w_slice)
        specs.append(pl.BlockSpec(w_slice.shape, lambda *a: (0, 0)))
    prm0 = layers[0]["prm"].astype(jnp.float32)
    inputs.append(prm0)
    specs.append(pl.BlockSpec(prm0.shape, lambda *a: (0, 0)))
    for l in range(1, len(layers)):
        w = layers[l]["w"].astype(_MATMUL_DTYPE)
        prm = layers[l]["prm"].astype(jnp.float32)
        inputs.append(w)
        specs.append(pl.BlockSpec(w.shape, lambda *a: (0, 0)))
        inputs.append(prm)
        specs.append(pl.BlockSpec(prm.shape, lambda *a: (0, 0)))
    return inputs, specs


# ----------------------------------------------------------------------------
# Fused MLP kernel: (split) Linear -> LN -> ReLU per layer, + residual, + L2 norm
# ----------------------------------------------------------------------------
def _fused_mlp_kernel(*refs, n_parts, n_layers, use_ln, use_relu,
                      add_residual, l2_norm):
    """Ref order: parts..., layer params..., [residual], out."""
    parts = [refs[p][...].astype(jnp.float32) for p in range(n_parts)]
    y = _apply_layers(parts, refs, n_parts, n_layers, use_ln, use_relu)
    idx = n_parts + (n_parts + 1) + 2 * (n_layers - 1)

    if add_residual:
        y = y + refs[idx][...]
        idx += 1

    if l2_norm:
        # matches torch.nn.functional.normalize (eps=1e-12); rsqrt -> EUP slot
        sumsq = jnp.sum(y * y, axis=-1, keepdims=True)
        y = y * lax.rsqrt(jnp.maximum(sumsq, 1e-24))

    out_ref = refs[idx]
    out_ref[...] = y.astype(out_ref.dtype)


def fused_mlp(parts, layers, *, layer_norm, output_activation,
              residual=None, l2_normalize_out=False):
    """Apply a whole MLP (optional residual / L2-norm) in one pallas_call.

    parts: list of (N, d_k) arrays whose concatenation is the MLP input.
    layers: list of {"w": (din, dout) bf16, "prm": (3, dout) f32 [bias,gamma,beta]}.
    """
    parts = [p.astype(jnp.float32) for p in parts]
    n = parts[0].shape[0]
    n_layers = len(layers)
    use_ln, use_relu = _activation_flags(n_layers, layer_norm, output_activation)

    tile_rows = max(8, min(_MAX_TILE_ROWS, _round_up(n, 8)))
    n_pad = _round_up(n, tile_rows)

    def pad_rows(a):
        return jnp.pad(a, ((0, n_pad - n), (0, 0))) if n_pad != n else a

    inputs, in_specs = [], []
    for p in parts:
        p_p = pad_rows(p)
        inputs.append(p_p)
        in_specs.append(pl.BlockSpec((tile_rows, p_p.shape[1]), lambda i: (i, 0)))

    prm_inputs, prm_specs = _layer_param_inputs(layers, [p.shape[1] for p in parts])
    inputs += prm_inputs
    in_specs += prm_specs

    add_residual = residual is not None
    if add_residual:
        r = pad_rows(residual.astype(jnp.float32))
        inputs.append(r)
        in_specs.append(pl.BlockSpec((tile_rows, r.shape[1]), lambda i: (i, 0)))

    dout = layers[-1]["w"].shape[1]
    kernel = functools.partial(
        _fused_mlp_kernel, n_parts=len(parts), n_layers=n_layers,
        use_ln=use_ln, use_relu=use_relu,
        add_residual=add_residual, l2_norm=l2_normalize_out)

    out = pl.pallas_call(
        kernel,
        out_shape=jax.ShapeDtypeStruct((n_pad, dout), jnp.float32),
        grid=(n_pad // tile_rows,),
        in_specs=in_specs,
        out_specs=pl.BlockSpec((tile_rows, dout), lambda i: (i, 0)),
        compiler_params=pltpu.CompilerParams(
            dimension_semantics=("parallel",),
            vmem_limit_bytes=_VMEM_LIMIT_BYTES),
    )(*inputs)
    return out[:n]


# ----------------------------------------------------------------------------
# Fused node update: scatter_add(edges -> nodes over src AND dst) + node MLP
# + residual, in ONE kernel.  The messages tensor never touches HBM: the
# incidence is built per (node-tile, edge-tile) in vregs and accumulated on
# the MXU into VMEM scratch, then the MLP consumes the scratch directly.
# ----------------------------------------------------------------------------
def _node_update_kernel(*refs, n_layers, use_ln, use_relu):
    """Ref order: graph, edges, nodes, layer params..., out, msg_acc."""
    graph_ref, edge_ref, node_ref = refs[0], refs[1], refs[2]
    out_ref, acc_ref = refs[-2], refs[-1]
    param_refs = refs[3:-2]

    j = pl.program_id(1)

    @pl.when(j == 0)
    def _():
        acc_ref[...] = jnp.zeros_like(acc_ref)

    idx = graph_ref[...]                                     # (2, tile_e) int32
    tile_n = acc_ref.shape[0]
    tile_e = idx.shape[1]
    node_ids = (pl.program_id(0) * tile_n
                + lax.broadcasted_iota(jnp.int32, (tile_n, tile_e), 0))
    inc = ((node_ids == idx[0:1, :]).astype(jnp.float32)
           + (node_ids == idx[1:2, :]).astype(jnp.float32))  # 0/1/2, exact in bf16
    acc_ref[...] += jnp.dot(inc.astype(_MATMUL_DTYPE),
                            edge_ref[...].astype(_MATMUL_DTYPE),
                            preferred_element_type=jnp.float32)

    @pl.when(j == pl.num_programs(1) - 1)
    def _():
        nodes = node_ref[...].astype(jnp.float32)
        y = _apply_layers([nodes, acc_ref[...]], param_refs, 0,
                          n_layers, use_ln, use_relu)
        out_ref[...] = (y + nodes).astype(out_ref.dtype)      # residual


def node_update(nodes, edges, graph, layers, *, layer_norm, output_activation):
    """nodes <- MLP(concat[nodes, scatter_add(edges)]) + nodes, fully fused."""
    nodes = nodes.astype(jnp.float32)
    edges = edges.astype(jnp.float32)
    N, Dn = nodes.shape
    E, De = edges.shape
    n_layers = len(layers)
    use_ln, use_relu = _activation_flags(n_layers, layer_norm, output_activation)

    tile_n = max(8, min(_MAX_TILE_ROWS, _round_up(N, 8)))
    tile_e = max(128, min(_MAX_TILE_ROWS, _round_up(E, 128)))
    n_pad = _round_up(N, tile_n)
    e_pad = _round_up(E, tile_e)

    nodes_p = jnp.pad(nodes, ((0, n_pad - N), (0, 0))) if n_pad != N else nodes
    edges_p = jnp.pad(edges, ((0, e_pad - E), (0, 0))) if e_pad != E else edges
    graph_p = jnp.pad(graph.astype(jnp.int32), ((0, 0), (0, e_pad - E)),
                      constant_values=-1)                     # -1 matches no node

    prm_inputs, prm_specs = _layer_param_inputs(layers, [Dn, De])
    # params are indexed (0,0) regardless of grid position
    inputs = [graph_p, edges_p, nodes_p] + prm_inputs
    in_specs = [
        pl.BlockSpec((2, tile_e), lambda i, j: (0, j)),
        pl.BlockSpec((tile_e, De), lambda i, j: (j, 0)),
        pl.BlockSpec((tile_n, Dn), lambda i, j: (i, 0)),
    ] + prm_specs

    dout = layers[-1]["w"].shape[1]
    kernel = functools.partial(_node_update_kernel, n_layers=n_layers,
                               use_ln=use_ln, use_relu=use_relu)
    out = pl.pallas_call(
        kernel,
        out_shape=jax.ShapeDtypeStruct((n_pad, dout), jnp.float32),
        grid=(n_pad // tile_n, e_pad // tile_e),
        in_specs=in_specs,
        out_specs=pl.BlockSpec((tile_n, dout), lambda i, j: (i, 0)),
        scratch_shapes=[pltpu.VMEM((tile_n, De), jnp.float32)],
        compiler_params=pltpu.CompilerParams(
            dimension_semantics=("parallel", "arbitrary"),
            vmem_limit_bytes=_VMEM_LIMIT_BYTES),
    )(*inputs)
    return out[:N]


# ----------------------------------------------------------------------------
# Parameter construction (deterministic)
# ----------------------------------------------------------------------------
def make_mlp_params(key, input_size, hidden_size, output_size, nb_layers):
    sizes = [input_size] + [hidden_size] * (nb_layers - 1) + [output_size]
    layers = []
    for i in range(len(sizes) - 1):
        key, kw = jax.random.split(key)
        w = (jax.random.normal(kw, (sizes[i], sizes[i + 1]), jnp.float32)
             / jnp.sqrt(sizes[i])).astype(_MATMUL_DTYPE)
        prm = jnp.stack([
            jnp.zeros((sizes[i + 1],), jnp.float32),   # bias
            jnp.ones((sizes[i + 1],), jnp.float32),    # LN gamma
            jnp.zeros((sizes[i + 1],), jnp.float32),   # LN beta
        ])
        layers.append({"w": w, "prm": prm})
    return layers


def make_block_params(key, hparams, iterations):
    keys = jax.random.split(key, 3 + 2 * iterations)
    params = {
        "node_encoder": make_mlp_params(
            keys[0], hparams["spatial_channels"], hparams["hidden"],
            hparams["latent"], hparams["nb_node_layer"]),
        "edge_encoder": make_mlp_params(
            keys[1], 2 * hparams["spatial_channels"], hparams["hidden"],
            hparams["latent"], hparams["nb_edge_layer"]),
        "output_layer": make_mlp_params(
            keys[2], hparams["latent"], hparams["hidden"],
            hparams["emb_dim"], hparams["output_layers"]),
        "cells": [],
    }
    n_unique = 1 if hparams.get("share_weight", False) else iterations
    unique_cells = []
    for it in range(n_unique):
        unique_cells.append({
            "node_network": make_mlp_params(
                keys[3 + 2 * it], 2 * hparams["latent"], hparams["hidden"],
                hparams["latent"], hparams["nb_node_layer"]),
            "edge_network": make_mlp_params(
                keys[4 + 2 * it], 3 * hparams["latent"], hparams["hidden"],
                hparams["latent"], hparams["nb_edge_layer"]),
        })
    for it in range(iterations):
        params["cells"].append(unique_cells[it % n_unique])
    return params


# ----------------------------------------------------------------------------
# Forward pass (mirrors InteractionGNNBlock.forward)
# ----------------------------------------------------------------------------
def interaction_gnn_block_forward(params, hparams, x, graph):
    ln = hparams["layernorm"]
    src, dst = graph[0], graph[1]

    # node / edge encoders (concat is done via split-matmul inside the kernel)
    nodes = fused_mlp([x], params["node_encoder"],
                      layer_norm=ln, output_activation=True)
    edges = fused_mlp([jnp.take(x, src, axis=0), jnp.take(x, dst, axis=0)],
                      params["edge_encoder"],
                      layer_norm=ln, output_activation=True)

    # interaction GNN cells (scatter_add + node MLP + residual in one kernel,
    # edge MLP + residual in one kernel)
    for cell in params["cells"]:
        nodes = node_update(nodes, edges, graph, cell["node_network"],
                            layer_norm=ln, output_activation=True)
        edges = fused_mlp([jnp.take(nodes, src, axis=0),
                           jnp.take(nodes, dst, axis=0), edges],
                          cell["edge_network"],
                          layer_norm=ln, output_activation=True, residual=edges)

    # output projection with fused L2 normalization
    embeddings = fused_mlp([nodes], params["output_layer"],
                           layer_norm=ln, output_activation=False,
                           l2_normalize_out=True)
    return embeddings, nodes, edges


# ----------------------------------------------------------------------------
# Demo
# ----------------------------------------------------------------------------
if __name__ == "__main__":
    hparams = {
        "spatial_channels": 8,
        "hidden": 32,
        "latent": 32,
        "emb_dim": 16,
        "nb_node_layer": 2,
        "nb_edge_layer": 2,
        "output_layers": 2,
        "hidden_activation": "ReLU",
        "hidden_output_activation": "ReLU",
        "layernorm": True,
        "share_weight": False,
    }
    iterations = 2
    num_nodes, num_edges = 64, 128

    key = jax.random.PRNGKey(0)
    k_param, k_x, k_src, k_dst = jax.random.split(key, 4)

    params = make_block_params(k_param, hparams, iterations)
    x = jax.random.normal(k_x, (num_nodes, hparams["spatial_channels"]), jnp.float32)
    graph = jnp.stack([
        jax.random.randint(k_src, (num_edges,), 0, num_nodes, dtype=jnp.int32),
        jax.random.randint(k_dst, (num_edges,), 0, num_nodes, dtype=jnp.int32),
    ], axis=0)

    fwd = jax.jit(lambda p, xx, g: interaction_gnn_block_forward(p, hparams, xx, g))
    embeddings, nodes, edges = fwd(params, x, graph)
    jax.block_until_ready((embeddings, nodes, edges))

    assert embeddings.shape == (num_nodes, hparams["emb_dim"])
    assert nodes.shape == (num_nodes, hparams["latent"])
    assert edges.shape == (num_edges, hparams["latent"])
    assert bool(jnp.all(jnp.isfinite(embeddings)))
    assert bool(jnp.all(jnp.isfinite(nodes)))
    assert bool(jnp.all(jnp.isfinite(edges)))
    # embeddings rows should be unit-norm (torch.nn.functional.normalize semantics)
    norms = jnp.linalg.norm(embeddings, axis=-1)
    assert bool(jnp.all(jnp.abs(norms - 1.0) < 1e-2))
    print("KERNEL_OK")
</pallas_src>

<mosaic_0001>
module attributes {stable_mosaic.version = 11 : i64} {
  func.func @_fused_mlp_kernel(%arg0: i32, %arg1: memref<128x8xf32, #tpu.memory_space<vmem>>, %arg2: memref<128x8xf32, #tpu.memory_space<vmem>>, %arg3: memref<8x32xbf16, #tpu.memory_space<vmem>>, %arg4: memref<8x32xbf16, #tpu.memory_space<vmem>>, %arg5: memref<3x32xf32, #tpu.memory_space<vmem>>, %arg6: memref<32x32xbf16, #tpu.memory_space<vmem>>, %arg7: memref<3x32xf32, #tpu.memory_space<vmem>>, %arg8: memref<128x32xf32, #tpu.memory_space<vmem>>) attributes {dimension_semantics = [#tpu.dimension_semantics<parallel>], iteration_bounds = array<i64: 1>, scalar_prefetch = 0 : i64, scratch_operands = 0 : i64, tpu.core_type = #tpu.core_type<tc>, window_params = [{transform_indices = @transform_0, window_bounds = array<i64: 128, 8>}, {transform_indices = @transform_1, window_bounds = array<i64: 128, 8>}, {pipeline_mode = #tpu.pipeline_mode<synchronous>, transform_indices = @transform_2, window_bounds = array<i64: 8, 32>}, {pipeline_mode = #tpu.pipeline_mode<synchronous>, transform_indices = @transform_3, window_bounds = array<i64: 8, 32>}, {pipeline_mode = #tpu.pipeline_mode<synchronous>, transform_indices = @transform_4, window_bounds = array<i64: 3, 32>}, {pipeline_mode = #tpu.pipeline_mode<synchronous>, transform_indices = @transform_5, window_bounds = array<i64: 32, 32>}, {pipeline_mode = #tpu.pipeline_mode<synchronous>, transform_indices = @transform_6, window_bounds = array<i64: 3, 32>}, {transform_indices = @transform_7, window_bounds = array<i64: 128, 32>}]} {
    %c0 = arith.constant 0 : index
    %c0_0 = arith.constant 0 : index
    %0 = vector.load %arg1[%c0, %c0_0] : memref<128x8xf32, #tpu.memory_space<vmem>>, vector<128x8xf32>
    %c0_1 = arith.constant 0 : index
    %c0_2 = arith.constant 0 : index
    %1 = vector.load %arg2[%c0_1, %c0_2] : memref<128x8xf32, #tpu.memory_space<vmem>>, vector<128x8xf32>
    %c0_3 = arith.constant 0 : index
    %c0_4 = arith.constant 0 : index
    %2 = vector.load %arg3[%c0_3, %c0_4] : memref<8x32xbf16, #tpu.memory_space<vmem>>, vector<8x32xbf16>
    %3 = arith.truncf %0 : vector<128x8xf32> to vector<128x8xbf16>
    %cst = arith.constant dense<0.000000e+00> : vector<128x32xf32>
    %4 = tpu.matmul %3, %2, %cst {dimension_numbers = #tpu.dot_dimension_numbers<[1], [0], [0], [1], [0, 0, 1, 1], [], []>} : vector<128x8xbf16>, vector<8x32xbf16>, vector<128x32xf32> -> vector<128x32xf32>
    %c0_5 = arith.constant 0 : index
    %c0_6 = arith.constant 0 : index
    %5 = vector.load %arg4[%c0_5, %c0_6] : memref<8x32xbf16, #tpu.memory_space<vmem>>, vector<8x32xbf16>
    %6 = arith.truncf %1 : vector<128x8xf32> to vector<128x8xbf16>
    %cst_7 = arith.constant dense<0.000000e+00> : vector<128x32xf32>
    %7 = tpu.matmul %6, %5, %cst_7 {dimension_numbers = #tpu.dot_dimension_numbers<[1], [0], [0], [1], [0, 0, 1, 1], [], []>} : vector<128x8xbf16>, vector<8x32xbf16>, vector<128x32xf32> -> vector<128x32xf32>
    %8 = arith.addf %4, %7 : vector<128x32xf32>
    %c0_8 = arith.constant 0 : index
    %c0_9 = arith.constant 0 : index
    %9 = vector.load %arg5[%c0_8, %c0_9] : memref<3x32xf32, #tpu.memory_space<vmem>>, vector<3x32xf32>
    %10 = vector.extract_strided_slice %9 {offsets = [0, 0], sizes = [1, 32], strides = [1, 1]} : vector<3x32xf32> to vector<1x32xf32>
    %11 = vector.broadcast %10 : vector<1x32xf32> to vector<128x32xf32>
    %12 = arith.addf %8, %11 : vector<128x32xf32>
    %cst_10 = arith.constant dense<0.000000e+00> : vector<128xf32>
    %13 = vector.multi_reduction <add>, %12, %cst_10 [1] : vector<128x32xf32> to vector<128xf32>
    %14 = vector.shape_cast %13 : vector<128xf32> to vector<128x1xf32>
    %cst_11 = arith.constant 3.200000e+01 : f32
    %15 = vector.broadcast %cst_11 : f32 to vector<128x1xf32>
    %16 = arith.divf %14, %15 : vector<128x1xf32>
    %17 = vector.broadcast %16 : vector<128x1xf32> to vector<128x32xf32>
    %18 = arith.subf %12, %17 : vector<128x32xf32>
    %19 = arith.mulf %18, %18 : vector<128x32xf32>
    %cst_12 = arith.constant dense<0.000000e+00> : vector<128xf32>
    %20 = vector.multi_reduction <add>, %19, %cst_12 [1] : vector<128x32xf32> to vector<128xf32>
    %21 = vector.shape_cast %20 : vector<128xf32> to vector<128x1xf32>
    %cst_13 = arith.constant 3.200000e+01 : f32
    %22 = vector.broadcast %cst_13 : f32 to vector<128x1xf32>
    %23 = arith.divf %21, %22 : vector<128x1xf32>
    %24 = vector.broadcast %16 : vector<128x1xf32> to vector<128x32xf32>
    %25 = arith.subf %12, %24 : vector<128x32xf32>
    %cst_14 = arith.constant 9.99999974E-6 : f32
    %26 = vector.broadcast %cst_14 : f32 to vector<128x1xf32>
    %27 = arith.addf %23, %26 : vector<128x1xf32>
    %28 = math.rsqrt %27 : vector<128x1xf32>
    %29 = vector.broadcast %28 : vector<128x1xf32> to vector<128x32xf32>
    %30 = arith.mulf %25, %29 : vector<128x32xf32>
    %31 = vector.extract_strided_slice %9 {offsets = [1, 0], sizes = [1, 32], strides = [1, 1]} : vector<3x32xf32> to vector<1x32xf32>
    %32 = vector.broadcast %31 : vector<1x32xf32> to vector<128x32xf32>
    %33 = arith.mulf %30, %32 : vector<128x32xf32>
    %34 = vector.extract_strided_slice %9 {offsets = [2, 0], sizes = [1, 32], strides = [1, 1]} : vector<3x32xf32> to vector<1x32xf32>
    %35 = vector.broadcast %34 : vector<1x32xf32> to vector<128x32xf32>
    %36 = arith.addf %33, %35 : vector<128x32xf32>
    %cst_15 = arith.constant 0.000000e+00 : f32
    %37 = vector.broadcast %cst_15 : f32 to vector<128x32xf32>
    %38 = arith.maximumf %36, %37 : vector<128x32xf32>
    %c0_16 = arith.constant 0 : index
    %c0_17 = arith.constant 0 : index
    %39 = vector.load %arg6[%c0_16, %c0_17] : memref<32x32xbf16, #tpu.memory_space<vmem>>, vector<32x32xbf16>
    %40 = arith.truncf %38 : vector<128x32xf32> to vector<128x32xbf16>
    %cst_18 = arith.constant dense<0.000000e+00> : vector<128x32xf32>
    %41 = tpu.matmul %40, %39, %cst_18 {dimension_numbers = #tpu.dot_dimension_numbers<[1], [0], [0], [1], [0, 0, 1, 1], [], []>} : vector<128x32xbf16>, vector<32x32xbf16>, vector<128x32xf32> -> vector<128x32xf32>
    %c0_19 = arith.constant 0 : index
    %c0_20 = arith.constant 0 : index
    %42 = vector.load %arg7[%c0_19, %c0_20] : memref<3x32xf32, #tpu.memory_space<vmem>>, vector<3x32xf32>
    %43 = vector.extract_strided_slice %42 {offsets = [0, 0], sizes = [1, 32], strides = [1, 1]} : vector<3x32xf32> to vector<1x32xf32>
    %44 = vector.broadcast %43 : vector<1x32xf32> to vector<128x32xf32>
    %45 = arith.addf %41, %44 : vector<128x32xf32>
    %cst_21 = arith.constant dense<0.000000e+00> : vector<128xf32>
    %46 = vector.multi_reduction <add>, %45, %cst_21 [1] : vector<128x32xf32> to vector<128xf32>
    %47 = vector.shape_cast %46 : vector<128xf32> to vector<128x1xf32>
    %cst_22 = arith.constant 3.200000e+01 : f32
    %48 = vector.broadcast %cst_22 : f32 to vector<128x1xf32>
    %49 = arith.divf %47, %48 : vector<128x1xf32>
    %50 = vector.broadcast %49 : vector<128x1xf32> to vector<128x32xf32>
    %51 = arith.subf %45, %50 : vector<128x32xf32>
    %52 = arith.mulf %51, %51 : vector<128x32xf32>
    %cst_23 = arith.constant dense<0.000000e+00> : vector<128xf32>
    %53 = vector.multi_reduction <add>, %52, %cst_23 [1] : vector<128x32xf32> to vector<128xf32>
    %54 = vector.shape_cast %53 : vector<128xf32> to vector<128x1xf32>
    %cst_24 = arith.constant 3.200000e+01 : f32
    %55 = vector.broadcast %cst_24 : f32 to vector<128x1xf32>
    %56 = arith.divf %54, %55 : vector<128x1xf32>
    %57 = vector.broadcast %49 : vector<128x1xf32> to vector<128x32xf32>
    %58 = arith.subf %45, %57 : vector<128x32xf32>
    %cst_25 = arith.constant 9.99999974E-6 : f32
    %59 = vector.broadcast %cst_25 : f32 to vector<128x1xf32>
    %60 = arith.addf %56, %59 : vector<128x1xf32>
    %61 = math.rsqrt %60 : vector<128x1xf32>
    %62 = vector.broadcast %61 : vector<128x1xf32> to vector<128x32xf32>
    %63 = arith.mulf %58, %62 : vector<128x32xf32>
    %64 = vector.extract_strided_slice %42 {offsets = [1, 0], sizes = [1, 32], strides = [1, 1]} : vector<3x32xf32> to vector<1x32xf32>
    %65 = vector.broadcast %64 : vector<1x32xf32> to vector<128x32xf32>
    %66 = arith.mulf %63, %65 : vector<128x32xf32>
    %67 = vector.extract_strided_slice %42 {offsets = [2, 0], sizes = [1, 32], strides = [1, 1]} : vector<3x32xf32> to vector<1x32xf32>
    %68 = vector.broadcast %67 : vector<1x32xf32> to vector<128x32xf32>
    %69 = arith.addf %66, %68 : vector<128x32xf32>
    %cst_26 = arith.constant 0.000000e+00 : f32
    %70 = vector.broadcast %cst_26 : f32 to vector<128x32xf32>
    %71 = arith.maximumf %69, %70 : vector<128x32xf32>
    %c0_27 = arith.constant 0 : index
    %c0_28 = arith.constant 0 : index
    %72 = vector.load %arg8[%c0_27, %c0_28] : memref<128x32xf32, #tpu.memory_space<vmem>>, vector<128x32xf32>
    tpu.vector_store %arg8[%c0_27, %c0_28], %71 {strides = array<i32>} : memref<128x32xf32, #tpu.memory_space<vmem>>, vector<128x32xf32>,
    return
  }
  func.func @transform_0(%arg0: i32) -> (i32, i32) {
    %c0_i32 = arith.constant 0 : i32
    %c0_i32_0 = arith.constant 0 : i32
    return %arg0, %c0_i32 : i32, i32
  }
  func.func @transform_1(%arg0: i32) -> (i32, i32) {
    %c0_i32 = arith.constant 0 : i32
    %c0_i32_0 = arith.constant 0 : i32
    return %arg0, %c0_i32 : i32, i32
  }
  func.func @transform_2(%arg0: i32) -> (i32, i32) {
    %c0_i32 = arith.constant 0 : i32
    %c0_i32_0 = arith.constant 0 : i32
    %c0_i32_1 = arith.constant 0 : i32
    return %c0_i32, %c0_i32_0 : i32, i32
  }
  func.func @transform_3(%arg0: i32) -> (i32, i32) {
    %c0_i32 = arith.constant 0 : i32
    %c0_i32_0 = arith.constant 0 : i32
    %c0_i32_1 = arith.constant 0 : i32
    return %c0_i32, %c0_i32_0 : i32, i32
  }
  func.func @transform_4(%arg0: i32) -> (i32, i32) {
    %c0_i32 = arith.constant 0 : i32
    %c0_i32_0 = arith.constant 0 : i32
    %c0_i32_1 = arith.constant 0 : i32
    return %c0_i32, %c0_i32_0 : i32, i32
  }
  func.func @transform_5(%arg0: i32) -> (i32, i32) {
    %c0_i32 = arith.constant 0 : i32
    %c0_i32_0 = arith.constant 0 : i32
    %c0_i32_1 = arith.constant 0 : i32
    return %c0_i32, %c0_i32_0 : i32, i32
  }
  func.func @transform_6(%arg0: i32) -> (i32, i32) {
    %c0_i32 = arith.constant 0 : i32
    %c0_i32_0 = arith.constant 0 : i32
    %c0_i32_1 = arith.constant 0 : i32
    return %c0_i32, %c0_i32_0 : i32, i32
  }
  func.func @transform_7(%arg0: i32) -> (i32, i32) {
    %c0_i32 = arith.constant 0 : i32
    %c0_i32_0 = arith.constant 0 : i32
    return %arg0, %c0_i32 : i32, i32
  }
}

module attributes {stable_mosaic.version = 11 : i64} {
  func.func @_fused_mlp_kernel(%arg0: i32, %arg1: memref<64x8xf32, #tpu.memory_space<vmem>>, %arg2: memref<8x32xbf16, #tpu.memory_space<vmem>>, %arg3: memref<3x32xf32, #tpu.memory_space<vmem>>, %arg4: memref<32x32xbf16, #tpu.memory_space<vmem>>, %arg5: memref<3x32xf32, #tpu.memory_space<vmem>>, %arg6: memref<64x32xf32, #tpu.memory_space<vmem>>) attributes {dimension_semantics = [#tpu.dimension_semantics<parallel>], iteration_bounds = array<i64: 1>, scalar_prefetch = 0 : i64, scratch_operands = 0 : i64, tpu.core_type = #tpu.core_type<tc>, window_params = [{transform_indices = @transform_0, window_bounds = array<i64: 64, 8>}, {pipeline_mode = #tpu.pipeline_mode<synchronous>, transform_indices = @transform_1, window_bounds = array<i64: 8, 32>}, {pipeline_mode = #tpu.pipeline_mode<synchronous>, transform_indices = @transform_2, window_bounds = array<i64: 3, 32>}, {pipeline_mode = #tpu.pipeline_mode<synchronous>, transform_indices = @transform_3, window_bounds = array<i64: 32, 32>}, {pipeline_mode = #tpu.pipeline_mode<synchronous>, transform_indices = @transform_4, window_bounds = array<i64: 3, 32>}, {transform_indices = @transform_5, window_bounds = array<i64: 64, 32>}]} {
    %c0 = arith.constant 0 : index
    %c0_0 = arith.constant 0 : index
    %0 = vector.load %arg1[%c0, %c0_0] : memref<64x8xf32, #tpu.memory_space<vmem>>, vector<64x8xf32>
    %c0_1 = arith.constant 0 : index
    %c0_2 = arith.constant 0 : index
    %1 = vector.load %arg2[%c0_1, %c0_2] : memref<8x32xbf16, #tpu.memory_space<vmem>>, vector<8x32xbf16>
    %2 = arith.truncf %0 : vector<64x8xf32> to vector<64x8xbf16>
    %cst = arith.constant dense<0.000000e+00> : vector<64x32xf32>
    %3 = tpu.matmul %2, %1, %cst {dimension_numbers = #tpu.dot_dimension_numbers<[1], [0], [0], [1], [0, 0, 1, 1], [], []>} : vector<64x8xbf16>, vector<8x32xbf16>, vector<64x32xf32> -> vector<64x32xf32>
    %c0_3 = arith.constant 0 : index
    %c0_4 = arith.constant 0 : index
    %4 = vector.load %arg3[%c0_3, %c0_4] : memref<3x32xf32, #tpu.memory_space<vmem>>, vector<3x32xf32>
    %5 = vector.extract_strided_slice %4 {offsets = [0, 0], sizes = [1, 32], strides = [1, 1]} : vector<3x32xf32> to vector<1x32xf32>
    %6 = vector.broadcast %5 : vector<1x32xf32> to vector<64x32xf32>
    %7 = arith.addf %3, %6 : vector<64x32xf32>
    %cst_5 = arith.constant dense<0.000000e+00> : vector<64xf32>
    %8 = vector.multi_reduction <add>, %7, %cst_5 [1] : vector<64x32xf32> to vector<64xf32>
    %9 = vector.shape_cast %8 : vector<64xf32> to vector<64x1xf32>
    %cst_6 = arith.constant 3.200000e+01 : f32
    %10 = vector.broadcast %cst_6 : f32 to vector<64x1xf32>
    %11 = arith.divf %9, %10 : vector<64x1xf32>
    %12 = vector.broadcast %11 : vector<64x1xf32> to vector<64x32xf32>
    %13 = arith.subf %7, %12 : vector<64x32xf32>
    %14 = arith.mulf %13, %13 : vector<64x32xf32>
    %cst_7 = arith.constant dense<0.000000e+00> : vector<64xf32>
    %15 = vector.multi_reduction <add>, %14, %cst_7 [1] : vector<64x32xf32> to vector<64xf32>
    %16 = vector.shape_cast %15 : vector<64xf32> to vector<64x1xf32>
    %cst_8 = arith.constant 3.200000e+01 : f32
    %17 = vector.broadcast %cst_8 : f32 to vector<64x1xf32>
    %18 = arith.divf %16, %17 : vector<64x1xf32>
    %19 = vector.broadcast %11 : vector<64x1xf32> to vector<64x32xf32>
    %20 = arith.subf %7, %19 : vector<64x32xf32>
    %cst_9 = arith.constant 9.99999974E-6 : f32
    %21 = vector.broadcast %cst_9 : f32 to vector<64x1xf32>
    %22 = arith.addf %18, %21 : vector<64x1xf32>
    %23 = math.rsqrt %22 : vector<64x1xf32>
    %24 = vector.broadcast %23 : vector<64x1xf32> to vector<64x32xf32>
    %25 = arith.mulf %20, %24 : vector<64x32xf32>
    %26 = vector.extract_strided_slice %4 {offsets = [1, 0], sizes = [1, 32], strides = [1, 1]} : vector<3x32xf32> to vector<1x32xf32>
    %27 = vector.broadcast %26 : vector<1x32xf32> to vector<64x32xf32>
    %28 = arith.mulf %25, %27 : vector<64x32xf32>
    %29 = vector.extract_strided_slice %4 {offsets = [2, 0], sizes = [1, 32], strides = [1, 1]} : vector<3x32xf32> to vector<1x32xf32>
    %30 = vector.broadcast %29 : vector<1x32xf32> to vector<64x32xf32>
    %31 = arith.addf %28, %30 : vector<64x32xf32>
    %cst_10 = arith.constant 0.000000e+00 : f32
    %32 = vector.broadcast %cst_10 : f32 to vector<64x32xf32>
    %33 = arith.maximumf %31, %32 : vector<64x32xf32>
    %c0_11 = arith.constant 0 : index
    %c0_12 = arith.constant 0 : index
    %34 = vector.load %arg4[%c0_11, %c0_12] : memref<32x32xbf16, #tpu.memory_space<vmem>>, vector<32x32xbf16>
    %35 = arith.truncf %33 : vector<64x32xf32> to vector<64x32xbf16>
    %cst_13 = arith.constant dense<0.000000e+00> : vector<64x32xf32>
    %36 = tpu.matmul %35, %34, %cst_13 {dimension_numbers = #tpu.dot_dimension_numbers<[1], [0], [0], [1], [0, 0, 1, 1], [], []>} : vector<64x32xbf16>, vector<32x32xbf16>, vector<64x32xf32> -> vector<64x32xf32>
    %c0_14 = arith.constant 0 : index
    %c0_15 = arith.constant 0 : index
    %37 = vector.load %arg5[%c0_14, %c0_15] : memref<3x32xf32, #tpu.memory_space<vmem>>, vector<3x32xf32>
    %38 = vector.extract_strided_slice %37 {offsets = [0, 0], sizes = [1, 32], strides = [1, 1]} : vector<3x32xf32> to vector<1x32xf32>
    %39 = vector.broadcast %38 : vector<1x32xf32> to vector<64x32xf32>
    %40 = arith.addf %36, %39 : vector<64x32xf32>
    %cst_16 = arith.constant dense<0.000000e+00> : vector<64xf32>
    %41 = vector.multi_reduction <add>, %40, %cst_16 [1] : vector<64x32xf32> to vector<64xf32>
    %42 = vector.shape_cast %41 : vector<64xf32> to vector<64x1xf32>
    %cst_17 = arith.constant 3.200000e+01 : f32
    %43 = vector.broadcast %cst_17 : f32 to vector<64x1xf32>
    %44 = arith.divf %42, %43 : vector<64x1xf32>
    %45 = vector.broadcast %44 : vector<64x1xf32> to vector<64x32xf32>
    %46 = arith.subf %40, %45 : vector<64x32xf32>
    %47 = arith.mulf %46, %46 : vector<64x32xf32>
    %cst_18 = arith.constant dense<0.000000e+00> : vector<64xf32>
    %48 = vector.multi_reduction <add>, %47, %cst_18 [1] : vector<64x32xf32> to vector<64xf32>
    %49 = vector.shape_cast %48 : vector<64xf32> to vector<64x1xf32>
    %cst_19 = arith.constant 3.200000e+01 : f32
    %50 = vector.broadcast %cst_19 : f32 to vector<64x1xf32>
    %51 = arith.divf %49, %50 : vector<64x1xf32>
    %52 = vector.broadcast %44 : vector<64x1xf32> to vector<64x32xf32>
    %53 = arith.subf %40, %52 : vector<64x32xf32>
    %cst_20 = arith.constant 9.99999974E-6 : f32
    %54 = vector.broadcast %cst_20 : f32 to vector<64x1xf32>
    %55 = arith.addf %51, %54 : vector<64x1xf32>
    %56 = math.rsqrt %55 : vector<64x1xf32>
    %57 = vector.broadcast %56 : vector<64x1xf32> to vector<64x32xf32>
    %58 = arith.mulf %53, %57 : vector<64x32xf32>
    %59 = vector.extract_strided_slice %37 {offsets = [1, 0], sizes = [1, 32], strides = [1, 1]} : vector<3x32xf32> to vector<1x32xf32>
    %60 = vector.broadcast %59 : vector<1x32xf32> to vector<64x32xf32>
    %61 = arith.mulf %58, %60 : vector<64x32xf32>
    %62 = vector.extract_strided_slice %37 {offsets = [2, 0], sizes = [1, 32], strides = [1, 1]} : vector<3x32xf32> to vector<1x32xf32>
    %63 = vector.broadcast %62 : vector<1x32xf32> to vector<64x32xf32>
    %64 = arith.addf %61, %63 : vector<64x32xf32>
    %cst_21 = arith.constant 0.000000e+00 : f32
    %65 = vector.broadcast %cst_21 : f32 to vector<64x32xf32>
    %66 = arith.maximumf %64, %65 : vector<64x32xf32>
    %c0_22 = arith.constant 0 : index
    %c0_23 = arith.constant 0 : index
    %67 = vector.load %arg6[%c0_22, %c0_23] : memref<64x32xf32, #tpu.memory_space<vmem>>, vector<64x32xf32>
    tpu.vector_store %arg6[%c0_22, %c0_23], %66 {strides = array<i32>} : memref<64x32xf32, #tpu.memory_space<vmem>>, vector<64x32xf32>,
    return
  }
  func.func @transform_0(%arg0: i32) -> (i32, i32) {
    %c0_i32 = arith.constant 0 : i32
    %c0_i32_0 = arith.constant 0 : i32
    return %arg0, %c0_i32 : i32, i32
  }
  func.func @transform_1(%arg0: i32) -> (i32, i32) {
    %c0_i32 = arith.constant 0 : i32
    %c0_i32_0 = arith.constant 0 : i32
    %c0_i32_1 = arith.constant 0 : i32
    return %c0_i32, %c0_i32_0 : i32, i32
  }
  func.func @transform_2(%arg0: i32) -> (i32, i32) {
    %c0_i32 = arith.constant 0 : i32
    %c0_i32_0 = arith.constant 0 : i32
    %c0_i32_1 = arith.constant 0 : i32
    return %c0_i32, %c0_i32_0 : i32, i32
  }
  func.func @transform_3(%arg0: i32) -> (i32, i32) {
    %c0_i32 = arith.constant 0 : i32
    %c0_i32_0 = arith.constant 0 : i32
    %c0_i32_1 = arith.constant 0 : i32
    return %c0_i32, %c0_i32_0 : i32, i32
  }
  func.func @transform_4(%arg0: i32) -> (i32, i32) {
    %c0_i32 = arith.constant 0 : i32
    %c0_i32_0 = arith.constant 0 : i32
    %c0_i32_1 = arith.constant 0 : i32
    return %c0_i32, %c0_i32_0 : i32, i32
  }
  func.func @transform_5(%arg0: i32) -> (i32, i32) {
    %c0_i32 = arith.constant 0 : i32
    %c0_i32_0 = arith.constant 0 : i32
    return %arg0, %c0_i32 : i32, i32
  }
}

module attributes {stable_mosaic.version = 11 : i64} {
  func.func @_node_update_kernel(%arg0: i32, %arg1: i32, %arg2: memref<2x128xi32, #tpu.memory_space<vmem>>, %arg3: memref<128x32xf32, #tpu.memory_space<vmem>>, %arg4: memref<64x32xf32, #tpu.memory_space<vmem>>, %arg5: memref<32x32xbf16, #tpu.memory_space<vmem>>, %arg6: memref<32x32xbf16, #tpu.memory_space<vmem>>, %arg7: memref<3x32xf32, #tpu.memory_space<vmem>>, %arg8: memref<32x32xbf16, #tpu.memory_space<vmem>>, %arg9: memref<3x32xf32, #tpu.memory_space<vmem>>, %arg10: memref<64x32xf32, #tpu.memory_space<vmem>>, %arg11: memref<64x32xf32, #tpu.memory_space<vmem>>) attributes {dimension_semantics = [#tpu.dimension_semantics<parallel>, #tpu.dimension_semantics<arbitrary>], iteration_bounds = array<i64: 1, 1>, scalar_prefetch = 0 : i64, scratch_operands = 1 : i64, tpu.core_type = #tpu.core_type<tc>, window_params = [{transform_indices = @transform_0, window_bounds = array<i64: 2, 128>}, {transform_indices = @transform_1, window_bounds = array<i64: 128, 32>}, {transform_indices = @transform_2, window_bounds = array<i64: 64, 32>}, {pipeline_mode = #tpu.pipeline_mode<synchronous>, transform_indices = @transform_3, window_bounds = array<i64: 32, 32>}, {pipeline_mode = #tpu.pipeline_mode<synchronous>, transform_indices = @transform_4, window_bounds = array<i64: 32, 32>}, {pipeline_mode = #tpu.pipeline_mode<synchronous>, transform_indices = @transform_5, window_bounds = array<i64: 3, 32>}, {pipeline_mode = #tpu.pipeline_mode<synchronous>, transform_indices = @transform_6, window_bounds = array<i64: 32, 32>}, {pipeline_mode = #tpu.pipeline_mode<synchronous>, transform_indices = @transform_7, window_bounds = array<i64: 3, 32>}, {transform_indices = @transform_8, window_bounds = array<i64: 64, 32>}]} {
    %c0_i32 = arith.constant 0 : i32
    %0 = arith.cmpi eq, %arg1, %c0_i32 : i32
    %1 = arith.extui %0 : i1 to i32
    %c0_i32_0 = arith.constant 0 : i32
    %2 = arith.cmpi ne, %1, %c0_i32_0 : i32
    scf.if %2 {
      %cst_10 = arith.constant 0.000000e+00 : f32
      %29 = vector.broadcast %cst_10 : f32 to vector<64x32xf32>
      %c0_11 = arith.constant 0 : index
      %c0_12 = arith.constant 0 : index
      %30 = vector.load %arg11[%c0_11, %c0_12] : memref<64x32xf32, #tpu.memory_space<vmem>>, vector<64x32xf32>
      tpu.vector_store %arg11[%c0_11, %c0_12], %29 {strides = array<i32>} : memref<64x32xf32, #tpu.memory_space<vmem>>, vector<64x32xf32>,
    } else {
    }
    %c0 = arith.constant 0 : index
    %c0_1 = arith.constant 0 : index
    %3 = vector.load %arg2[%c0, %c0_1] : memref<2x128xi32, #tpu.memory_space<vmem>>, vector<2x128xi32>
    %c64_i32 = arith.constant 64 : i32
    %4 = arith.muli %arg0, %c64_i32 : i32
    %5 = tpu.iota {dimensions = array<i32: 0>} : vector<64x128xi32>
    %6 = vector.broadcast %4 : i32 to vector<64x128xi32>
    %7 = arith.addi %6, %5 : vector<64x128xi32>
    %8 = vector.extract_strided_slice %3 {offsets = [0, 0], sizes = [1, 128], strides = [1, 1]} : vector<2x128xi32> to vector<1x128xi32>
    %9 = vector.broadcast %8 : vector<1x128xi32> to vector<64x128xi32>
    %10 = arith.cmpi eq, %7, %9 : vector<64x128xi32>
    %11 = arith.extui %10 : vector<64x128xi1> to vector<64x128xi32>
    %12 = arith.sitofp %11 : vector<64x128xi32> to vector<64x128xf32>
    %13 = vector.extract_strided_slice %3 {offsets = [1, 0], sizes = [1, 128], strides = [1, 1]} : vector<2x128xi32> to vector<1x128xi32>
    %14 = vector.broadcast %13 : vector<1x128xi32> to vector<64x128xi32>
    %15 = arith.cmpi eq, %7, %14 : vector<64x128xi32>
    %16 = arith.extui %15 : vector<64x128xi1> to vector<64x128xi32>
    %17 = arith.sitofp %16 : vector<64x128xi32> to vector<64x128xf32>
    %18 = arith.addf %12, %17 : vector<64x128xf32>
    %c0_2 = arith.constant 0 : index
    %c0_3 = arith.constant 0 : index
    %19 = vector.load %arg11[%c0_2, %c0_3] : memref<64x32xf32, #tpu.memory_space<vmem>>, vector<64x32xf32>
    %20 = arith.truncf %18 : vector<64x128xf32> to vector<64x128xbf16>
    %c0_4 = arith.constant 0 : index
    %c0_5 = arith.constant 0 : index
    %21 = vector.load %arg3[%c0_4, %c0_5] : memref<128x32xf32, #tpu.memory_space<vmem>>, vector<128x32xf32>
    %22 = arith.truncf %21 : vector<128x32xf32> to vector<128x32xbf16>
    %cst = arith.constant dense<0.000000e+00> : vector<64x32xf32>
    %23 = tpu.matmul %20, %22, %cst {dimension_numbers = #tpu.dot_dimension_numbers<[1], [0], [0], [1], [0, 0, 1, 1], [], []>} : vector<64x128xbf16>, vector<128x32xbf16>, vector<64x32xf32> -> vector<64x32xf32>
    %24 = arith.addf %19, %23 : vector<64x32xf32>
    %c0_6 = arith.constant 0 : index
    %c0_7 = arith.constant 0 : index
    %25 = vector.load %arg11[%c0_6, %c0_7] : memref<64x32xf32, #tpu.memory_space<vmem>>, vector<64x32xf32>
    tpu.vector_store %arg11[%c0_6, %c0_7], %24 {strides = array<i32>} : memref<64x32xf32, #tpu.memory_space<vmem>>, vector<64x32xf32>,
    %c0_i32_8 = arith.constant 0 : i32
    %26 = arith.cmpi eq, %arg1, %c0_i32_8 : i32
    %27 = arith.extui %26 : i1 to i32
    %c0_i32_9 = arith.constant 0 : i32
    %28 = arith.cmpi ne, %27, %c0_i32_9 : i32
    scf.if %28 {
      %c0_10 = arith.constant 0 : index
      %c0_11 = arith.constant 0 : index
      %29 = vector.load %arg4[%c0_10, %c0_11] : memref<64x32xf32, #tpu.memory_space<vmem>>, vector<64x32xf32>
      %c0_12 = arith.constant 0 : index
      %c0_13 = arith.constant 0 : index
      %30 = vector.load %arg11[%c0_12, %c0_13] : memref<64x32xf32, #tpu.memory_space<vmem>>, vector<64x32xf32>
      %c0_14 = arith.constant 0 : index
      %c0_15 = arith.constant 0 : index
      %31 = vector.load %arg5[%c0_14, %c0_15] : memref<32x32xbf16, #tpu.memory_space<vmem>>, vector<32x32xbf16>
      %32 = arith.truncf %29 : vector<64x32xf32> to vector<64x32xbf16>
      %cst_16 = arith.constant dense<0.000000e+00> : vector<64x32xf32>
      %33 = tpu.matmul %32, %31, %cst_16 {dimension_numbers = #tpu.dot_dimension_numbers<[1], [0], [0], [1], [0, 0, 1, 1], [], []>} : vector<64x32xbf16>, vector<32x32xbf16>, vector<64x32xf32> -> vector<64x32xf32>
      %c0_17 = arith.constant 0 : index
      %c0_18 = arith.constant 0 : index
      %34 = vector.load %arg6[%c0_17, %c0_18] : memref<32x32xbf16, #tpu.memory_space<vmem>>, vector<32x32xbf16>
      %35 = arith.truncf %30 : vector<64x32xf32> to vector<64x32xbf16>
      %cst_19 = arith.constant dense<0.000000e+00> : vector<64x32xf32>
      %36 = tpu.matmul %35, %34, %cst_19 {dimension_numbers = #tpu.dot_dimension_numbers<[1], [0], [0], [1], [0, 0, 1, 1], [], []>} : vector<64x32xbf16>, vector<32x32xbf16>, vector<64x32xf32> -> vector<64x32xf32>
      %37 = arith.addf %33, %36 : vector<64x32xf32>
      %c0_20 = arith.constant 0 : index
      %c0_21 = arith.constant 0 : index
      %38 = vector.load %arg7[%c0_20, %c0_21] : memref<3x32xf32, #tpu.memory_space<vmem>>, vector<3x32xf32>
      %39 = vector.extract_strided_slice %38 {offsets = [0, 0], sizes = [1, 32], strides = [1, 1]} : vector<3x32xf32> to vector<1x32xf32>
      %40 = vector.broadcast %39 : vector<1x32xf32> to vector<64x32xf32>
      %41 = arith.addf %37, %40 : vector<64x32xf32>
      %cst_22 = arith.constant dense<0.000000e+00> : vector<64xf32>
      %42 = vector.multi_reduction <add>, %41, %cst_22 [1] : vector<64x32xf32> to vector<64xf32>
      %43 = vector.shape_cast %42 : vector<64xf32> to vector<64x1xf32>
      %cst_23 = arith.constant 3.200000e+01 : f32
      %44 = vector.broadcast %cst_23 : f32 to vector<64x1xf32>
      %45 = arith.divf %43, %44 : vector<64x1xf32>
      %46 = vector.broadcast %45 : vector<64x1xf32> to vector<64x32xf32>
      %47 = arith.subf %41, %46 : vector<64x32xf32>
      %48 = arith.mulf %47, %47 : vector<64x32xf32>
      %cst_24 = arith.constant dense<0.000000e+00> : vector<64xf32>
      %49 = vector.multi_reduction <add>, %48, %cst_24 [1] : vector<64x32xf32> to vector<64xf32>
      %50 = vector.shape_cast %49 : vector<64xf32> to vector<64x1xf32>
      %cst_25 = arith.constant 3.200000e+01 : f32
      %51 = vector.broadcast %cst_25 : f32 to vector<64x1xf32>
      %52 = arith.divf %50, %51 : vector<64x1xf32>
      %53 = vector.broadcast %45 : vector<64x1xf32> to vector<64x32xf32>
      %54 = arith.subf %41, %53 : vector<64x32xf32>
      %cst_26 = arith.constant 9.99999974E-6 : f32
      %55 = vector.broadcast %cst_26 : f32 to vector<64x1xf32>
      %56 = arith.addf %52, %55 : vector<64x1xf32>
      %57 = math.rsqrt %56 : vector<64x1xf32>
      %58 = vector.broadcast %57 : vector<64x1xf32> to vector<64x32xf32>
      %59 = arith.mulf %54, %58 : vector<64x32xf32>
      %60 = vector.extract_strided_slice %38 {offsets = [1, 0], sizes = [1, 32], strides = [1, 1]} : vector<3x32xf32> to vector<1x32xf32>
      %61 = vector.broadcast %60 : vector<1x32xf32> to vector<64x32xf32>
      %62 = arith.mulf %59, %61 : vector<64x32xf32>
      %63 = vector.extract_strided_slice %38 {offsets = [2, 0], sizes = [1, 32], strides = [1, 1]} : vector<3x32xf32> to vector<1x32xf32>
      %64 = vector.broadcast %63 : vector<1x32xf32> to vector<64x32xf32>
      %65 = arith.addf %62, %64 : vector<64x32xf32>
      %cst_27 = arith.constant 0.000000e+00 : f32
      %66 = vector.broadcast %cst_27 : f32 to vector<64x32xf32>
      %67 = arith.maximumf %65, %66 : vector<64x32xf32>
      %c0_28 = arith.constant 0 : index
      %c0_29 = arith.constant 0 : index
      %68 = vector.load %arg8[%c0_28, %c0_29] : memref<32x32xbf16, #tpu.memory_space<vmem>>, vector<32x32xbf16>
      %69 = arith.truncf %67 : vector<64x32xf32> to vector<64x32xbf16>
      %cst_30 = arith.constant dense<0.000000e+00> : vector<64x32xf32>
      %70 = tpu.matmul %69, %68, %cst_30 {dimension_numbers = #tpu.dot_dimension_numbers<[1], [0], [0], [1], [0, 0, 1, 1], [], []>} : vector<64x32xbf16>, vector<32x32xbf16>, vector<64x32xf32> -> vector<64x32xf32>
      %c0_31 = arith.constant 0 : index
      %c0_32 = arith.constant 0 : index
      %71 = vector.load %arg9[%c0_31, %c0_32] : memref<3x32xf32, #tpu.memory_space<vmem>>, vector<3x32xf32>
      %72 = vector.extract_strided_slice %71 {offsets = [0, 0], sizes = [1, 32], strides = [1, 1]} : vector<3x32xf32> to vector<1x32xf32>
      %73 = vector.broadcast %72 : vector<1x32xf32> to vector<64x32xf32>
      %74 = arith.addf %70, %73 : vector<64x32xf32>
      %cst_33 = arith.constant dense<0.000000e+00> : vector<64xf32>
      %75 = vector.multi_reduction <add>, %74, %cst_33 [1] : vector<64x32xf32> to vector<64xf32>
      %76 = vector.shape_cast %75 : vector<64xf32> to vector<64x1xf32>
      %cst_34 = arith.constant 3.200000e+01 : f32
      %77 = vector.broadcast %cst_34 : f32 to vector<64x1xf32>
      %78 = arith.divf %76, %77 : vector<64x1xf32>
      %79 = vector.broadcast %78 : vector<64x1xf32> to vector<64x32xf32>
      %80 = arith.subf %74, %79 : vector<64x32xf32>
      %81 = arith.mulf %80, %80 : vector<64x32xf32>
      %cst_35 = arith.constant dense<0.000000e+00> : vector<64xf32>
      %82 = vector.multi_reduction <add>, %81, %cst_35 [1] : vector<64x32xf32> to vector<64xf32>
      %83 = vector.shape_cast %82 : vector<64xf32> to vector<64x1xf32>
      %cst_36 = arith.constant 3.200000e+01 : f32
      %84 = vector.broadcast %cst_36 : f32 to vector<64x1xf32>
      %85 = arith.divf %83, %84 : vector<64x1xf32>
      %86 = vector.broadcast %78 : vector<64x1xf32> to vector<64x32xf32>
      %87 = arith.subf %74, %86 : vector<64x32xf32>
      %cst_37 = arith.constant 9.99999974E-6 : f32
      %88 = vector.broadcast %cst_37 : f32 to vector<64x1xf32>
      %89 = arith.addf %85, %88 : vector<64x1xf32>
      %90 = math.rsqrt %89 : vector<64x1xf32>
      %91 = vector.broadcast %90 : vector<64x1xf32> to vector<64x32xf32>
      %92 = arith.mulf %87, %91 : vector<64x32xf32>
      %93 = vector.extract_strided_slice %71 {offsets = [1, 0], sizes = [1, 32], strides = [1, 1]} : vector<3x32xf32> to vector<1x32xf32>
      %94 = vector.broadcast %93 : vector<1x32xf32> to vector<64x32xf32>
      %95 = arith.mulf %92, %94 : vector<64x32xf32>
      %96 = vector.extract_strided_slice %71 {offsets = [2, 0], sizes = [1, 32], strides = [1, 1]} : vector<3x32xf32> to vector<1x32xf32>
      %97 = vector.broadcast %96 : vector<1x32xf32> to vector<64x32xf32>
      %98 = arith.addf %95, %97 : vector<64x32xf32>
      %cst_38 = arith.constant 0.000000e+00 : f32
      %99 = vector.broadcast %cst_38 : f32 to vector<64x32xf32>
      %100 = arith.maximumf %98, %99 : vector<64x32xf32>
      %101 = arith.addf %100, %29 : vector<64x32xf32>
      %c0_39 = arith.constant 0 : index
      %c0_40 = arith.constant 0 : index
      %102 = vector.load %arg10[%c0_39, %c0_40] : memref<64x32xf32, #tpu.memory_space<vmem>>, vector<64x32xf32>
      tpu.vector_store %arg10[%c0_39, %c0_40], %101 {strides = array<i32>} : memref<64x32xf32, #tpu.memory_space<vmem>>, vector<64x32xf32>,
    } else {
    }
    return
  }
  func.func @transform_0(%arg0: i32, %arg1: i32) -> (i32, i32) {
    %c0_i32 = arith.constant 0 : i32
    %c0_i32_0 = arith.constant 0 : i32
    return %c0_i32, %arg1 : i32, i32
  }
  func.func @transform_1(%arg0: i32, %arg1: i32) -> (i32, i32) {
    %c0_i32 = arith.constant 0 : i32
    %c0_i32_0 = arith.constant 0 : i32
    return %arg1, %c0_i32 : i32, i32
  }
  func.func @transform_2(%arg0: i32, %arg1: i32) -> (i32, i32) {
    %c0_i32 = arith.constant 0 : i32
    %c0_i32_0 = arith.constant 0 : i32
    return %arg0, %c0_i32 : i32, i32
  }
  func.func @transform_3(%arg0: i32, %arg1: i32) -> (i32, i32) {
    %c0_i32 = arith.constant 0 : i32
    %c0_i32_0 = arith.constant 0 : i32
    %c0_i32_1 = arith.constant 0 : i32
    return %c0_i32, %c0_i32_0 : i32, i32
  }
  func.func @transform_4(%arg0: i32, %arg1: i32) -> (i32, i32) {
    %c0_i32 = arith.constant 0 : i32
    %c0_i32_0 = arith.constant 0 : i32
    %c0_i32_1 = arith.constant 0 : i32
    return %c0_i32, %c0_i32_0 : i32, i32
  }
  func.func @transform_5(%arg0: i32, %arg1: i32) -> (i32, i32) {
    %c0_i32 = arith.constant 0 : i32
    %c0_i32_0 = arith.constant 0 : i32
    %c0_i32_1 = arith.constant 0 : i32
    return %c0_i32, %c0_i32_0 : i32, i32
  }
  func.func @transform_6(%arg0: i32, %arg1: i32) -> (i32, i32) {
    %c0_i32 = arith.constant 0 : i32
    %c0_i32_0 = arith.constant 0 : i32
    %c0_i32_1 = arith.constant 0 : i32
    return %c0_i32, %c0_i32_0 : i32, i32
  }
  func.func @transform_7(%arg0: i32, %arg1: i32) -> (i32, i32) {
    %c0_i32 = arith.constant 0 : i32
    %c0_i32_0 = arith.constant 0 : i32
    %c0_i32_1 = arith.constant 0 : i32
    return %c0_i32, %c0_i32_0 : i32, i32
  }
  func.func @transform_8(%arg0: i32, %arg1: i32) -> (i32, i32) {
    %c0_i32 = arith.constant 0 : i32
    %c0_i32_0 = arith.constant 0 : i32
    return %arg0, %c0_i32 : i32, i32
  }
}

module attributes {stable_mosaic.version = 11 : i64} {
  func.func @_fused_mlp_kernel(%arg0: i32, %arg1: memref<128x32xf32, #tpu.memory_space<vmem>>, %arg2: memref<128x32xf32, #tpu.memory_space<vmem>>, %arg3: memref<128x32xf32, #tpu.memory_space<vmem>>, %arg4: memref<32x32xbf16, #tpu.memory_space<vmem>>, %arg5: memref<32x32xbf16, #tpu.memory_space<vmem>>, %arg6: memref<32x32xbf16, #tpu.memory_space<vmem>>, %arg7: memref<3x32xf32, #tpu.memory_space<vmem>>, %arg8: memref<32x32xbf16, #tpu.memory_space<vmem>>, %arg9: memref<3x32xf32, #tpu.memory_space<vmem>>, %arg10: memref<128x32xf32, #tpu.memory_space<vmem>>, %arg11: memref<128x32xf32, #tpu.memory_space<vmem>>) attributes {dimension_semantics = [#tpu.dimension_semantics<parallel>], iteration_bounds = array<i64: 1>, scalar_prefetch = 0 : i64, scratch_operands = 0 : i64, tpu.core_type = #tpu.core_type<tc>, window_params = [{transform_indices = @transform_0, window_bounds = array<i64: 128, 32>}, {transform_indices = @transform_1, window_bounds = array<i64: 128, 32>}, {transform_indices = @transform_2, window_bounds = array<i64: 128, 32>}, {pipeline_mode = #tpu.pipeline_mode<synchronous>, transform_indices = @transform_3, window_bounds = array<i64: 32, 32>}, {pipeline_mode = #tpu.pipeline_mode<synchronous>, transform_indices = @transform_4, window_bounds = array<i64: 32, 32>}, {pipeline_mode = #tpu.pipeline_mode<synchronous>, transform_indices = @transform_5, window_bounds = array<i64: 32, 32>}, {pipeline_mode = #tpu.pipeline_mode<synchronous>, transform_indices = @transform_6, window_bounds = array<i64: 3, 32>}, {pipeline_mode = #tpu.pipeline_mode<synchronous>, transform_indices = @transform_7, window_bounds = array<i64: 32, 32>}, {pipeline_mode = #tpu.pipeline_mode<synchronous>, transform_indices = @transform_8, window_bounds = array<i64: 3, 32>}, {transform_indices = @transform_9, window_bounds = array<i64: 128, 32>}, {transform_indices = @transform_10, window_bounds = array<i64: 128, 32>}]} {
    %c0 = arith.constant 0 : index
    %c0_0 = arith.constant 0 : index
    %0 = vector.load %arg1[%c0, %c0_0] : memref<128x32xf32, #tpu.memory_space<vmem>>, vector<128x32xf32>
    %c0_1 = arith.constant 0 : index
    %c0_2 = arith.constant 0 : index
    %1 = vector.load %arg2[%c0_1, %c0_2] : memref<128x32xf32, #tpu.memory_space<vmem>>, vector<128x32xf32>
    %c0_3 = arith.constant 0 : index
    %c0_4 = arith.constant 0 : index
    %2 = vector.load %arg3[%c0_3, %c0_4] : memref<128x32xf32, #tpu.memory_space<vmem>>, vector<128x32xf32>
    %c0_5 = arith.constant 0 : index
    %c0_6 = arith.constant 0 : index
    %3 = vector.load %arg4[%c0_5, %c0_6] : memref<32x32xbf16, #tpu.memory_space<vmem>>, vector<32x32xbf16>
    %4 = arith.truncf %0 : vector<128x32xf32> to vector<128x32xbf16>
    %cst = arith.constant dense<0.000000e+00> : vector<128x32xf32>
    %5 = tpu.matmul %4, %3, %cst {dimension_numbers = #tpu.dot_dimension_numbers<[1], [0], [0], [1], [0, 0, 1, 1], [], []>} : vector<128x32xbf16>, vector<32x32xbf16>, vector<128x32xf32> -> vector<128x32xf32>
    %c0_7 = arith.constant 0 : index
    %c0_8 = arith.constant 0 : index
    %6 = vector.load %arg5[%c0_7, %c0_8] : memref<32x32xbf16, #tpu.memory_space<vmem>>, vector<32x32xbf16>
    %7 = arith.truncf %1 : vector<128x32xf32> to vector<128x32xbf16>
    %cst_9 = arith.constant dense<0.000000e+00> : vector<128x32xf32>
    %8 = tpu.matmul %7, %6, %cst_9 {dimension_numbers = #tpu.dot_dimension_numbers<[1], [0], [0], [1], [0, 0, 1, 1], [], []>} : vector<128x32xbf16>, vector<32x32xbf16>, vector<128x32xf32> -> vector<128x32xf32>
    %9 = arith.addf %5, %8 : vector<128x32xf32>
    %c0_10 = arith.constant 0 : index
    %c0_11 = arith.constant 0 : index
    %10 = vector.load %arg6[%c0_10, %c0_11] : memref<32x32xbf16, #tpu.memory_space<vmem>>, vector<32x32xbf16>
    %11 = arith.truncf %2 : vector<128x32xf32> to vector<128x32xbf16>
    %cst_12 = arith.constant dense<0.000000e+00> : vector<128x32xf32>
    %12 = tpu.matmul %11, %10, %cst_12 {dimension_numbers = #tpu.dot_dimension_numbers<[1], [0], [0], [1], [0, 0, 1, 1], [], []>} : vector<128x32xbf16>, vector<32x32xbf16>, vector<128x32xf32> -> vector<128x32xf32>
    %13 = arith.addf %9, %12 : vector<128x32xf32>
    %c0_13 = arith.constant 0 : index
    %c0_14 = arith.constant 0 : index
    %14 = vector.load %arg7[%c0_13, %c0_14] : memref<3x32xf32, #tpu.memory_space<vmem>>, vector<3x32xf32>
    %15 = vector.extract_strided_slice %14 {offsets = [0, 0], sizes = [1, 32], strides = [1, 1]} : vector<3x32xf32> to vector<1x32xf32>
    %16 = vector.broadcast %15 : vector<1x32xf32> to vector<128x32xf32>
    %17 = arith.addf %13, %16 : vector<128x32xf32>
    %cst_15 = arith.constant dense<0.000000e+00> : vector<128xf32>
    %18 = vector.multi_reduction <add>, %17, %cst_15 [1] : vector<128x32xf32> to vector<128xf32>
    %19 = vector.shape_cast %18 : vector<128xf32> to vector<128x1xf32>
    %cst_16 = arith.constant 3.200000e+01 : f32
    %20 = vector.broadcast %cst_16 : f32 to vector<128x1xf32>
    %21 = arith.divf %19, %20 : vector<128x1xf32>
    %22 = vector.broadcast %21 : vector<128x1xf32> to vector<128x32xf32>
    %23 = arith.subf %17, %22 : vector<128x32xf32>
    %24 = arith.mulf %23, %23 : vector<128x32xf32>
    %cst_17 = arith.constant dense<0.000000e+00> : vector<128xf32>
    %25 = vector.multi_reduction <add>, %24, %cst_17 [1] : vector<128x32xf32> to vector<128xf32>
    %26 = vector.shape_cast %25 : vector<128xf32> to vector<128x1xf32>
    %cst_18 = arith.constant 3.200000e+01 : f32
    %27 = vector.broadcast %cst_18 : f32 to vector<128x1xf32>
    %28 = arith.divf %26, %27 : vector<128x1xf32>
    %29 = vector.broadcast %21 : vector<128x1xf32> to vector<128x32xf32>
    %30 = arith.subf %17, %29 : vector<128x32xf32>
    %cst_19 = arith.constant 9.99999974E-6 : f32
    %31 = vector.broadcast %cst_19 : f32 to vector<128x1xf32>
    %32 = arith.addf %28, %31 : vector<128x1xf32>
    %33 = math.rsqrt %32 : vector<128x1xf32>
    %34 = vector.broadcast %33 : vector<128x1xf32> to vector<128x32xf32>
    %35 = arith.mulf %30, %34 : vector<128x32xf32>
    %36 = vector.extract_strided_slice %14 {offsets = [1, 0], sizes = [1, 32], strides = [1, 1]} : vector<3x32xf32> to vector<1x32xf32>
    %37 = vector.broadcast %36 : vector<1x32xf32> to vector<128x32xf32>
    %38 = arith.mulf %35, %37 : vector<128x32xf32>
    %39 = vector.extract_strided_slice %14 {offsets = [2, 0], sizes = [1, 32], strides = [1, 1]} : vector<3x32xf32> to vector<1x32xf32>
    %40 = vector.broadcast %39 : vector<1x32xf32> to vector<128x32xf32>
    %41 = arith.addf %38, %40 : vector<128x32xf32>
    %cst_20 = arith.constant 0.000000e+00 : f32
    %42 = vector.broadcast %cst_20 : f32 to vector<128x32xf32>
    %43 = arith.maximumf %41, %42 : vector<128x32xf32>
    %c0_21 = arith.constant 0 : index
    %c0_22 = arith.constant 0 : index
    %44 = vector.load %arg8[%c0_21, %c0_22] : memref<32x32xbf16, #tpu.memory_space<vmem>>, vector<32x32xbf16>
    %45 = arith.truncf %43 : vector<128x32xf32> to vector<128x32xbf16>
    %cst_23 = arith.constant dense<0.000000e+00> : vector<128x32xf32>
    %46 = tpu.matmul %45, %44, %cst_23 {dimension_numbers = #tpu.dot_dimension_numbers<[1], [0], [0], [1], [0, 0, 1, 1], [], []>} : vector<128x32xbf16>, vector<32x32xbf16>, vector<128x32xf32> -> vector<128x32xf32>
    %c0_24 = arith.constant 0 : index
    %c0_25 = arith.constant 0 : index
    %47 = vector.load %arg9[%c0_24, %c0_25] : memref<3x32xf32, #tpu.memory_space<vmem>>, vector<3x32xf32>
    %48 = vector.extract_strided_slice %47 {offsets = [0, 0], sizes = [1, 32], strides = [1, 1]} : vector<3x32xf32> to vector<1x32xf32>
    %49 = vector.broadcast %48 : vector<1x32xf32> to vector<128x32xf32>
    %50 = arith.addf %46, %49 : vector<128x32xf32>
    %cst_26 = arith.constant dense<0.000000e+00> : vector<128xf32>
    %51 = vector.multi_reduction <add>, %50, %cst_26 [1] : vector<128x32xf32> to vector<128xf32>
    %52 = vector.shape_cast %51 : vector<128xf32> to vector<128x1xf32>
    %cst_27 = arith.constant 3.200000e+01 : f32
    %53 = vector.broadcast %cst_27 : f32 to vector<128x1xf32>
    %54 = arith.divf %52, %53 : vector<128x1xf32>
    %55 = vector.broadcast %54 : vector<128x1xf32> to vector<128x32xf32>
    %56 = arith.subf %50, %55 : vector<128x32xf32>
    %57 = arith.mulf %56, %56 : vector<128x32xf32>
    %cst_28 = arith.constant dense<0.000000e+00> : vector<128xf32>
    %58 = vector.multi_reduction <add>, %57, %cst_28 [1] : vector<128x32xf32> to vector<128xf32>
    %59 = vector.shape_cast %58 : vector<128xf32> to vector<128x1xf32>
    %cst_29 = arith.constant 3.200000e+01 : f32
    %60 = vector.broadcast %cst_29 : f32 to vector<128x1xf32>
    %61 = arith.divf %59, %60 : vector<128x1xf32>
    %62 = vector.broadcast %54 : vector<128x1xf32> to vector<128x32xf32>
    %63 = arith.subf %50, %62 : vector<128x32xf32>
    %cst_30 = arith.constant 9.99999974E-6 : f32
    %64 = vector.broadcast %cst_30 : f32 to vector<128x1xf32>
    %65 = arith.addf %61, %64 : vector<128x1xf32>
    %66 = math.rsqrt %65 : vector<128x1xf32>
    %67 = vector.broadcast %66 : vector<128x1xf32> to vector<128x32xf32>
    %68 = arith.mulf %63, %67 : vector<128x32xf32>
    %69 = vector.extract_strided_slice %47 {offsets = [1, 0], sizes = [1, 32], strides = [1, 1]} : vector<3x32xf32> to vector<1x32xf32>
    %70 = vector.broadcast %69 : vector<1x32xf32> to vector<128x32xf32>
    %71 = arith.mulf %68, %70 : vector<128x32xf32>
    %72 = vector.extract_strided_slice %47 {offsets = [2, 0], sizes = [1, 32], strides = [1, 1]} : vector<3x32xf32> to vector<1x32xf32>
    %73 = vector.broadcast %72 : vector<1x32xf32> to vector<128x32xf32>
    %74 = arith.addf %71, %73 : vector<128x32xf32>
    %cst_31 = arith.constant 0.000000e+00 : f32
    %75 = vector.broadcast %cst_31 : f32 to vector<128x32xf32>
    %76 = arith.maximumf %74, %75 : vector<128x32xf32>
    %c0_32 = arith.constant 0 : index
    %c0_33 = arith.constant 0 : index
    %77 = vector.load %arg10[%c0_32, %c0_33] : memref<128x32xf32, #tpu.memory_space<vmem>>, vector<128x32xf32>
    %78 = arith.addf %76, %77 : vector<128x32xf32>
    %c0_34 = arith.constant 0 : index
    %c0_35 = arith.constant 0 : index
    %79 = vector.load %arg11[%c0_34, %c0_35] : memref<128x32xf32, #tpu.memory_space<vmem>>, vector<128x32xf32>
    tpu.vector_store %arg11[%c0_34, %c0_35], %78 {strides = array<i32>} : memref<128x32xf32, #tpu.memory_space<vmem>>, vector<128x32xf32>,
    return
  }
  func.func @transform_0(%arg0: i32) -> (i32, i32) {
    %c0_i32 = arith.constant 0 : i32
    %c0_i32_0 = arith.constant 0 : i32
    return %arg0, %c0_i32 : i32, i32
  }
  func.func @transform_1(%arg0: i32) -> (i32, i32) {
    %c0_i32 = arith.constant 0 : i32
    %c0_i32_0 = arith.constant 0 : i32
    return %arg0, %c0_i32 : i32, i32
  }
  func.func @transform_2(%arg0: i32) -> (i32, i32) {
    %c0_i32 = arith.constant 0 : i32
    %c0_i32_0 = arith.constant 0 : i32
    return %arg0, %c0_i32 : i32, i32
  }
  func.func @transform_3(%arg0: i32) -> (i32, i32) {
    %c0_i32 = arith.constant 0 : i32
    %c0_i32_0 = arith.constant 0 : i32
    %c0_i32_1 = arith.constant 0 : i32
    return %c0_i32, %c0_i32_0 : i32, i32
  }
  func.func @transform_4(%arg0: i32) -> (i32, i32) {
    %c0_i32 = arith.constant 0 : i32
    %c0_i32_0 = arith.constant 0 : i32
    %c0_i32_1 = arith.constant 0 : i32
    return %c0_i32, %c0_i32_0 : i32, i32
  }
  func.func @transform_5(%arg0: i32) -> (i32, i32) {
    %c0_i32 = arith.constant 0 : i32
    %c0_i32_0 = arith.constant 0 : i32
    %c0_i32_1 = arith.constant 0 : i32
    return %c0_i32, %c0_i32_0 : i32, i32
  }
  func.func @transform_6(%arg0: i32) -> (i32, i32) {
    %c0_i32 = arith.constant 0 : i32
    %c0_i32_0 = arith.constant 0 : i32
    %c0_i32_1 = arith.constant 0 : i32
    return %c0_i32, %c0_i32_0 : i32, i32
  }
  func.func @transform_7(%arg0: i32) -> (i32, i32) {
    %c0_i32 = arith.constant 0 : i32
    %c0_i32_0 = arith.constant 0 : i32
    %c0_i32_1 = arith.constant 0 : i32
    return %c0_i32, %c0_i32_0 : i32, i32
  }
  func.func @transform_8(%arg0: i32) -> (i32, i32) {
    %c0_i32 = arith.constant 0 : i32
    %c0_i32_0 = arith.constant 0 : i32
    %c0_i32_1 = arith.constant 0 : i32
    return %c0_i32, %c0_i32_0 : i32, i32
  }
  func.func @transform_9(%arg0: i32) -> (i32, i32) {
    %c0_i32 = arith.constant 0 : i32
    %c0_i32_0 = arith.constant 0 : i32
    return %arg0, %c0_i32 : i32, i32
  }
  func.func @transform_10(%arg0: i32) -> (i32, i32) {
    %c0_i32 = arith.constant 0 : i32
    %c0_i32_0 = arith.constant 0 : i32
    return %arg0, %c0_i32 : i32, i32
  }
}

module attributes {stable_mosaic.version = 11 : i64} {
  func.func @_fused_mlp_kernel(%arg0: i32, %arg1: memref<64x32xf32, #tpu.memory_space<vmem>>, %arg2: memref<32x32xbf16, #tpu.memory_space<vmem>>, %arg3: memref<3x32xf32, #tpu.memory_space<vmem>>, %arg4: memref<32x16xbf16, #tpu.memory_space<vmem>>, %arg5: memref<3x16xf32, #tpu.memory_space<vmem>>, %arg6: memref<64x16xf32, #tpu.memory_space<vmem>>) attributes {dimension_semantics = [#tpu.dimension_semantics<parallel>], iteration_bounds = array<i64: 1>, scalar_prefetch = 0 : i64, scratch_operands = 0 : i64, tpu.core_type = #tpu.core_type<tc>, window_params = [{transform_indices = @transform_0, window_bounds = array<i64: 64, 32>}, {pipeline_mode = #tpu.pipeline_mode<synchronous>, transform_indices = @transform_1, window_bounds = array<i64: 32, 32>}, {pipeline_mode = #tpu.pipeline_mode<synchronous>, transform_indices = @transform_2, window_bounds = array<i64: 3, 32>}, {pipeline_mode = #tpu.pipeline_mode<synchronous>, transform_indices = @transform_3, window_bounds = array<i64: 32, 16>}, {pipeline_mode = #tpu.pipeline_mode<synchronous>, transform_indices = @transform_4, window_bounds = array<i64: 3, 16>}, {transform_indices = @transform_5, window_bounds = array<i64: 64, 16>}]} {
    %c0 = arith.constant 0 : index
    %c0_0 = arith.constant 0 : index
    %0 = vector.load %arg1[%c0, %c0_0] : memref<64x32xf32, #tpu.memory_space<vmem>>, vector<64x32xf32>
    %c0_1 = arith.constant 0 : index
    %c0_2 = arith.constant 0 : index
    %1 = vector.load %arg2[%c0_1, %c0_2] : memref<32x32xbf16, #tpu.memory_space<vmem>>, vector<32x32xbf16>
    %2 = arith.truncf %0 : vector<64x32xf32> to vector<64x32xbf16>
    %cst = arith.constant dense<0.000000e+00> : vector<64x32xf32>
    %3 = tpu.matmul %2, %1, %cst {dimension_numbers = #tpu.dot_dimension_numbers<[1], [0], [0], [1], [0, 0, 1, 1], [], []>} : vector<64x32xbf16>, vector<32x32xbf16>, vector<64x32xf32> -> vector<64x32xf32>
    %c0_3 = arith.constant 0 : index
    %c0_4 = arith.constant 0 : index
    %4 = vector.load %arg3[%c0_3, %c0_4] : memref<3x32xf32, #tpu.memory_space<vmem>>, vector<3x32xf32>
    %5 = vector.extract_strided_slice %4 {offsets = [0, 0], sizes = [1, 32], strides = [1, 1]} : vector<3x32xf32> to vector<1x32xf32>
    %6 = vector.broadcast %5 : vector<1x32xf32> to vector<64x32xf32>
    %7 = arith.addf %3, %6 : vector<64x32xf32>
    %cst_5 = arith.constant dense<0.000000e+00> : vector<64xf32>
    %8 = vector.multi_reduction <add>, %7, %cst_5 [1] : vector<64x32xf32> to vector<64xf32>
    %9 = vector.shape_cast %8 : vector<64xf32> to vector<64x1xf32>
    %cst_6 = arith.constant 3.200000e+01 : f32
    %10 = vector.broadcast %cst_6 : f32 to vector<64x1xf32>
    %11 = arith.divf %9, %10 : vector<64x1xf32>
    %12 = vector.broadcast %11 : vector<64x1xf32> to vector<64x32xf32>
    %13 = arith.subf %7, %12 : vector<64x32xf32>
    %14 = arith.mulf %13, %13 : vector<64x32xf32>
    %cst_7 = arith.constant dense<0.000000e+00> : vector<64xf32>
    %15 = vector.multi_reduction <add>, %14, %cst_7 [1] : vector<64x32xf32> to vector<64xf32>
    %16 = vector.shape_cast %15 : vector<64xf32> to vector<64x1xf32>
    %cst_8 = arith.constant 3.200000e+01 : f32
    %17 = vector.broadcast %cst_8 : f32 to vector<64x1xf32>
    %18 = arith.divf %16, %17 : vector<64x1xf32>
    %19 = vector.broadcast %11 : vector<64x1xf32> to vector<64x32xf32>
    %20 = arith.subf %7, %19 : vector<64x32xf32>
    %cst_9 = arith.constant 9.99999974E-6 : f32
    %21 = vector.broadcast %cst_9 : f32 to vector<64x1xf32>
    %22 = arith.addf %18, %21 : vector<64x1xf32>
    %23 = math.rsqrt %22 : vector<64x1xf32>
    %24 = vector.broadcast %23 : vector<64x1xf32> to vector<64x32xf32>
    %25 = arith.mulf %20, %24 : vector<64x32xf32>
    %26 = vector.extract_strided_slice %4 {offsets = [1, 0], sizes = [1, 32], strides = [1, 1]} : vector<3x32xf32> to vector<1x32xf32>
    %27 = vector.broadcast %26 : vector<1x32xf32> to vector<64x32xf32>
    %28 = arith.mulf %25, %27 : vector<64x32xf32>
    %29 = vector.extract_strided_slice %4 {offsets = [2, 0], sizes = [1, 32], strides = [1, 1]} : vector<3x32xf32> to vector<1x32xf32>
    %30 = vector.broadcast %29 : vector<1x32xf32> to vector<64x32xf32>
    %31 = arith.addf %28, %30 : vector<64x32xf32>
    %cst_10 = arith.constant 0.000000e+00 : f32
    %32 = vector.broadcast %cst_10 : f32 to vector<64x32xf32>
    %33 = arith.maximumf %31, %32 : vector<64x32xf32>
    %c0_11 = arith.constant 0 : index
    %c0_12 = arith.constant 0 : index
    %34 = vector.load %arg4[%c0_11, %c0_12] : memref<32x16xbf16, #tpu.memory_space<vmem>>, vector<32x16xbf16>
    %35 = arith.truncf %33 : vector<64x32xf32> to vector<64x32xbf16>
    %cst_13 = arith.constant dense<0.000000e+00> : vector<64x16xf32>
    %36 = tpu.matmul %35, %34, %cst_13 {dimension_numbers = #tpu.dot_dimension_numbers<[1], [0], [0], [1], [0, 0, 1, 1], [], []>} : vector<64x32xbf16>, vector<32x16xbf16>, vector<64x16xf32> -> vector<64x16xf32>
    %c0_14 = arith.constant 0 : index
    %c0_15 = arith.constant 0 : index
    %37 = vector.load %arg5[%c0_14, %c0_15] : memref<3x16xf32, #tpu.memory_space<vmem>>, vector<3x16xf32>
    %38 = vector.extract_strided_slice %37 {offsets = [0, 0], sizes = [1, 16], strides = [1, 1]} : vector<3x16xf32> to vector<1x16xf32>
    %39 = vector.broadcast %38 : vector<1x16xf32> to vector<64x16xf32>
    %40 = arith.addf %36, %39 : vector<64x16xf32>
    %41 = arith.mulf %40, %40 : vector<64x16xf32>
    %cst_16 = arith.constant dense<0.000000e+00> : vector<64xf32>
    %42 = vector.multi_reduction <add>, %41, %cst_16 [1] : vector<64x16xf32> to vector<64xf32>
    %43 = vector.shape_cast %42 : vector<64xf32> to vector<64x1xf32>
    %cst_17 = arith.constant 1.000000e-24 : f32
    %44 = vector.broadcast %cst_17 : f32 to vector<64x1xf32>
    %45 = arith.maximumf %43, %44 : vector<64x1xf32>
    %46 = math.rsqrt %45 : vector<64x1xf32>
    %47 = vector.broadcast %46 : vector<64x1xf32> to vector<64x16xf32>
    %48 = arith.mulf %40, %47 : vector<64x16xf32>
    %c0_18 = arith.constant 0 : index
    %c0_19 = arith.constant 0 : index
    %49 = vector.load %arg6[%c0_18, %c0_19] : memref<64x16xf32, #tpu.memory_space<vmem>>, vector<64x16xf32>
    tpu.vector_store %arg6[%c0_18, %c0_19], %48 {strides = array<i32>} : memref<64x16xf32, #tpu.memory_space<vmem>>, vector<64x16xf32>,
    return
  }
  func.func @transform_0(%arg0: i32) -> (i32, i32) {
    %c0_i32 = arith.constant 0 : i32
    %c0_i32_0 = arith.constant 0 : i32
    return %arg0, %c0_i32 : i32, i32
  }
  func.func @transform_1(%arg0: i32) -> (i32, i32) {
    %c0_i32 = arith.constant 0 : i32
    %c0_i32_0 = arith.constant 0 : i32
    %c0_i32_1 = arith.constant 0 : i32
    return %c0_i32, %c0_i32_0 : i32, i32
  }
  func.func @transform_2(%arg0: i32) -> (i32, i32) {
    %c0_i32 = arith.constant 0 : i32
    %c0_i32_0 = arith.constant 0 : i32
    %c0_i32_1 = arith.constant 0 : i32
    return %c0_i32, %c0_i32_0 : i32, i32
  }
  func.func @transform_3(%arg0: i32) -> (i32, i32) {
    %c0_i32 = arith.constant 0 : i32
    %c0_i32_0 = arith.constant 0 : i32
    %c0_i32_1 = arith.constant 0 : i32
    return %c0_i32, %c0_i32_0 : i32, i32
  }
  func.func @transform_4(%arg0: i32) -> (i32, i32) {
    %c0_i32 = arith.constant 0 : i32
    %c0_i32_0 = arith.constant 0 : i32
    %c0_i32_1 = arith.constant 0 : i32
    return %c0_i32, %c0_i32_0 : i32, i32
  }
  func.func @transform_5(%arg0: i32) -> (i32, i32) {
    %c0_i32 = arith.constant 0 : i32
    %c0_i32_0 = arith.constant 0 : i32
    return %arg0, %c0_i32 : i32, i32
  }
}

</mosaic_0001>

<bundles_post_ra>
// kernel: _lambda_.8
= control target key start
LH: loop header
LB: loop body
LE: loop exit
PB: predicated region body
PF: predicated region fallthrough
CT: control target
= control target key end

     0   :  { %vm102_vm0 = vcmask 1043456   ;;  %vm77_vm1 = vcmask 64512   ;;  %v328_v52 = vlaneseq  ;;  %vm348_vm2 = vcmask 261120   ;;  %s1961_s3 = inlined_call_operand.vmem [shape: bf16[8,32], index: 3, kind: input, shape index: {}]   ;;  %s1962_s1 = inlined_call_operand.vmem [shape: f32[128,8], index: 1, kind: input, shape index: {}]   ;;  %s1963_s2 = inlined_call_operand.vmem [shape: bf16[8,32], index: 2, kind: input, shape index: {}]   ;;  %s1964_s0 = inlined_call_operand.vmem [shape: f32[128,8], index: 0, kind: input, shape index: {}]   ;;  %s1965_s4 = inlined_call_operand.vmem [shape: f32[3,32], index: 4, kind: input, shape index: {}]   ;;  %s1966_s5 = inlined_call_operand.vmem [shape: bf16[32,32], index: 5, kind: input, shape index: {}]   ;;  %s1967_s6 = inlined_call_operand.vmem [shape: f32[3,32], index: 6, kind: input, shape index: {}]   ;;  %s1968_s7 = inlined_call_operand.vmem [shape: f32[128,32], index: 7, kind: output, shape index: {}]  }
   0x1   :  { %v68_v0 = vld [vmem:[%s1961_s3] sm:$0xf]  ;;  %v44_v2 = vld [vmem:[%s1962_s1 + $0x8] sm:$0xff]  ;;  %v45_v5 = vld [vmem:[%s1962_s1 + $0x10] sm:$0xff] }
   0x2   :  { %v43_v1 = vld [vmem:[%s1962_s1] sm:$0xff]  ;;  %1176 = vmatprep.subr.msk.bf16.mxu0 %vm102_vm0, %v68_v0  ;;  %v104_v3 = vsel %vm102_vm0, %v68_v0, 0  ;;  %v46_v6 = vld [vmem:[%s1962_s1 + $0x18] sm:$0xff]  ;;  %1177 = vmatprep.subr.msk.bf16.mxu1 %vm102_vm0, %v68_v0  ;;  %v48_v10 = vld [vmem:[%s1962_s1 + $0x28] sm:$0xff]  ;;  %v1408_v53 = vshrl.u32 %v328_v52, 7 }
   0x3   :  { %v69_v4 = vpack.c.bf16 %v44_v2, %v43_v1  ;;  %v59_v7 = vld [vmem:[%s1963_s2] sm:$0xf]  ;;  %1103 = vmatpush3.bf16.msra.mxu0 %v104_v3  ;;  %v70_v8 = vpack.c.bf16 %v46_v6, %v45_v5  ;;  %1159 = vmatpush3.bf16.msra.mxu1 %v104_v3  ;;  %v49_v13 = vld [vmem:[%s1962_s1 + $0x30] sm:$0xff]  ;;  %v50_v14 = vld [vmem:[%s1962_s1 + $0x38] sm:$0xff] }
   0x4   :  { %v47_v9 = vld [vmem:[%s1962_s1 + $0x20] sm:$0xff]  ;;  %1178 = vmatprep.subr.msk.bf16.mxu0 %vm102_vm0, %v59_v7  ;;  %v228_v11 = vsel %vm102_vm0, %v59_v7, 0  ;;  %v52_v16 = vld [vmem:[%s1962_s1 + $0x48] sm:$0xff]  ;;  %v53_v17 = vld [vmem:[%s1962_s1 + $0x50] sm:$0xff]  ;;  %v72_v24 = vpack.c.bf16 %v50_v14, %v49_v13  ;;  %v330_v58 = vsub.s32 0, %v1408_v53 }
   0x5   :  { %1104 = vmatprep.mubr.msk.bf16.mxu0 %vm77_vm1, %v69_v4  ;;  %v71_v12 = vpack.c.bf16 %v48_v10, %v47_v9  ;;  %v51_v15 = vld [vmem:[%s1962_s1 + $0x40] sm:$0xff]  ;;  %v28_v19 = vld [vmem:[%s1964_s0 + $0x8] sm:$0xff]  ;;  %v54_v21 = vld [vmem:[%s1962_s1 + $0x58] sm:$0xff] }
   0x6   :  { %1105 = vmatmul.mubr.msk.bf16.vlgmr.msra.gmra.mrb[0].mxu0 %vm77_vm1, %v70_v8  ;;  %v27_v18 = vld [vmem:[%s1964_s0] sm:$0xff]  ;;  %v73_v20 = vpack.c.bf16 %v52_v16, %v51_v15  ;;  %v74_v22 = vpack.c.bf16 %v54_v21, %v53_v17  ;;  %v56_v25 = vld [vmem:[%s1962_s1 + $0x68] sm:$0xff]  ;;  %v57_v28 = vld [vmem:[%s1962_s1 + $0x70] sm:$0xff] }
   0x7   :  { %1121 = vmatpush3.bf16.msra.mxu0 %v228_v11  ;;  %1108 = vmatprep.mubr.msk.bf16.mxu0 %vm77_vm1, %v71_v12  ;;  %v55_v23 = vld [vmem:[%s1962_s1 + $0x60] sm:$0xff]  ;;  %v60_v26 = vpack.c.bf16 %v28_v19, %v27_v18  ;;  %v58_v29 = vld [vmem:[%s1962_s1 + $0x78] sm:$0xff]  ;;  %v29_v30 = vld [vmem:[%s1964_s0 + $0x10] sm:$0xff] }
   0x8   :  { %1112 = vmatprep.mubr.msk.bf16.mxu1 %vm77_vm1, %v73_v20  ;;  %v75_v27 = vpack.c.bf16 %v56_v25, %v55_v23  ;;  %v30_v31 = vld [vmem:[%s1964_s0 + $0x18] sm:$0xff]  ;;  %v76_v32 = vpack.c.bf16 %v58_v29, %v57_v28  ;;  %v31_v33 = vld [vmem:[%s1964_s0 + $0x20] sm:$0xff]  ;;  %v32_v34 = vld [vmem:[%s1964_s0 + $0x28] sm:$0xff] }
   0x9   :  { %1113 = vmatmul.mubr.msk.bf16.vlgmr.msra.gmra.mrb[0].mxu1 %vm77_vm1, %v74_v22  ;;  %v61_v35 = vpack.c.bf16 %v30_v31, %v29_v30  ;;  %v62_v36 = vpack.c.bf16 %v32_v34, %v31_v33  ;;  %v33_v37 = vld [vmem:[%s1964_s0 + $0x30] sm:$0xff]  ;;  %v34_v38 = vld [vmem:[%s1964_s0 + $0x38] sm:$0xff]  ;;  %v35_v39 = vld [vmem:[%s1964_s0 + $0x40] sm:$0xff] }
   0xa   :  { %1116 = vmatprep.mubr.msk.bf16.mxu1 %vm77_vm1, %v75_v27  ;;  %v36_v40 = vld [vmem:[%s1964_s0 + $0x48] sm:$0xff]  ;;  %v63_v41 = vpack.c.bf16 %v34_v38, %v33_v37  ;;  %v37_v43 = vld [vmem:[%s1964_s0 + $0x50] sm:$0xff]  ;;  %v38_v44 = vld [vmem:[%s1964_s0 + $0x58] sm:$0xff] }
   0xb   :  { %v64_v42 = vpack.c.bf16 %v36_v40, %v35_v39  ;;  %v39_v45 = vld [vmem:[%s1964_s0 + $0x60] sm:$0xff]  ;;  %v40_v46 = vld [vmem:[%s1964_s0 + $0x68] sm:$0xff]  ;;  %v65_v47 = vpack.c.bf16 %v38_v44, %v37_v43  ;;  %v41_v49 = vld [vmem:[%s1964_s0 + $0x70] sm:$0xff] }
   0xc   :  { %v66_v48 = vpack.c.bf16 %v40_v46, %v39_v45  ;;  %v42_v50 = vld [vmem:[%s1964_s0 + $0x78] sm:$0xff]  ;;  %v1414_v59 = vld [vmem:[%s1965_s4] sm:$0x7] }
   0xd   :  { %v67_v51 = vpack.c.bf16 %v42_v50, %v41_v49  ;;  %v1419_v60 = vrot.slane %v1414_v59, %v330_v58 }
   0xe   :  { %1109 = vmatmul.mubr.msk.bf16.gmra.mrb[4].mxu0 %vm77_vm1, %v72_v24 }
   0xf   :  { %1122 = vmatprep.mubr.msk.bf16.mxu0 %vm77_vm1, %v60_v26 }
  0x11   :  { %1117 = vmatmul.mubr.msk.bf16.gmra.mrb[4].mxu1 %vm77_vm1, %v76_v32 }
  0x16   :  { %1123 = vmatmul.mubr.msk.bf16.vlgmr.msra.gmra.mrb[0].mxu0 %vm77_vm1, %v61_v35 }
  0x17   :  { %1126 = vmatprep.mubr.msk.bf16.mxu0 %vm77_vm1, %v62_v36 }
  0x1e   :  { %1127 = vmatmul.mubr.msk.bf16.gmra.mrb[4].mxu0 %vm77_vm1, %v63_v41 }
  0x1f   :  { %1130 = vmatprep.mubr.msk.bf16.mxu0 %vm77_vm1, %v64_v42 }
  0x26   :  { %1131 = vmatmul.mubr.msk.bf16.gmra.mrb[8].mxu0 %vm77_vm1, %v65_v47 }
  0x27   :  { %1134 = vmatprep.mubr.msk.bf16.mxu0 %vm77_vm1, %v66_v48 }
  0x2e   :  { %1135 = vmatmul.mubr.msk.bf16.gmra.mrb[12].mxu0 %vm77_vm1, %v67_v51 }
  0xdc   :  { %v1114_v54 = vpop.f32.mrb[0].mxu1 }
  0xdd   :  { %v172_v55 = vpop.f32.mrb[1].mxu1 }
  0xde   :  { %v1115_v56 = vpop.f32.mrb[2].mxu1 }
  0xdf   :  { %v175_v57 = vpop.f32.mrb[3].mxu1 }
  0xe4   :  { %v1118_v61 = vpop.f32.mrb[4].mxu1 }
  0xe5   :  { %v188_v62 = vpop.f32.mrb[5].mxu1 }
  0xe6   :  { %v1119_v63 = vpop.f32.mrb[6].mxu1 }
  0xe7   :  { %v191_v1 = vpop.f32.mrb[7].mxu1 }
  0xe9   :  { %v1124_v0 = vpop.f32.mrb[0].mxu0 }
  0xea   :  { %v1422_v2 = vadd.f32 %v1124_v0, %v1419_v60  ;;  %v264_v3 = vpop.f32.mrb[1].mxu0 }
  0xeb   :  { %v1425_v4 = vadd.f32 %v1419_v60, %v264_v3  ;;  %v1125_v5 = vpop.f32.mrb[2].mxu0 }
  0xec   :  { %v1428_v6 = vadd.f32 %v1125_v5, %v1419_v60  ;;  %v267_v7 = vpop.f32.mrb[3].mxu0  ;;  %v355_v8 = vsel %vm348_vm2, %v1422_v2, 0.0 }
  0xed   :  { %v1433_v9 = vadd.f32 %v1419_v60, %v267_v7  ;;  %356 = vadd.xlane.f32.xlu1 %v355_v8  ;;  %v349_v10 = vsel %vm348_vm2, %v1425_v4, 0.0 }
  0xee   :  { %350 = vadd.xlane.f32.xlu0 %v349_v10  ;;  %v358_v11 = vsel %vm348_vm2, %v1428_v6, 0.0 }
  0xef   :  { %v352_v13 = vsel %vm348_vm2, %v1433_v9, 0.0 }
  0xf1   :  { %359 = vadd.xlane.f32.xlu1 %v358_v11  ;;  %v1128_v12 = vpop.f32.mrb[4].mxu0 }
  0xf2   :  { %353 = vadd.xlane.f32.xlu0 %v352_v13  ;;  %v280_v14 = vpop.f32.mrb[5].mxu0  ;;  %v1445_v18 = vadd.f32 %v1128_v12, %v1419_v60 }
  0xf3   :  { %v1442_v15 = vadd.f32 %v1419_v60, %v280_v14  ;;  %v1129_v16 = vpop.f32.mrb[6].mxu0 }
  0xf4   :  { %v283_v17 = vpop.f32.mrb[7].mxu0  ;;  %v1453_v21 = vadd.f32 %v1129_v16, %v1419_v60  ;;  %v367_v24 = vsel %vm348_vm2, %v1445_v18, 0.0 }
  0xf5   :  { %v1448_v19 = vadd.f32 %v1419_v60, %v283_v17  ;;  %v361_v20 = vsel %vm348_vm2, %v1442_v15, 0.0 }
  0xf6   :  { %362 = vadd.xlane.f32.xlu0 %v361_v20  ;;  %v370_v29 = vsel %vm348_vm2, %v1453_v21, 0.0 }
  0xf7   :  { %v364_v22 = vsel %vm348_vm2, %v1448_v19, 0.0 }
  0xf8   :  { %365 = vadd.xlane.f32.xlu1 %v364_v22 }
  0xf9   :  { %v1132_v23 = vpop.f32.mrb[8].mxu0 }
  0xfa   :  { %v305_v25 = vadd.f32 %v1132_v23, %v1114_v54  ;;  %368 = vadd.xlane.f32.xlu0 %v367_v24  ;;  %v296_v26 = vpop.f32.mrb[9].mxu0 }
  0xfb   :  { %v297_v27 = vadd.f32 %v296_v26, %v172_v55  ;;  %v1133_v28 = vpop.f32.mrb[10].mxu0 }
  0xfc   :  { %v308_v30 = vadd.f32 %v1133_v28, %v1115_v56  ;;  %371 = vadd.xlane.f32.xlu1 %v370_v29  ;;  %v299_v31 = vpop.f32.mrb[11].mxu0  ;;  %v1470_v36 = vadd.f32 %v1419_v60, %v305_v25 }
  0xfd   :  { %v300_v32 = vadd.f32 %v299_v31, %v175_v57  ;;  %v1462_v33 = vadd.f32 %v1419_v60, %v297_v27 }
  0xfe   :  { %v1475_v39 = vadd.f32 %v1419_v60, %v308_v30  ;;  %v379_v44 = vsel %vm348_vm2, %v1470_v36, 0.0 }
  0xff   :  { %v373_v34 = vsel %vm348_vm2, %v1462_v33, 0.0  ;;  %v1467_v35 = vadd.f32 %v1419_v60, %v300_v32 }
 0x100   :  { %374 = vadd.xlane.f32.xlu0 %v373_v34  ;;  %v382_v48 = vsel %vm348_vm2, %v1475_v39, 0.0 }
 0x101   :  { %v1136_v37 = vpop.f32.mrb[12].mxu0  ;;  %v376_v38 = vsel %vm348_vm2, %v1467_v35, 0.0 }
 0x102   :  { %v321_v40 = vadd.f32 %v1136_v37, %v1118_v61  ;;  %v312_v41 = vpop.f32.mrb[13].mxu0  ;;  %377 = vadd.xlane.f32.xlu1 %v376_v38 }
 0x103   :  { %v313_v42 = vadd.f32 %v312_v41, %v188_v62  ;;  %v1137_v43 = vpop.f32.mrb[14].mxu0 }
 0x104   :  { %v324_v45 = vadd.f32 %v1137_v43, %v1119_v63  ;;  %v315_v46 = vpop.f32.mrb[15].mxu0  ;;  %380 = vadd.xlane.f32.xlu0 %v379_v44  ;;  %v1490_v52 = vadd.f32 %v1419_v60, %v321_v40 }
 0x105   :  { %v316_v47 = vadd.f32 %v315_v46, %v191_v1  ;;  %v1482_v49 = vadd.f32 %v1419_v60, %v313_v42 }
 0x106   :  { %383 = vadd.xlane.f32.xlu1 %v382_v48  ;;  %v1495_v55 = vadd.f32 %v1419_v60, %v324_v45  ;;  %v391_v56 = vsel %vm348_vm2, %v1490_v52, 0.0 }
 0x107   :  { %v385_v50 = vsel %vm348_vm2, %v1482_v49, 0.0  ;;  %v1487_v51 = vadd.f32 %v1419_v60, %v316_v47 }
 0x108   :  { %386 = vadd.xlane.f32.xlu0 %v385_v50  ;;  %v394_v57 = vsel %vm348_vm2, %v1495_v55, 0.0 }
 0x109   :  { %v388_v54 = vsel %vm348_vm2, %v1487_v51, 0.0 }
 0x10a   :  { %389 = vadd.xlane.f32.xlu1 %v388_v54 }
 0x10c   :  { %392 = vadd.xlane.f32.xlu0 %v391_v56 }
 0x10e   :  { %395 = vadd.xlane.f32.xlu1 %v394_v57 }
 0x17a   :  { %v357_v61 = vpop.xlane.xlu1 %356 }
 0x17b   :  { %v400_v62 = vmul.f32 0.03125, %v357_v61  ;;  %v351_v63 = vpop.xlane.xlu0 %350 }
 0x17c   :  { %v398_v0 = vmul.f32 0.03125, %v351_v63 }
 0x17d   :  { %v1502_v1 = vsub.f32 %v1422_v2, %v400_v62 }
 0x17e   :  { %v1505_v3 = vsub.f32 %v1425_v4, %v398_v0  ;;  %v360_v60 = vpop.xlane.xlu1 %359 }
 0x17f   :  { %v401_v5 = vmul.f32 0.03125, %v360_v60  ;;  %v354_v7 = vpop.xlane.xlu0 %353  ;;  %v432_v2 = vmul.f32 %v1502_v1, %v1502_v1 }
 0x180   :  { %v399_v8 = vmul.f32 0.03125, %v354_v7  ;;  %v430_v10 = vmul.f32 %v1505_v3, %v1505_v3 }
 0x181   :  { %v1510_v11 = vsub.f32 %v1428_v6, %v401_v5  ;;  %v452_v23 = vsel %vm348_vm2, %v432_v2, 0.0 }
 0x182   :  { %v1513_v12 = vsub.f32 %v1433_v9, %v399_v8  ;;  %v446_v13 = vsel %vm348_vm2, %v430_v10, 0.0 }
 0x183   :  { %v363_v4 = vpop.xlane.xlu0 %362  ;;  %447 = vadd.xlane.f32.xlu0 %v446_v13  ;;  %v433_v20 = vmul.f32 %v1510_v11, %v1510_v11 }
 0x184   :  { %v402_v14 = vmul.f32 0.03125, %v363_v4  ;;  %v431_v16 = vmul.f32 %v1513_v12, %v1513_v12 }
 0x185   :  { %v366_v17 = vpop.xlane.xlu1 %365  ;;  %v455_v29 = vsel %vm348_vm2, %v433_v20, 0.0 }
 0x186   :  { %v1523_v6 = vsub.f32 %v1442_v15, %v402_v14  ;;  %v403_v9 = vmul.f32 0.03125, %v366_v17  ;;  %v449_v22 = vsel %vm348_vm2, %v431_v16, 0.0 }
 0x187   :  { %v369_v24 = vpop.xlane.xlu0 %368  ;;  %450 = vadd.xlane.f32.xlu1 %v449_v22  ;;  %453 = vadd.xlane.f32.xlu0 %v452_v23 }
 0x188   :  { %v1528_v25 = vsub.f32 %v1448_v19, %v403_v9  ;;  %v404_v26 = vmul.f32 0.03125, %v369_v24  ;;  %v434_v27 = vmul.f32 %v1523_v6, %v1523_v6 }
 0x189   :  { %v372_v28 = vpop.xlane.xlu1 %371 }
 0x18a   :  { %v1534_v15 = vsub.f32 %v1445_v18, %v404_v26  ;;  %v405_v30 = vmul.f32 0.03125, %v372_v28  ;;  %v458_v31 = vsel %vm348_vm2, %v434_v27, 0.0  ;;  %v435_v32 = vmul.f32 %v1528_v25, %v1528_v25  ;;  %v1180_v26 = vld [vmem:[%s1966_s5 + $0x8] sm:$0xff]  }
 0x18b   :  { %456 = vadd.xlane.f32.xlu1 %v455_v29  ;;  %459 = vadd.xlane.f32.xlu0 %v458_v31 }
 0x18c   :  { %v1540_v19 = vsub.f32 %v1453_v21, %v405_v30  ;;  %v436_v34 = vmul.f32 %v1534_v15, %v1534_v15  ;;  %v461_v40 = vsel %vm348_vm2, %v435_v32, 0.0 }
 0x18d   :  { %v375_v37 = vpop.xlane.xlu0 %374 }
 0x18e   :  { %v406_v38 = vmul.f32 0.03125, %v375_v37  ;;  %v464_v18 = vsel %vm348_vm2, %v436_v34, 0.0  ;;  %v437_v41 = vmul.f32 %v1540_v19, %v1540_v19 }
 0x18f   :  { %462 = vadd.xlane.f32.xlu1 %v461_v40  ;;  %v378_v42 = vpop.xlane.xlu1 %377  ;;  %465 = vadd.xlane.f32.xlu0 %v464_v18 }
 0x190   :  { %v1549_v43 = vsub.f32 %v1462_v33, %v406_v38  ;;  %v407_v21 = vmul.f32 0.03125, %v378_v42  ;;  %v467_v47 = vsel %vm348_vm2, %v437_v41, 0.0 }
 0x191   :  { %v381_v44 = vpop.xlane.xlu0 %380 }
 0x192   :  { %v1552_v45 = vsub.f32 %v1467_v35, %v407_v21  ;;  %v408_v46 = vmul.f32 0.03125, %v381_v44  ;;  %v438_v48 = vmul.f32 %v1549_v43, %v1549_v43  ;;  %v560_v21 = vsub.s32 1, %v1408_v53 }
 0x193   :  { %468 = vadd.xlane.f32.xlu1 %v467_v47  ;;  %v384_v50 = vpop.xlane.xlu1 %383  ;;  %v580_v47 = vsub.s32 2, %v1408_v53 }
 0x194   :  { %v1558_v54 = vsub.f32 %v1470_v36, %v408_v46  ;;  %v409_v56 = vmul.f32 0.03125, %v384_v50  ;;  %v470_v33 = vsel %vm348_vm2, %v438_v48, 0.0  ;;  %v439_v57 = vmul.f32 %v1552_v45, %v1552_v45 }
 0x195   :  { %471 = vadd.xlane.f32.xlu0 %v470_v33  ;;  %v387_v35 = vpop.xlane.xlu0 %386 }
 0x196   :  { %v1564_v61 = vsub.f32 %v1475_v39, %v409_v56  ;;  %v410_v62 = vmul.f32 0.03125, %v387_v35  ;;  %v473_v63 = vsel %vm348_vm2, %v439_v57, 0.0  ;;  %v440_v0 = vmul.f32 %v1558_v54, %v1558_v54 }
 0x197   :  { %474 = vadd.xlane.f32.xlu1 %v473_v63  ;;  %v390_v36 = vpop.xlane.xlu1 %389  ;;  %v1608_v57 = vrot.slane %v1414_v59, %v560_v21 }
 0x198   :  { %v1570_v60 = vsub.f32 %v1482_v49, %v410_v62  ;;  %v411_v5 = vmul.f32 0.03125, %v390_v36  ;;  %v476_v7 = vsel %vm348_vm2, %v440_v0, 0.0  ;;  %v441_v8 = vmul.f32 %v1564_v61, %v1564_v61 }
 0x199   :  { %477 = vadd.xlane.f32.xlu0 %v476_v7  ;;  %v393_v39 = vpop.xlane.xlu0 %392  ;;  %v1613_v0 = vrot.slane %v1414_v59, %v580_v47 }
 0x19a   :  { %v1576_v10 = vsub.f32 %v1487_v51, %v411_v5  ;;  %v412_v13 = vmul.f32 0.03125, %v393_v39  ;;  %v479_v2 = vsel %vm348_vm2, %v441_v8, 0.0  ;;  %v442_v4 = vmul.f32 %v1570_v60, %v1570_v60 }
 0x19b   :  { %480 = vadd.xlane.f32.xlu1 %v479_v2  ;;  %v396_v49 = vpop.xlane.xlu1 %395 }
 0x19c   :  { %v1582_v14 = vsub.f32 %v1490_v52, %v412_v13  ;;  %v413_v16 = vmul.f32 0.03125, %v396_v49  ;;  %v482_v17 = vsel %vm348_vm2, %v442_v4, 0.0  ;;  %v443_v20 = vmul.f32 %v1576_v10, %v1576_v10 }
 0x19d   :  { %483 = vadd.xlane.f32.xlu0 %v482_v17 }
 0x19e   :  { %v1588_v51 = vsub.f32 %v1495_v55, %v413_v16  ;;  %v485_v9 = vsel %vm348_vm2, %v443_v20, 0.0  ;;  %v444_v22 = vmul.f32 %v1582_v14, %v1582_v14  ;;  %v1179_v55 = vld [vmem:[%s1966_s5] sm:$0xff]  }
 0x19f   :  { %486 = vadd.xlane.f32.xlu1 %v485_v9  ;;  %1138 = vmatprep.subr.bf16.mxu1 %v1179_v55 }
 0x1a0   :  { %v488_v23 = vsel %vm348_vm2, %v444_v22, 0.0  ;;  %v445_v52 = vmul.f32 %v1588_v51, %v1588_v51  ;;  %1139 = vmatpush3.bf16.msra.mxu1 %v1179_v55 }
 0x1a1   :  { %489 = vadd.xlane.f32.xlu0 %v488_v23  ;;  %1140 = vmatprep.subr.bf16.mxu1 %v1180_v26 }
 0x1a2   :  { %v491_v24 = vsel %vm348_vm2, %v445_v52, 0.0 }
 0x1a3   :  { %492 = vadd.xlane.f32.xlu1 %v491_v24 }
 0x1a4   :  { %1141 = vmatpush3.bf16.msra.mxu1 %v1180_v26 }
 0x210   :  { %v448_v27 = vpop.xlane.xlu0 %447 }
 0x211   :  { %v494_v28 = vmul.f32 0.03125, %v448_v27 }
 0x213   :  { %v510_v29 = vadd.f32 1e-05, %v494_v28 }
 0x214   :  { %v451_v30 = vpop.xlane.xlu1 %450  ;;  %v454_v31 = vpop.xlane.xlu0 %453 }
 0x215   :  { %1181 = vrsqrt.f32 %v510_v29  ;;  %v495_v32 = vmul.f32 0.03125, %v451_v30  ;;  %v496_v34 = vmul.f32 0.03125, %v454_v31 }
 0x217   :  { %v511_v37 = vadd.f32 1e-05, %v495_v32  ;;  %v512_v38 = vadd.f32 1e-05, %v496_v34 }
 0x218   :  { %v457_v40 = vpop.xlane.xlu1 %456  ;;  %v460_v18 = vpop.xlane.xlu0 %459 }
 0x219   :  { %1183 = vrsqrt.f32 %v511_v37  ;;  %v497_v41 = vmul.f32 0.03125, %v457_v40  ;;  %v498_v42 = vmul.f32 0.03125, %v460_v18 }
 0x21a   :  { %1185 = vrsqrt.f32 %v512_v38 }
 0x21b   :  { %v513_v44 = vadd.f32 1e-05, %v497_v41  ;;  %v514_v46 = vadd.f32 1e-05, %v498_v42 }
 0x21c   :  { %v463_v48 = vpop.xlane.xlu1 %462  ;;  %v466_v50 = vpop.xlane.xlu0 %465 }
 0x21d   :  { %1187 = vrsqrt.f32 %v513_v44  ;;  %v499_v56 = vmul.f32 0.03125, %v463_v48  ;;  %v500_v33 = vmul.f32 0.03125, %v466_v50 }
 0x21e   :  { %1189 = vrsqrt.f32 %v514_v46 }
 0x21f   :  { %v1182_v35 = vpop.eup %1181  ;;  %v515_v62 = vadd.f32 1e-05, %v499_v56  ;;  %v516_v63 = vadd.f32 1e-05, %v500_v33 }
 0x220   :  { %v542_v36 = vmul.f32 %v1182_v35, %v1505_v3  ;;  %v469_v5 = vpop.xlane.xlu1 %468 }
 0x221   :  { %1191 = vrsqrt.f32 %v515_v62  ;;  %v501_v7 = vmul.f32 0.03125, %v469_v5 }
 0x222   :  { %1193 = vrsqrt.f32 %v516_v63  ;;  %v472_v8 = vpop.xlane.xlu0 %471  ;;  %v562_v39 = vmul.f32 %v1608_v57, %v542_v36 }
 0x223   :  { %v1184_v13 = vpop.eup %1183  ;;  %v517_v2 = vadd.f32 1e-05, %v501_v7  ;;  %v502_v4 = vmul.f32 0.03125, %v472_v8 }
 0x224   :  { %v1186_v49 = vpop.eup %1185  ;;  %v543_v16 = vmul.f32 %v1184_v13, %v1513_v12  ;;  %v475_v17 = vpop.xlane.xlu1 %474  ;;  %v582_v20 = vadd.f32 %v1613_v0, %v562_v39 }
 0x225   :  { %v544_v59 = vmul.f32 %v1186_v49, %v1502_v1  ;;  %1195 = vrsqrt.f32 %v517_v2  ;;  %v518_v3 = vadd.f32 1e-05, %v502_v4  ;;  %v503_v9 = vmul.f32 0.03125, %v475_v17 }
 0x226   :  { %v478_v22 = vpop.xlane.xlu0 %477  ;;  %v563_v23 = vmul.f32 %v1608_v57, %v543_v16  ;;  %v598_v31 = vmax.f32 %v582_v20, 0.0 }
 0x227   :  { %v1188_v52 = vpop.eup %1187  ;;  %v564_v24 = vmul.f32 %v1608_v57, %v544_v59  ;;  %1197 = vrsqrt.f32 %v518_v3  ;;  %v519_v55 = vadd.f32 1e-05, %v503_v9  ;;  %v504_v26 = vmul.f32 0.03125, %v478_v22 }
 0x228   :  { %v1190_v27 = vpop.eup %1189  ;;  %v545_v12 = vmul.f32 %v1188_v52, %v1510_v11  ;;  %v481_v28 = vpop.xlane.xlu1 %480  ;;  %v583_v29 = vadd.f32 %v1613_v0, %v563_v23 }
 0x229   :  { %v546_v1 = vmul.f32 %v1190_v27, %v1523_v6  ;;  %1199 = vrsqrt.f32 %v519_v55  ;;  %v520_v30 = vadd.f32 1e-05, %v504_v26  ;;  %v584_v32 = vadd.f32 %v1613_v0, %v564_v24 }
 0x22a   :  { %v565_v34 = vmul.f32 %v1608_v57, %v545_v12  ;;  %v505_v37 = vmul.f32 0.03125, %v481_v28  ;;  %v484_v38 = vpop.xlane.xlu0 %483  ;;  %v599_v40 = vmax.f32 %v583_v29, 0.0 }
 0x22b   :  { %v1192_v18 = vpop.eup %1191  ;;  %1201 = vrsqrt.f32 %v520_v30  ;;  %v506_v41 = vmul.f32 0.03125, %v484_v38  ;;  %v566_v11 = vmul.f32 %v1608_v57, %v546_v1  ;;  %v600_v63 = vmax.f32 %v584_v32, 0.0 }
 0x22c   :  { %v1194_v42 = vpop.eup %1193  ;;  %v585_v44 = vadd.f32 %v1613_v0, %v565_v34  ;;  %v547_v6 = vmul.f32 %v1192_v18, %v1528_v25  ;;  %v521_v46 = vadd.f32 1e-05, %v505_v37  ;;  %v487_v48 = vpop.xlane.xlu1 %486  ;;  %v618_v50 = vpack.c.bf16 %v599_v40, %v598_v31 }
 0x22d   :  { %v548_v56 = vmul.f32 %v1194_v42, %v1534_v15  ;;  %v522_v33 = vadd.f32 1e-05, %v506_v41  ;;  %v507_v35 = vmul.f32 0.03125, %v487_v48  ;;  %v586_v62 = vadd.f32 %v1613_v0, %v566_v11 }
 0x22e   :  { %v601_v36 = vmax.f32 %v585_v44, 0.0  ;;  %1203 = vrsqrt.f32 %v521_v46  ;;  %1142 = vmatprep.mubr.msk.bf16.mxu1 %vm348_vm2, %v618_v50  ;;  %v490_v5 = vpop.xlane.xlu0 %489  ;;  %v567_v7 = vmul.f32 %v1608_v57, %v547_v6 }
 0x22f   :  { %v1196_v8 = vpop.eup %1195  ;;  %1205 = vrsqrt.f32 %v522_v33  ;;  %v523_v25 = vadd.f32 1e-05, %v507_v35  ;;  %v508_v39 = vmul.f32 0.03125, %v490_v5  ;;  %v568_v49 = vmul.f32 %v1608_v57, %v548_v56 }
 0x230   :  { %v549_v13 = vmul.f32 %v1196_v8, %v1540_v19  ;;  %v493_v2 = vpop.xlane.xlu1 %492  ;;  %v619_v15 = vpack.c.bf16 %v601_v36, %v600_v63  ;;  %v587_v4 = vadd.f32 %v1613_v0, %v567_v7  ;;  %v602_v59 = vmax.f32 %v586_v62, 0.0 }
 0x231   :  { %v1198_v16 = vpop.eup %1197  ;;  %1207 = vrsqrt.f32 %v523_v25  ;;  %v524_v17 = vadd.f32 1e-05, %v508_v39  ;;  %v509_v20 = vmul.f32 0.03125, %v493_v2  ;;  %v588_v19 = vadd.f32 %v1613_v0, %v568_v49 }
 0x232   :  { %v550_v3 = vmul.f32 %v1198_v16, %v1549_v43  ;;  %1143 = vmatmul.mubr.msk.bf16.vlgmr.msra.gmra.mrb[8].mxu1 %vm348_vm2, %v619_v15  ;;  %v603_v9 = vmax.f32 %v587_v4, 0.0  ;;  %v569_v22 = vmul.f32 %v1608_v57, %v549_v13  ;;  %v1674_v4 = vld [vmem:[%s1967_s6] sm:$0x7] }
 0x233   :  { %v1200_v23 = vpop.eup %1199  ;;  %1209 = vrsqrt.f32 %v524_v17  ;;  %v525_v52 = vadd.f32 1e-05, %v509_v20  ;;  %v604_v28 = vmax.f32 %v588_v19, 0.0 }
 0x234   :  { %v551_v24 = vmul.f32 %v1200_v23, %v1552_v45  ;;  %v620_v55 = vpack.c.bf16 %v603_v9, %v602_v59  ;;  %v589_v26 = vadd.f32 %v1613_v0, %v569_v22  ;;  %v570_v12 = vmul.f32 %v1608_v57, %v550_v3 }
 0x235   :  { %v1202_v27 = vpop.eup %1201  ;;  %1211 = vrsqrt.f32 %v525_v52 }
 0x236   :  { %v552_v43 = vmul.f32 %v1202_v27, %v1558_v54  ;;  %1146 = vmatprep.mubr.msk.bf16.mxu1 %vm348_vm2, %v620_v55  ;;  %v605_v29 = vmax.f32 %v589_v26, 0.0  ;;  %v571_v1 = vmul.f32 %v1608_v57, %v551_v24  ;;  %v590_v30 = vadd.f32 %v1613_v0, %v570_v12 }
 0x238   :  { %v1204_v31 = vpop.eup %1203  ;;  %v621_v32 = vpack.c.bf16 %v605_v29, %v604_v28  ;;  %v591_v45 = vadd.f32 %v1613_v0, %v571_v1  ;;  %v572_v34 = vmul.f32 %v1608_v57, %v552_v43  ;;  %v606_v54 = vmax.f32 %v590_v30, 0.0 }
 0x239   :  { %v1206_v37 = vpop.eup %1205  ;;  %v553_v38 = vmul.f32 %v1204_v31, %v1564_v61 }
 0x23a   :  { %v554_v40 = vmul.f32 %v1206_v37, %v1570_v60  ;;  %1147 = vmatmul.mubr.msk.bf16.gmra.mrb[12].mxu1 %vm348_vm2, %v621_v32  ;;  %v607_v18 = vmax.f32 %v591_v45, 0.0  ;;  %v592_v42 = vadd.f32 %v1613_v0, %v572_v34 }
 0x23b   :  { %v1208_v41 = vpop.eup %1207  ;;  %v573_v11 = vmul.f32 %v1608_v57, %v553_v38 }
 0x23c   :  { %v555_v44 = vmul.f32 %v1208_v41, %v1576_v10  ;;  %v622_v6 = vpack.c.bf16 %v607_v18, %v606_v54  ;;  %v574_v46 = vmul.f32 %v1608_v57, %v554_v40  ;;  %v608_v35 = vmax.f32 %v592_v42, 0.0 }
 0x23d   :  { %v1210_v48 = vpop.eup %1209  ;;  %v593_v50 = vadd.f32 %v1613_v0, %v573_v11 }
 0x23e   :  { %v556_v61 = vmul.f32 %v1210_v48, %v1582_v14  ;;  %1150 = vmatprep.mubr.msk.bf16.mxu1 %vm348_vm2, %v622_v6  ;;  %v575_v60 = vmul.f32 %v1608_v57, %v555_v44  ;;  %v594_v56 = vadd.f32 %v1613_v0, %v574_v46 }
 0x23f   :  { %v1212_v33 = vpop.eup %1211  ;;  %v609_v62 = vmax.f32 %v593_v50, 0.0 }
 0x240   :  { %v557_v63 = vmul.f32 %v1212_v33, %v1588_v51  ;;  %v595_v10 = vadd.f32 %v1613_v0, %v575_v60  ;;  %v576_v36 = vmul.f32 %v1608_v57, %v556_v61  ;;  %v610_v7 = vmax.f32 %v594_v56, 0.0 }
 0x241   :  { %v623_v5 = vpack.c.bf16 %v609_v62, %v608_v35 }
 0x242   :  { %v611_v8 = vmax.f32 %v595_v10, 0.0  ;;  %v577_v14 = vmul.f32 %v1608_v57, %v557_v63  ;;  %v596_v25 = vadd.f32 %v1613_v0, %v576_v36  ;;  %v630_v57 = vrot.slane %v1674_v4, %v330_v58 }
 0x243   :  { %1151 = vmatmul.mubr.msk.bf16.gmra.mrb[16].mxu1 %vm348_vm2, %v623_v5 }
 0x244   :  { %v624_v39 = vpack.c.bf16 %v611_v8, %v610_v7  ;;  %v597_v13 = vadd.f32 %v1613_v0, %v577_v14  ;;  %v612_v2 = vmax.f32 %v596_v25, 0.0 }
 0x246   :  { %1154 = vmatprep.mubr.msk.bf16.mxu1 %vm348_vm2, %v624_v39  ;;  %v613_v51 = vmax.f32 %v597_v13, 0.0 }
 0x248   :  { %v625_v15 = vpack.c.bf16 %v613_v51, %v612_v2 }
 0x24b   :  { %1155 = vmatmul.mubr.msk.bf16.gmra.mrb[20].mxu1 %vm348_vm2, %v625_v15 }
 0x305   :  { %v1144_v49 = vpop.f32.mrb[8].mxu1 }
 0x306   :  { %v1679_v16 = vadd.f32 %v1144_v49, %v630_v57  ;;  %v701_v0 = vpop.f32.mrb[9].mxu1 }
 0x307   :  { %v1145_v17 = vpop.f32.mrb[10].mxu1  ;;  %v1681_v20 = vadd.f32 %v701_v0, %v630_v57 }
 0x308   :  { %v1683_v59 = vadd.f32 %v1145_v17, %v630_v57  ;;  %v704_v3 = vpop.f32.mrb[11].mxu1  ;;  %v770_v9 = vsel %vm348_vm2, %v1679_v16, 0.0 }
 0x309   :  { %771 = vadd.xlane.f32.xlu0 %v770_v9  ;;  %v1687_v22 = vadd.f32 %v704_v3, %v630_v57  ;;  %v764_v58 = vsel %vm348_vm2, %v1681_v20, 0.0 }
 0x30a   :  { %v773_v19 = vsel %vm348_vm2, %v1683_v59, 0.0 }
 0x30b   :  { %774 = vadd.xlane.f32.xlu1 %v773_v19  ;;  %v767_v55 = vsel %vm348_vm2, %v1687_v22, 0.0 }
 0x30d   :  { %765 = vadd.xlane.f32.xlu0 %v764_v58  ;;  %v1148_v23 = vpop.f32.mrb[12].mxu1 }
 0x30e   :  { %v1693_v52 = vadd.f32 %v1148_v23, %v630_v57  ;;  %v717_v24 = vpop.f32.mrb[13].mxu1 }
 0x30f   :  { %768 = vadd.xlane.f32.xlu1 %v767_v55  ;;  %v1149_v26 = vpop.f32.mrb[14].mxu1  ;;  %v1697_v27 = vadd.f32 %v717_v24, %v630_v57 }
 0x310   :  { %v1699_v12 = vadd.f32 %v1149_v26, %v630_v57  ;;  %v720_v43 = vpop.f32.mrb[15].mxu1  ;;  %v782_v28 = vsel %vm348_vm2, %v1693_v52, 0.0 }
 0x311   :  { %783 = vadd.xlane.f32.xlu0 %v782_v28  ;;  %v1703_v29 = vadd.f32 %v720_v43, %v630_v57  ;;  %v776_v30 = vsel %vm348_vm2, %v1697_v27, 0.0 }
 0x312   :  { %v785_v1 = vsel %vm348_vm2, %v1699_v12, 0.0 }
 0x313   :  { %786 = vadd.xlane.f32.xlu1 %v785_v1  ;;  %v779_v32 = vsel %vm348_vm2, %v1703_v29, 0.0 }
 0x315   :  { %777 = vadd.xlane.f32.xlu0 %v776_v30 }
 0x316   :  { %v1152_v31 = vpop.f32.mrb[16].mxu1 }
 0x317   :  { %v1711_v45 = vadd.f32 %v1152_v31, %v630_v57  ;;  %v733_v34 = vpop.f32.mrb[17].mxu1  ;;  %780 = vadd.xlane.f32.xlu1 %v779_v32 }
 0x318   :  { %v1153_v37 = vpop.f32.mrb[18].mxu1  ;;  %v1713_v38 = vadd.f32 %v733_v34, %v630_v57 }
 0x319   :  { %v1715_v40 = vadd.f32 %v1153_v37, %v630_v57  ;;  %v736_v54 = vpop.f32.mrb[19].mxu1  ;;  %v794_v18 = vsel %vm348_vm2, %v1711_v45, 0.0 }
 0x31a   :  { %795 = vadd.xlane.f32.xlu0 %v794_v18  ;;  %v1719_v41 = vadd.f32 %v736_v54, %v630_v57  ;;  %v788_v42 = vsel %vm348_vm2, %v1713_v38, 0.0 }
 0x31b   :  { %v797_v11 = vsel %vm348_vm2, %v1715_v40, 0.0 }
 0x31c   :  { %798 = vadd.xlane.f32.xlu1 %v797_v11  ;;  %v791_v46 = vsel %vm348_vm2, %v1719_v41, 0.0 }
 0x31e   :  { %789 = vadd.xlane.f32.xlu0 %v788_v42  ;;  %v1156_v44 = vpop.f32.mrb[20].mxu1 }
 0x31f   :  { %v749_v6 = vpop.f32.mrb[21].mxu1  ;;  %v1729_v60 = vadd.f32 %v1156_v44, %v630_v57 }
 0x320   :  { %v1727_v48 = vadd.f32 %v749_v6, %v630_v57  ;;  %792 = vadd.xlane.f32.xlu1 %v791_v46  ;;  %v1157_v50 = vpop.f32.mrb[22].mxu1 }
 0x321   :  { %v752_v61 = vpop.f32.mrb[23].mxu1  ;;  %v1735_v35 = vadd.f32 %v1157_v50, %v630_v57  ;;  %v806_v63 = vsel %vm348_vm2, %v1729_v60, 0.0 }
 0x322   :  { %v1731_v56 = vadd.f32 %v752_v61, %v630_v57  ;;  %v800_v33 = vsel %vm348_vm2, %v1727_v48, 0.0 }
 0x323   :  { %801 = vadd.xlane.f32.xlu0 %v800_v33  ;;  %v809_v10 = vsel %vm348_vm2, %v1735_v35, 0.0 }
 0x324   :  { %v803_v62 = vsel %vm348_vm2, %v1731_v56, 0.0 }
 0x325   :  { %804 = vadd.xlane.f32.xlu1 %v803_v62 }
 0x327   :  { %807 = vadd.xlane.f32.xlu0 %v806_v63 }
 0x329   :  { %810 = vadd.xlane.f32.xlu1 %v809_v10 }
 0x396   :  { %v772_v36 = vpop.xlane.xlu0 %771 }
 0x397   :  { %v814_v5 = vmul.f32 0.03125, %v772_v36 }
 0x398   :  { %v775_v7 = vpop.xlane.xlu1 %774 }
 0x399   :  { %v1744_v8 = vsub.f32 %v1679_v16, %v814_v5  ;;  %v815_v14 = vmul.f32 0.03125, %v775_v7 }
 0x39a   :  { %v766_v25 = vpop.xlane.xlu0 %765 }
 0x39b   :  { %v1747_v39 = vsub.f32 %v1683_v59, %v815_v14  ;;  %v812_v13 = vmul.f32 0.03125, %v766_v25  ;;  %v846_v2 = vmul.f32 %v1744_v8, %v1744_v8 }
 0x39c   :  { %v769_v51 = vpop.xlane.xlu1 %768 }
 0x39d   :  { %v1752_v15 = vsub.f32 %v1681_v20, %v812_v13  ;;  %v813_v57 = vmul.f32 0.03125, %v769_v51  ;;  %v866_v49 = vsel %vm348_vm2, %v846_v2, 0.0  ;;  %v847_v16 = vmul.f32 %v1747_v39, %v1747_v39 }
 0x39e   :  { %867 = vadd.xlane.f32.xlu0 %v866_v49  ;;  %v784_v0 = vpop.xlane.xlu0 %783 }
 0x39f   :  { %v1758_v17 = vsub.f32 %v1687_v22, %v813_v57  ;;  %v818_v59 = vmul.f32 0.03125, %v784_v0  ;;  %v869_v3 = vsel %vm348_vm2, %v847_v16, 0.0  ;;  %v844_v9 = vmul.f32 %v1752_v15, %v1752_v15 }
 0x3a0   :  { %v787_v19 = vpop.xlane.xlu1 %786  ;;  %870 = vadd.xlane.f32.xlu1 %v869_v3 }
 0x3a1   :  { %v1764_v20 = vsub.f32 %v1693_v52, %v818_v59  ;;  %v819_v58 = vmul.f32 0.03125, %v787_v19  ;;  %v860_v23 = vsel %vm348_vm2, %v844_v9, 0.0  ;;  %v845_v24 = vmul.f32 %v1758_v17, %v1758_v17 }
 0x3a2   :  { %861 = vadd.xlane.f32.xlu0 %v860_v23  ;;  %v778_v22 = vpop.xlane.xlu0 %777 }
 0x3a3   :  { %v1770_v55 = vsub.f32 %v1699_v12, %v819_v58  ;;  %v816_v26 = vmul.f32 0.03125, %v778_v22  ;;  %v863_v43 = vsel %vm348_vm2, %v845_v24, 0.0  ;;  %v850_v28 = vmul.f32 %v1764_v20, %v1764_v20 }
 0x3a4   :  { %v781_v1 = vpop.xlane.xlu1 %780  ;;  %864 = vadd.xlane.f32.xlu1 %v863_v43 }
 0x3a5   :  { %v1776_v52 = vsub.f32 %v1697_v27, %v816_v26  ;;  %v817_v30 = vmul.f32 0.03125, %v781_v1  ;;  %v878_v31 = vsel %vm348_vm2, %v850_v28, 0.0  ;;  %v851_v32 = vmul.f32 %v1770_v55, %v1770_v55 }
 0x3a6   :  { %879 = vadd.xlane.f32.xlu0 %v878_v31 }
 0x3a7   :  { %v1782_v12 = vsub.f32 %v1703_v29, %v817_v30  ;;  %v796_v34 = vpop.xlane.xlu0 %795  ;;  %v881_v37 = vsel %vm348_vm2, %v851_v32, 0.0  ;;  %v848_v54 = vmul.f32 %v1776_v52, %v1776_v52 }
 0x3a8   :  { %v822_v18 = vmul.f32 0.03125, %v796_v34  ;;  %882 = vadd.xlane.f32.xlu1 %v881_v37 }
 0x3a9   :  { %v799_v27 = vpop.xlane.xlu1 %798  ;;  %v872_v11 = vsel %vm348_vm2, %v848_v54, 0.0  ;;  %v849_v42 = vmul.f32 %v1782_v12, %v1782_v12 }
 0x3aa   :  { %v1791_v44 = vsub.f32 %v1711_v45, %v822_v18  ;;  %v823_v6 = vmul.f32 0.03125, %v799_v27  ;;  %873 = vadd.xlane.f32.xlu0 %v872_v11 }
 0x3ab   :  { %v790_v29 = vpop.xlane.xlu0 %789  ;;  %v875_v46 = vsel %vm348_vm2, %v849_v42, 0.0 }
 0x3ac   :  { %v1795_v50 = vsub.f32 %v1715_v40, %v823_v6  ;;  %v820_v61 = vmul.f32 0.03125, %v790_v29  ;;  %876 = vadd.xlane.f32.xlu1 %v875_v46  ;;  %v854_v33 = vmul.f32 %v1791_v44, %v1791_v44 }
 0x3ad   :  { %v793_v62 = vpop.xlane.xlu1 %792 }
 0x3ae   :  { %v1800_v63 = vsub.f32 %v1713_v38, %v820_v61  ;;  %v821_v10 = vmul.f32 0.03125, %v793_v62  ;;  %v890_v45 = vsel %vm348_vm2, %v854_v33, 0.0  ;;  %v855_v36 = vmul.f32 %v1795_v50, %v1795_v50 }
 0x3af   :  { %891 = vadd.xlane.f32.xlu0 %v890_v45 }
 0x3b0   :  { %v1806_v5 = vsub.f32 %v1719_v41, %v821_v10  ;;  %v802_v40 = vpop.xlane.xlu0 %801  ;;  %v893_v7 = vsel %vm348_vm2, %v855_v36, 0.0  ;;  %v852_v14 = vmul.f32 %v1800_v63, %v1800_v63  ;;  %v1842_v10 = vrot.slane %v1674_v4, %v560_v21 }
 0x3b1   :  { %v824_v25 = vmul.f32 0.03125, %v802_v40  ;;  %894 = vadd.xlane.f32.xlu1 %v893_v7 }
 0x3b2   :  { %v805_v38 = vpop.xlane.xlu1 %804  ;;  %v884_v13 = vsel %vm348_vm2, %v852_v14, 0.0  ;;  %v853_v2 = vmul.f32 %v1806_v5, %v1806_v5  ;;  %v1847_v14 = vrot.slane %v1674_v4, %v580_v47 }
 0x3b3   :  { %v1815_v51 = vsub.f32 %v1727_v48, %v824_v25  ;;  %v825_v57 = vmul.f32 0.03125, %v805_v38  ;;  %885 = vadd.xlane.f32.xlu0 %v884_v13 }
 0x3b4   :  { %v808_v41 = vpop.xlane.xlu0 %807  ;;  %v887_v49 = vsel %vm348_vm2, %v853_v2, 0.0 }
 0x3b5   :  { %v1819_v16 = vsub.f32 %v1731_v56, %v825_v57  ;;  %v826_v0 = vmul.f32 0.03125, %v808_v41  ;;  %888 = vadd.xlane.f32.xlu1 %v887_v49  ;;  %v856_v59 = vmul.f32 %v1815_v51, %v1815_v51 }
 0x3b6   :  { %v811_v3 = vpop.xlane.xlu1 %810 }
 0x3b7   :  { %v1824_v9 = vsub.f32 %v1729_v60, %v826_v0  ;;  %v827_v19 = vmul.f32 0.03125, %v811_v3  ;;  %v896_v48 = vsel %vm348_vm2, %v856_v59, 0.0  ;;  %v857_v58 = vmul.f32 %v1819_v16, %v1819_v16 }
 0x3b8   :  { %897 = vadd.xlane.f32.xlu0 %v896_v48 }
 0x3b9   :  { %v1830_v23 = vsub.f32 %v1735_v35, %v827_v19  ;;  %v899_v56 = vsel %vm348_vm2, %v857_v58, 0.0  ;;  %v858_v24 = vmul.f32 %v1824_v9, %v1824_v9 }
 0x3ba   :  { %900 = vadd.xlane.f32.xlu1 %v899_v56 }
 0x3bb   :  { %v902_v22 = vsel %vm348_vm2, %v858_v24, 0.0  ;;  %v859_v60 = vmul.f32 %v1830_v23, %v1830_v23 }
 0x3bc   :  { %903 = vadd.xlane.f32.xlu0 %v902_v22 }
 0x3bd   :  { %v905_v26 = vsel %vm348_vm2, %v859_v60, 0.0 }
 0x3be   :  { %906 = vadd.xlane.f32.xlu1 %v905_v26 }
 0x42b   :  { %v868_v43 = vpop.xlane.xlu0 %867 }
 0x42c   :  { %v910_v28 = vmul.f32 0.03125, %v868_v43 }
 0x42d   :  { %v871_v1 = vpop.xlane.xlu1 %870 }
 0x42e   :  { %v926_v35 = vadd.f32 1e-05, %v910_v28  ;;  %v911_v30 = vmul.f32 0.03125, %v871_v1 }
 0x42f   :  { %v862_v31 = vpop.xlane.xlu0 %861 }
 0x430   :  { %1213 = vrsqrt.f32 %v926_v35  ;;  %v927_v32 = vadd.f32 1e-05, %v911_v30  ;;  %v908_v34 = vmul.f32 0.03125, %v862_v31 }
 0x431   :  { %v865_v37 = vpop.xlane.xlu1 %864 }
 0x432   :  { %1215 = vrsqrt.f32 %v927_v32  ;;  %v924_v54 = vadd.f32 1e-05, %v908_v34  ;;  %v909_v18 = vmul.f32 0.03125, %v865_v37 }
 0x433   :  { %v880_v27 = vpop.xlane.xlu0 %879 }
 0x434   :  { %1217 = vrsqrt.f32 %v924_v54  ;;  %v925_v11 = vadd.f32 1e-05, %v909_v18  ;;  %v914_v42 = vmul.f32 0.03125, %v880_v27 }
 0x435   :  { %v883_v6 = vpop.xlane.xlu1 %882 }
 0x436   :  { %1219 = vrsqrt.f32 %v925_v11  ;;  %v930_v29 = vadd.f32 1e-05, %v914_v42  ;;  %v915_v46 = vmul.f32 0.03125, %v883_v6 }
 0x437   :  { %v874_v61 = vpop.xlane.xlu0 %873 }
 0x438   :  { %1221 = vrsqrt.f32 %v930_v29  ;;  %v931_v33 = vadd.f32 1e-05, %v915_v46  ;;  %v912_v62 = vmul.f32 0.03125, %v874_v61 }
 0x439   :  { %v877_v45 = vpop.xlane.xlu1 %876 }
 0x43a   :  { %v1214_v36 = vpop.eup %1213  ;;  %1223 = vrsqrt.f32 %v931_v33  ;;  %v928_v40 = vadd.f32 1e-05, %v912_v62  ;;  %v913_v7 = vmul.f32 0.03125, %v877_v45 }
 0x43b   :  { %v958_v25 = vmul.f32 %v1214_v36, %v1744_v8 }
 0x43c   :  { %v1216_v38 = vpop.eup %1215  ;;  %1225 = vrsqrt.f32 %v928_v40  ;;  %v929_v13 = vadd.f32 1e-05, %v913_v7  ;;  %v892_v2 = vpop.xlane.xlu0 %891 }
 0x43d   :  { %v978_v57 = vmul.f32 %v1842_v10, %v958_v25  ;;  %v959_v21 = vmul.f32 %v1216_v38, %v1747_v39  ;;  %v918_v41 = vmul.f32 0.03125, %v892_v2 }
 0x43e   :  { %v1218_v49 = vpop.eup %1217  ;;  %1227 = vrsqrt.f32 %v929_v13  ;;  %v895_v0 = vpop.xlane.xlu1 %894 }
 0x43f   :  { %v998_v59 = vadd.f32 %v1847_v14, %v978_v57  ;;  %v979_v53 = vmul.f32 %v1842_v10, %v959_v21  ;;  %v956_v47 = vmul.f32 %v1218_v49, %v1752_v15  ;;  %v934_v4 = vadd.f32 1e-05, %v918_v41 }
 0x440   :  { %v1220_v8 = vpop.eup %1219  ;;  %v919_v3 = vmul.f32 0.03125, %v895_v0  ;;  %v886_v19 = vpop.xlane.xlu0 %885 }
 0x441   :  { %v1014_v48 = vmax.f32 %v998_v59, 0.0  ;;  %v999_v58 = vadd.f32 %v1847_v14, %v979_v53  ;;  %v976_v56 = vmul.f32 %v1842_v10, %v956_v47  ;;  %v957_v39 = vmul.f32 %v1220_v8, %v1758_v17 }
 0x442   :  { %v1222_v24 = vpop.eup %1221  ;;  %1229 = vrsqrt.f32 %v934_v4  ;;  %v935_v22 = vadd.f32 1e-05, %v919_v3  ;;  %v916_v60 = vmul.f32 0.03125, %v886_v19  ;;  %v889_v26 = vpop.xlane.xlu1 %888 }
 0x443   :  { %1030 = vst.msk [vmem:[%s1968_s7 + $0x10] sm:$0xff] %vm348_vm2, %v1014_v48  ;;  %v1015_v15 = vmax.f32 %v999_v58, 0.0  ;;  %v996_v43 = vadd.f32 %v1847_v14, %v976_v56  ;;  %v977_v28 = vmul.f32 %v1842_v10, %v957_v39  ;;  %v962_v1 = vmul.f32 %v1222_v24, %v1764_v20 }
 0x444   :  { %v1224_v35 = vpop.eup %1223  ;;  %1231 = vrsqrt.f32 %v935_v22  ;;  %v932_v17 = vadd.f32 1e-05, %v916_v60  ;;  %v917_v30 = vmul.f32 0.03125, %v889_v26 }
 0x445   :  { %1031 = vst.msk [vmem:[%s1968_s7 + $0x18] sm:$0xff] %vm348_vm2, %v1015_v15  ;;  %v1012_v31 = vmax.f32 %v996_v43, 0.0  ;;  %v997_v32 = vadd.f32 %v1847_v14, %v977_v28  ;;  %v982_v34 = vmul.f32 %v1842_v10, %v962_v1  ;;  %v963_v37 = vmul.f32 %v1224_v35, %v1770_v55  ;;  %v898_v54 = vpop.xlane.xlu0 %897 }
 0x446   :  { %v1226_v18 = vpop.eup %1225  ;;  %1233 = vrsqrt.f32 %v932_v17  ;;  %v933_v20 = vadd.f32 1e-05, %v917_v30  ;;  %v920_v27 = vmul.f32 0.03125, %v898_v54 }
 0x447   :  { %1028 = vst.msk [vmem:[%s1968_s7] sm:$0xff] %vm348_vm2, %v1012_v31  ;;  %v1013_v11 = vmax.f32 %v997_v32, 0.0  ;;  %v1002_v42 = vadd.f32 %v1847_v14, %v982_v34  ;;  %v983_v6 = vmul.f32 %v1842_v10, %v963_v37  ;;  %v960_v29 = vmul.f32 %v1226_v18, %v1776_v52  ;;  %v901_v46 = vpop.xlane.xlu1 %900 }
 0x448   :  { %v1228_v61 = vpop.eup %1227  ;;  %1235 = vrsqrt.f32 %v933_v20  ;;  %v936_v55 = vadd.f32 1e-05, %v920_v27  ;;  %v921_v33 = vmul.f32 0.03125, %v901_v46 }
 0x449   :  { %1029 = vst.msk [vmem:[%s1968_s7 + $0x8] sm:$0xff] %vm348_vm2, %v1013_v11  ;;  %v1018_v62 = vmax.f32 %v1002_v42, 0.0  ;;  %v1003_v45 = vadd.f32 %v1847_v14, %v983_v6  ;;  %v980_v36 = vmul.f32 %v1842_v10, %v960_v29  ;;  %v961_v40 = vmul.f32 %v1228_v61, %v1782_v12  ;;  %v904_v7 = vpop.xlane.xlu0 %903 }
 0x44a   :  { %1237 = vrsqrt.f32 %v936_v55  ;;  %v937_v52 = vadd.f32 1e-05, %v921_v33  ;;  %v922_v25 = vmul.f32 0.03125, %v904_v7 }
 0x44b   :  { %1034 = vst.msk [vmem:[%s1968_s7 + $0x30] sm:$0xff] %vm348_vm2, %v1018_v62  ;;  %v1019_v38 = vmax.f32 %v1003_v45, 0.0  ;;  %v1000_v13 = vadd.f32 %v1847_v14, %v980_v36  ;;  %v981_v2 = vmul.f32 %v1842_v10, %v961_v40  ;;  %v907_v57 = vpop.xlane.xlu1 %906 }
 0x44c   :  { %v1230_v21 = vpop.eup %1229  ;;  %1239 = vrsqrt.f32 %v937_v52  ;;  %v938_v41 = vadd.f32 1e-05, %v922_v25  ;;  %v923_v49 = vmul.f32 0.03125, %v907_v57 }
 0x44d   :  { %1035 = vst.msk [vmem:[%s1968_s7 + $0x38] sm:$0xff] %vm348_vm2, %v1019_v38  ;;  %v1016_v12 = vmax.f32 %v1000_v13, 0.0  ;;  %v1001_v0 = vadd.f32 %v1847_v14, %v981_v2  ;;  %v966_v59 = vmul.f32 %v1230_v21, %v1791_v44 }
 0x44e   :  { %v1232_v53 = vpop.eup %1231  ;;  %1241 = vrsqrt.f32 %v938_v41  ;;  %v939_v47 = vadd.f32 1e-05, %v923_v49 }
 0x44f   :  { %1032 = vst.msk [vmem:[%s1968_s7 + $0x20] sm:$0xff] %vm348_vm2, %v1016_v12  ;;  %v1017_v4 = vmax.f32 %v1001_v0, 0.0  ;;  %v986_v8 = vmul.f32 %v1842_v10, %v966_v59  ;;  %v967_v3 = vmul.f32 %v1232_v53, %v1795_v50 }
 0x450   :  { %v1234_v19 = vpop.eup %1233  ;;  %1243 = vrsqrt.f32 %v939_v47 }
 0x451   :  { %1033 = vst.msk [vmem:[%s1968_s7 + $0x28] sm:$0xff] %vm348_vm2, %v1017_v4  ;;  %v1006_v44 = vadd.f32 %v1847_v14, %v986_v8  ;;  %v987_v48 = vmul.f32 %v1842_v10, %v967_v3  ;;  %v964_v58 = vmul.f32 %v1234_v19, %v1800_v63 }
 0x452   :  { %v1236_v56 = vpop.eup %1235 }
 0x453   :  { %v1022_v39 = vmax.f32 %v1006_v44, 0.0  ;;  %v1007_v24 = vadd.f32 %v1847_v14, %v987_v48  ;;  %v984_v22 = vmul.f32 %v1842_v10, %v964_v58  ;;  %v965_v50 = vmul.f32 %v1236_v56, %v1806_v5 }
 0x454   :  { %v1238_v60 = vpop.eup %1237 }
 0x455   :  { %1038 = vst.msk [vmem:[%s1968_s7 + $0x50] sm:$0xff] %vm348_vm2, %v1022_v39  ;;  %v1023_v26 = vmax.f32 %v1007_v24, 0.0  ;;  %v1004_v15 = vadd.f32 %v1847_v14, %v984_v22  ;;  %v985_v43 = vmul.f32 %v1842_v10, %v965_v50  ;;  %v968_v63 = vmul.f32 %v1238_v60, %v1815_v51 }
 0x456   :  { %v1240_v28 = vpop.eup %1239 }
 0x457   :  { %1039 = vst.msk [vmem:[%s1968_s7 + $0x58] sm:$0xff] %vm348_vm2, %v1023_v26  ;;  %v1020_v5 = vmax.f32 %v1004_v15, 0.0  ;;  %v1005_v1 = vadd.f32 %v1847_v14, %v985_v43  ;;  %v988_v35 = vmul.f32 %v1842_v10, %v968_v63  ;;  %v969_v17 = vmul.f32 %v1240_v28, %v1819_v16 }
 0x458   :  { %v1242_v30 = vpop.eup %1241 }
 0x459   :  { %1036 = vst.msk [vmem:[%s1968_s7 + $0x40] sm:$0xff] %vm348_vm2, %v1020_v5  ;;  %v1021_v51 = vmax.f32 %v1005_v1, 0.0  ;;  %v1008_v31 = vadd.f32 %v1847_v14, %v988_v35  ;;  %v989_v32 = vmul.f32 %v1842_v10, %v969_v17  ;;  %v970_v34 = vmul.f32 %v1242_v30, %v1824_v9 }
 0x45a   :  { %v1244_v37 = vpop.eup %1243 }
 0x45b   :  { %1037 = vst.msk [vmem:[%s1968_s7 + $0x48] sm:$0xff] %vm348_vm2, %v1021_v51  ;;  %v1024_v16 = vmax.f32 %v1008_v31, 0.0  ;;  %v1009_v54 = vadd.f32 %v1847_v14, %v989_v32  ;;  %v990_v18 = vmul.f32 %v1842_v10, %v970_v34  ;;  %v971_v20 = vmul.f32 %v1244_v37, %v1830_v23 }
 0x45d   :  { %1040 = vst.msk [vmem:[%s1968_s7 + $0x60] sm:$0xff] %vm348_vm2, %v1024_v16  ;;  %v1025_v27 = vmax.f32 %v1009_v54, 0.0  ;;  %v1010_v9 = vadd.f32 %v1847_v14, %v990_v18  ;;  %v991_v11 = vmul.f32 %v1842_v10, %v971_v20 }
 0x45f   :  { %1041 = vst.msk [vmem:[%s1968_s7 + $0x68] sm:$0xff] %vm348_vm2, %v1025_v27  ;;  %v1026_v42 = vmax.f32 %v1010_v9, 0.0  ;;  %v1011_v6 = vadd.f32 %v1847_v14, %v991_v11 }
 0x461   :  { %1042 = vst.msk [vmem:[%s1968_s7 + $0x70] sm:$0xff] %vm348_vm2, %v1026_v42  ;;  %v1027_v23 = vmax.f32 %v1011_v6, 0.0 }
 0x463   :  { %1043 = vst.msk [vmem:[%s1968_s7 + $0x78] sm:$0xff] %vm348_vm2, %v1027_v23 }

// kernel: _lambda_.7
= control target key start
LH: loop header
LB: loop body
LE: loop exit
PB: predicated region body
PF: predicated region fallthrough
CT: control target
= control target key end

     0   :  { %vm52_vm0 = vcmask 1043456   ;;  %vm39_vm1 = vcmask 64512   ;;  %v35_v14 = vlaneseq  ;;  %vm121_vm2 = vcmask 261120   ;;  %s835_s1 = inlined_call_operand.vmem [shape: bf16[8,32], index: 1, kind: input, shape index: {}]   ;;  %s836_s0 = inlined_call_operand.vmem [shape: f32[64,8], index: 0, kind: input, shape index: {}]   ;;  %s837_s2 = inlined_call_operand.vmem [shape: f32[3,32], index: 2, kind: input, shape index: {}]   ;;  %s838_s3 = inlined_call_operand.vmem [shape: bf16[32,32], index: 3, kind: input, shape index: {}]   ;;  %s839_s4 = inlined_call_operand.vmem [shape: f32[3,32], index: 4, kind: input, shape index: {}]   ;;  %s840_s5 = inlined_call_operand.vmem [shape: f32[64,32], index: 5, kind: output, shape index: {}]  }
   0x1   :  { %v29_v0 = vld [vmem:[%s835_s1] sm:$0xf]  ;;  %v22_v2 = vld [vmem:[%s836_s0 + $0x8] sm:$0xff]  ;;  %v23_v5 = vld [vmem:[%s836_s0 + $0x10] sm:$0xff] }
   0x2   :  { %v21_v1 = vld [vmem:[%s836_s0] sm:$0xff]  ;;  %552 = vmatprep.subr.msk.bf16.mxu0 %vm52_vm0, %v29_v0  ;;  %v54_v3 = vsel %vm52_vm0, %v29_v0, 0  ;;  %v24_v6 = vld [vmem:[%s836_s0 + $0x18] sm:$0xff]  ;;  %v26_v9 = vld [vmem:[%s836_s0 + $0x28] sm:$0xff]  ;;  %v648_v15 = vshrl.u32 %v35_v14, 7 }
   0x3   :  { %v30_v4 = vpack.c.bf16 %v22_v2, %v21_v1  ;;  %v25_v7 = vld [vmem:[%s836_s0 + $0x20] sm:$0xff]  ;;  %531 = vmatpush3.bf16.msra.mxu0 %v54_v3  ;;  %v31_v8 = vpack.c.bf16 %v24_v6, %v23_v5  ;;  %v27_v11 = vld [vmem:[%s836_s0 + $0x30] sm:$0xff]  ;;  %v28_v12 = vld [vmem:[%s836_s0 + $0x38] sm:$0xff] }
   0x4   :  { %v32_v10 = vpack.c.bf16 %v26_v9, %v25_v7  ;;  %v33_v13 = vpack.c.bf16 %v28_v12, %v27_v11  ;;  %v37_v16 = vsub.s32 0, %v648_v15  ;;  %v654_v17 = vld [vmem:[%s837_s2] sm:$0x7] }
   0x5   :  { %532 = vmatprep.mubr.msk.bf16.mxu0 %vm39_vm1, %v30_v4 }
   0x6   :  { %533 = vmatmul.mubr.msk.bf16.vlgmr.msra.gmra.mrb[0].mxu0 %vm39_vm1, %v31_v8  ;;  %v38_v18 = vrot.slane %v654_v17, %v37_v16 }
   0x7   :  { %536 = vmatprep.mubr.msk.bf16.mxu0 %vm39_vm1, %v32_v10 }
   0xe   :  { %537 = vmatmul.mubr.msk.bf16.gmra.mrb[4].mxu0 %vm39_vm1, %v33_v13 }
  0xd9   :  { %v534_v19 = vpop.f32.mrb[0].mxu0 }
  0xda   :  { %v99_v20 = vadd.f32 %v534_v19, %v38_v18  ;;  %v90_v21 = vpop.f32.mrb[1].mxu0 }
  0xdb   :  { %v91_v22 = vadd.f32 %v90_v21, %v38_v18  ;;  %v535_v23 = vpop.f32.mrb[2].mxu0 }
  0xdc   :  { %v102_v24 = vadd.f32 %v535_v23, %v38_v18  ;;  %v93_v25 = vpop.f32.mrb[3].mxu0  ;;  %v128_v26 = vsel %vm121_vm2, %v99_v20, 0.0  ;;  %v554_v23 = vld [vmem:[%s838_s3 + $0x8] sm:$0xff]  }
  0xdd   :  { %v94_v27 = vadd.f32 %v93_v25, %v38_v18  ;;  %129 = vadd.xlane.f32.xlu1 %v128_v26  ;;  %v122_v28 = vsel %vm121_vm2, %v91_v22, 0.0 }
  0xde   :  { %123 = vadd.xlane.f32.xlu0 %v122_v28  ;;  %v131_v29 = vsel %vm121_vm2, %v102_v24, 0.0 }
  0xdf   :  { %v125_v31 = vsel %vm121_vm2, %v94_v27, 0.0 }
  0xe1   :  { %132 = vadd.xlane.f32.xlu1 %v131_v29  ;;  %v538_v30 = vpop.f32.mrb[4].mxu0 }
  0xe2   :  { %v106_v32 = vpop.f32.mrb[5].mxu0  ;;  %126 = vadd.xlane.f32.xlu0 %v125_v31  ;;  %v115_v36 = vadd.f32 %v538_v30, %v38_v18 }
  0xe3   :  { %v107_v33 = vadd.f32 %v106_v32, %v38_v18  ;;  %v539_v34 = vpop.f32.mrb[6].mxu0 }
  0xe4   :  { %v109_v35 = vpop.f32.mrb[7].mxu0  ;;  %v118_v39 = vadd.f32 %v539_v34, %v38_v18  ;;  %v140_v41 = vsel %vm121_vm2, %v115_v36, 0.0 }
  0xe5   :  { %v110_v37 = vadd.f32 %v109_v35, %v38_v18  ;;  %v134_v38 = vsel %vm121_vm2, %v107_v33, 0.0 }
  0xe6   :  { %135 = vadd.xlane.f32.xlu0 %v134_v38  ;;  %v143_v42 = vsel %vm121_vm2, %v118_v39, 0.0 }
  0xe7   :  { %v137_v40 = vsel %vm121_vm2, %v110_v37, 0.0 }
  0xe8   :  { %138 = vadd.xlane.f32.xlu1 %v137_v40 }
  0xea   :  { %141 = vadd.xlane.f32.xlu0 %v140_v41 }
  0xec   :  { %144 = vadd.xlane.f32.xlu1 %v143_v42 }
 0x16a   :  { %v130_v43 = vpop.xlane.xlu1 %129 }
 0x16b   :  { %v149_v44 = vmul.f32 0.03125, %v130_v43  ;;  %v124_v45 = vpop.xlane.xlu0 %123 }
 0x16c   :  { %v147_v46 = vmul.f32 0.03125, %v124_v45  ;;  %v241_v45 = vsub.s32 2, %v648_v15 }
 0x16d   :  { %v667_v47 = vsub.f32 %v99_v20, %v149_v44 }
 0x16e   :  { %v669_v48 = vsub.f32 %v91_v22, %v147_v46  ;;  %v133_v49 = vpop.xlane.xlu1 %132  ;;  %v553_v22 = vld [vmem:[%s838_s3] sm:$0xff]  }
 0x16f   :  { %v150_v50 = vmul.f32 0.03125, %v133_v49  ;;  %v127_v51 = vpop.xlane.xlu0 %126  ;;  %v165_v57 = vmul.f32 %v667_v47, %v667_v47  ;;  %540 = vmatprep.subr.bf16.mxu1 %v553_v22 }
 0x170   :  { %v148_v52 = vmul.f32 0.03125, %v127_v51  ;;  %v163_v53 = vmul.f32 %v669_v48, %v669_v48  ;;  %541 = vmatpush3.bf16.msra.mxu1 %v553_v22 }
 0x171   :  { %v673_v54 = vsub.f32 %v102_v24, %v150_v50  ;;  %v177_v1 = vsel %vm121_vm2, %v165_v57, 0.0  ;;  %542 = vmatprep.subr.bf16.mxu1 %v554_v23  ;;  %v242_v57 = vrot.slane %v654_v17, %v241_v45 }
 0x172   :  { %v675_v55 = vsub.f32 %v94_v27, %v148_v52  ;;  %v171_v56 = vsel %vm121_vm2, %v163_v53, 0.0 }
 0x173   :  { %172 = vadd.xlane.f32.xlu0 %v171_v56  ;;  %v136_v58 = vpop.xlane.xlu0 %135  ;;  %v166_v62 = vmul.f32 %v673_v54, %v673_v54 }
 0x174   :  { %v151_v59 = vmul.f32 0.03125, %v136_v58  ;;  %v164_v60 = vmul.f32 %v675_v55, %v675_v55  ;;  %543 = vmatpush3.bf16.msra.mxu1 %v554_v23 }
 0x175   :  { %v139_v61 = vpop.xlane.xlu1 %138  ;;  %v180_v8 = vsel %vm121_vm2, %v166_v62, 0.0 }
 0x176   :  { %v684_v63 = vsub.f32 %v107_v33, %v151_v59  ;;  %v152_v0 = vmul.f32 0.03125, %v139_v61  ;;  %v174_v2 = vsel %vm121_vm2, %v164_v60, 0.0 }
 0x177   :  { %178 = vadd.xlane.f32.xlu0 %v177_v1  ;;  %175 = vadd.xlane.f32.xlu1 %v174_v2  ;;  %v142_v3 = vpop.xlane.xlu0 %141 }
 0x178   :  { %v688_v4 = vsub.f32 %v110_v37, %v152_v0  ;;  %v153_v5 = vmul.f32 0.03125, %v142_v3  ;;  %v167_v6 = vmul.f32 %v684_v63, %v684_v63  ;;  %v229_v37 = vsub.s32 1, %v648_v15 }
 0x179   :  { %v145_v7 = vpop.xlane.xlu1 %144 }
 0x17a   :  { %v693_v9 = vsub.f32 %v115_v36, %v153_v5  ;;  %v154_v10 = vmul.f32 0.03125, %v145_v7  ;;  %v183_v11 = vsel %vm121_vm2, %v167_v6, 0.0  ;;  %v168_v12 = vmul.f32 %v688_v4, %v688_v4 }
 0x17b   :  { %181 = vadd.xlane.f32.xlu1 %v180_v8  ;;  %184 = vadd.xlane.f32.xlu0 %v183_v11  ;;  %v230_v44 = vrot.slane %v654_v17, %v229_v37 }
 0x17c   :  { %v698_v13 = vsub.f32 %v118_v39, %v154_v10  ;;  %v169_v14 = vmul.f32 %v693_v9, %v693_v9  ;;  %v186_v18 = vsel %vm121_vm2, %v168_v12, 0.0 }
 0x17e   :  { %v189_v19 = vsel %vm121_vm2, %v169_v14, 0.0  ;;  %v170_v20 = vmul.f32 %v698_v13, %v698_v13 }
 0x17f   :  { %187 = vadd.xlane.f32.xlu1 %v186_v18  ;;  %190 = vadd.xlane.f32.xlu0 %v189_v19 }
 0x180   :  { %v192_v21 = vsel %vm121_vm2, %v170_v20, 0.0 }
 0x183   :  { %193 = vadd.xlane.f32.xlu1 %v192_v21 }
 0x200   :  { %v173_v24 = vpop.xlane.xlu0 %172 }
 0x201   :  { %v195_v25 = vmul.f32 0.03125, %v173_v24 }
 0x203   :  { %v203_v26 = vadd.f32 1e-05, %v195_v25 }
 0x204   :  { %v176_v27 = vpop.xlane.xlu1 %175  ;;  %v179_v28 = vpop.xlane.xlu0 %178 }
 0x205   :  { %555 = vrsqrt.f32 %v203_v26  ;;  %v196_v29 = vmul.f32 0.03125, %v176_v27  ;;  %v197_v30 = vmul.f32 0.03125, %v179_v28 }
 0x207   :  { %v204_v31 = vadd.f32 1e-05, %v196_v29  ;;  %v205_v32 = vadd.f32 1e-05, %v197_v30 }
 0x208   :  { %v182_v33 = vpop.xlane.xlu1 %181  ;;  %v185_v34 = vpop.xlane.xlu0 %184 }
 0x209   :  { %557 = vrsqrt.f32 %v204_v31  ;;  %v198_v35 = vmul.f32 0.03125, %v182_v33  ;;  %v199_v36 = vmul.f32 0.03125, %v185_v34 }
 0x20a   :  { %559 = vrsqrt.f32 %v205_v32 }
 0x20b   :  { %v206_v38 = vadd.f32 1e-05, %v198_v35  ;;  %v207_v39 = vadd.f32 1e-05, %v199_v36 }
 0x20c   :  { %v188_v40 = vpop.xlane.xlu1 %187  ;;  %v191_v41 = vpop.xlane.xlu0 %190 }
 0x20d   :  { %561 = vrsqrt.f32 %v206_v38  ;;  %v200_v42 = vmul.f32 0.03125, %v188_v40  ;;  %v201_v43 = vmul.f32 0.03125, %v191_v41 }
 0x20e   :  { %563 = vrsqrt.f32 %v207_v39 }
 0x20f   :  { %v556_v46 = vpop.eup %555  ;;  %v208_v49 = vadd.f32 1e-05, %v200_v42  ;;  %v209_v50 = vadd.f32 1e-05, %v201_v43 }
 0x210   :  { %v194_v51 = vpop.xlane.xlu1 %193  ;;  %v219_v52 = vmul.f32 %v556_v46, %v669_v48 }
 0x211   :  { %565 = vrsqrt.f32 %v208_v49  ;;  %v202_v53 = vmul.f32 0.03125, %v194_v51 }
 0x212   :  { %567 = vrsqrt.f32 %v209_v50  ;;  %v231_v56 = vmul.f32 %v230_v44, %v219_v52 }
 0x213   :  { %v558_v58 = vpop.eup %557  ;;  %v210_v59 = vadd.f32 1e-05, %v202_v53 }
 0x214   :  { %v560_v60 = vpop.eup %559  ;;  %v220_v61 = vmul.f32 %v558_v58, %v675_v55  ;;  %v243_v1 = vadd.f32 %v242_v57, %v231_v56 }
 0x215   :  { %v221_v62 = vmul.f32 %v560_v60, %v667_v47  ;;  %569 = vrsqrt.f32 %v210_v59 }
 0x216   :  { %v232_v0 = vmul.f32 %v230_v44, %v220_v61  ;;  %v251_v8 = vmax.f32 %v243_v1, 0.0 }
 0x217   :  { %v562_v2 = vpop.eup %561  ;;  %v233_v48 = vmul.f32 %v230_v44, %v221_v62 }
 0x218   :  { %v564_v3 = vpop.eup %563  ;;  %v222_v5 = vmul.f32 %v562_v2, %v673_v54  ;;  %v244_v6 = vadd.f32 %v242_v57, %v232_v0 }
 0x219   :  { %v223_v7 = vmul.f32 %v564_v3, %v684_v63  ;;  %v245_v11 = vadd.f32 %v242_v57, %v233_v48 }
 0x21a   :  { %v252_v17 = vmax.f32 %v244_v6, 0.0  ;;  %v234_v10 = vmul.f32 %v230_v44, %v222_v5 }
 0x21b   :  { %v566_v12 = vpop.eup %565  ;;  %v235_v14 = vmul.f32 %v230_v44, %v223_v7  ;;  %v253_v21 = vmax.f32 %v245_v11, 0.0 }
 0x21c   :  { %v568_v55 = vpop.eup %567  ;;  %v224_v47 = vmul.f32 %v566_v12, %v688_v4  ;;  %v263_v18 = vpack.c.bf16 %v252_v17, %v251_v8  ;;  %v246_v19 = vadd.f32 %v242_v57, %v234_v10 }
 0x21d   :  { %v225_v20 = vmul.f32 %v568_v55, %v693_v9  ;;  %v247_v23 = vadd.f32 %v242_v57, %v235_v14 }
 0x21e   :  { %544 = vmatprep.mubr.msk.bf16.mxu1 %vm121_vm2, %v263_v18  ;;  %v254_v54 = vmax.f32 %v246_v19, 0.0  ;;  %v236_v22 = vmul.f32 %v230_v44, %v224_v47 }
 0x21f   :  { %v570_v63 = vpop.eup %569  ;;  %v237_v24 = vmul.f32 %v230_v44, %v225_v20  ;;  %v255_v28 = vmax.f32 %v247_v23, 0.0 }
 0x220   :  { %v226_v25 = vmul.f32 %v570_v63, %v698_v13  ;;  %v264_v26 = vpack.c.bf16 %v254_v54, %v253_v21  ;;  %v248_v27 = vadd.f32 %v242_v57, %v236_v22  ;;  %v736_v13 = vld [vmem:[%s839_s4] sm:$0x7] }
 0x221   :  { %v249_v30 = vadd.f32 %v242_v57, %v237_v24  ;;  %v271_v35 = vrot.slane %v736_v13, %v37_v16 }
 0x222   :  { %545 = vmatmul.mubr.msk.bf16.vlgmr.msra.gmra.mrb[0].mxu1 %vm121_vm2, %v264_v26  ;;  %v256_v4 = vmax.f32 %v248_v27, 0.0  ;;  %v238_v29 = vmul.f32 %v230_v44, %v226_v25 }
 0x223   :  { %v257_v32 = vmax.f32 %v249_v30, 0.0 }
 0x224   :  { %v265_v31 = vpack.c.bf16 %v256_v4, %v255_v28  ;;  %v250_v9 = vadd.f32 %v242_v57, %v238_v29 }
 0x226   :  { %548 = vmatprep.mubr.msk.bf16.mxu1 %vm121_vm2, %v265_v31  ;;  %v258_v33 = vmax.f32 %v250_v9, 0.0 }
 0x228   :  { %v266_v34 = vpack.c.bf16 %v258_v33, %v257_v32 }
 0x22a   :  { %549 = vmatmul.mubr.msk.bf16.gmra.mrb[4].mxu1 %vm121_vm2, %v266_v34 }
 0x2f5   :  { %v546_v36 = vpop.f32.mrb[0].mxu1 }
 0x2f6   :  { %v339_v38 = vadd.f32 %v546_v36, %v271_v35  ;;  %v330_v39 = vpop.f32.mrb[1].mxu1 }
 0x2f7   :  { %v547_v40 = vpop.f32.mrb[2].mxu1  ;;  %v331_v41 = vadd.f32 %v330_v39, %v271_v35 }
 0x2f8   :  { %v342_v42 = vadd.f32 %v547_v40, %v271_v35  ;;  %v333_v43 = vpop.f32.mrb[3].mxu1  ;;  %v367_v44 = vsel %vm121_vm2, %v339_v38, 0.0 }
 0x2f9   :  { %368 = vadd.xlane.f32.xlu0 %v367_v44  ;;  %v334_v46 = vadd.f32 %v333_v43, %v271_v35  ;;  %v361_v50 = vsel %vm121_vm2, %v331_v41, 0.0 }
 0x2fa   :  { %v370_v49 = vsel %vm121_vm2, %v342_v42, 0.0 }
 0x2fb   :  { %371 = vadd.xlane.f32.xlu1 %v370_v49  ;;  %v364_v16 = vsel %vm121_vm2, %v334_v46, 0.0 }
 0x2fd   :  { %362 = vadd.xlane.f32.xlu0 %v361_v50  ;;  %v550_v51 = vpop.f32.mrb[4].mxu1 }
 0x2fe   :  { %v346_v52 = vpop.f32.mrb[5].mxu1  ;;  %v355_v58 = vadd.f32 %v550_v51, %v271_v35 }
 0x2ff   :  { %v347_v53 = vadd.f32 %v346_v52, %v271_v35  ;;  %365 = vadd.xlane.f32.xlu1 %v364_v16  ;;  %v551_v56 = vpop.f32.mrb[6].mxu1 }
 0x300   :  { %v349_v57 = vpop.f32.mrb[7].mxu1  ;;  %v358_v61 = vadd.f32 %v551_v56, %v271_v35  ;;  %v379_v0 = vsel %vm121_vm2, %v355_v58, 0.0 }
 0x301   :  { %v350_v59 = vadd.f32 %v349_v57, %v271_v35  ;;  %v373_v60 = vsel %vm121_vm2, %v347_v53, 0.0 }
 0x302   :  { %374 = vadd.xlane.f32.xlu0 %v373_v60  ;;  %v382_v1 = vsel %vm121_vm2, %v358_v61, 0.0 }
 0x303   :  { %v376_v62 = vsel %vm121_vm2, %v350_v59, 0.0 }
 0x304   :  { %377 = vadd.xlane.f32.xlu1 %v376_v62 }
 0x306   :  { %380 = vadd.xlane.f32.xlu0 %v379_v0  ;;  %v468_v0 = vrot.slane %v736_v13, %v229_v37 }
 0x308   :  { %383 = vadd.xlane.f32.xlu1 %v382_v1 }
 0x386   :  { %v369_v2 = vpop.xlane.xlu0 %368 }
 0x387   :  { %v387_v48 = vmul.f32 0.03125, %v369_v2 }
 0x388   :  { %v372_v3 = vpop.xlane.xlu1 %371 }
 0x389   :  { %v749_v5 = vsub.f32 %v339_v38, %v387_v48  ;;  %v388_v6 = vmul.f32 0.03125, %v372_v3  ;;  %v480_v3 = vrot.slane %v736_v13, %v241_v45 }
 0x38a   :  { %v363_v7 = vpop.xlane.xlu0 %362 }
 0x38b   :  { %v751_v8 = vsub.f32 %v342_v42, %v388_v6  ;;  %v385_v17 = vmul.f32 0.03125, %v363_v7  ;;  %v403_v10 = vmul.f32 %v749_v5, %v749_v5 }
 0x38c   :  { %v366_v11 = vpop.xlane.xlu1 %365 }
 0x38d   :  { %v755_v12 = vsub.f32 %v331_v41, %v385_v17  ;;  %v386_v14 = vmul.f32 0.03125, %v366_v11  ;;  %v415_v55 = vsel %vm121_vm2, %v403_v10, 0.0  ;;  %v404_v47 = vmul.f32 %v751_v8, %v751_v8 }
 0x38e   :  { %416 = vadd.xlane.f32.xlu0 %v415_v55 }
 0x38f   :  { %v760_v18 = vsub.f32 %v334_v46, %v386_v14  ;;  %v375_v19 = vpop.xlane.xlu0 %374  ;;  %v418_v20 = vsel %vm121_vm2, %v404_v47, 0.0  ;;  %v401_v21 = vmul.f32 %v755_v12, %v755_v12 }
 0x390   :  { %v389_v54 = vmul.f32 0.03125, %v375_v19  ;;  %419 = vadd.xlane.f32.xlu1 %v418_v20 }
 0x391   :  { %v378_v22 = vpop.xlane.xlu1 %377  ;;  %v409_v23 = vsel %vm121_vm2, %v401_v21, 0.0  ;;  %v402_v63 = vmul.f32 %v760_v18, %v760_v18 }
 0x392   :  { %v768_v24 = vsub.f32 %v347_v53, %v389_v54  ;;  %v390_v25 = vmul.f32 0.03125, %v378_v22  ;;  %410 = vadd.xlane.f32.xlu0 %v409_v23 }
 0x393   :  { %v381_v26 = vpop.xlane.xlu0 %380  ;;  %v412_v27 = vsel %vm121_vm2, %v402_v63, 0.0 }
 0x394   :  { %v771_v28 = vsub.f32 %v350_v59, %v390_v25  ;;  %v391_v4 = vmul.f32 0.03125, %v381_v26  ;;  %413 = vadd.xlane.f32.xlu1 %v412_v27  ;;  %v405_v29 = vmul.f32 %v768_v24, %v768_v24 }
 0x395   :  { %v384_v30 = vpop.xlane.xlu1 %383 }
 0x396   :  { %v775_v31 = vsub.f32 %v355_v58, %v391_v4  ;;  %v392_v9 = vmul.f32 0.03125, %v384_v30  ;;  %v421_v32 = vsel %vm121_vm2, %v405_v29, 0.0  ;;  %v406_v33 = vmul.f32 %v771_v28, %v771_v28 }
 0x397   :  { %422 = vadd.xlane.f32.xlu0 %v421_v32 }
 0x398   :  { %v780_v34 = vsub.f32 %v358_v61, %v392_v9  ;;  %v424_v35 = vsel %vm121_vm2, %v406_v33, 0.0  ;;  %v407_v36 = vmul.f32 %v775_v31, %v775_v31 }
 0x399   :  { %425 = vadd.xlane.f32.xlu1 %v424_v35 }
 0x39a   :  { %v427_v38 = vsel %vm121_vm2, %v407_v36, 0.0  ;;  %v408_v39 = vmul.f32 %v780_v34, %v780_v34 }
 0x39b   :  { %428 = vadd.xlane.f32.xlu0 %v427_v38 }
 0x39c   :  { %v430_v40 = vsel %vm121_vm2, %v408_v39, 0.0 }
 0x39d   :  { %431 = vadd.xlane.f32.xlu1 %v430_v40 }
 0x41b   :  { %v417_v41 = vpop.xlane.xlu0 %416 }
 0x41c   :  { %v435_v42 = vmul.f32 0.03125, %v417_v41 }
 0x41d   :  { %v420_v43 = vpop.xlane.xlu1 %419 }
 0x41e   :  { %v443_v44 = vadd.f32 1e-05, %v435_v42  ;;  %v436_v46 = vmul.f32 0.03125, %v420_v43 }
 0x41f   :  { %v411_v49 = vpop.xlane.xlu0 %410 }
 0x420   :  { %571 = vrsqrt.f32 %v443_v44  ;;  %v444_v50 = vadd.f32 1e-05, %v436_v46  ;;  %v433_v51 = vmul.f32 0.03125, %v411_v49 }
 0x421   :  { %v414_v52 = vpop.xlane.xlu1 %413 }
 0x422   :  { %573 = vrsqrt.f32 %v444_v50  ;;  %v441_v16 = vadd.f32 1e-05, %v433_v51  ;;  %v434_v53 = vmul.f32 0.03125, %v414_v52 }
 0x424   :  { %575 = vrsqrt.f32 %v441_v16  ;;  %v442_v56 = vadd.f32 1e-05, %v434_v53  ;;  %v423_v57 = vpop.xlane.xlu0 %422 }
 0x425   :  { %v437_v58 = vmul.f32 0.03125, %v423_v57 }
 0x426   :  { %577 = vrsqrt.f32 %v442_v56  ;;  %v426_v59 = vpop.xlane.xlu1 %425 }
 0x427   :  { %v445_v60 = vadd.f32 1e-05, %v437_v58  ;;  %v438_v61 = vmul.f32 0.03125, %v426_v59 }
 0x428   :  { %v429_v62 = vpop.xlane.xlu0 %428 }
 0x429   :  { %579 = vrsqrt.f32 %v445_v60  ;;  %v446_v1 = vadd.f32 1e-05, %v438_v61  ;;  %v439_v2 = vmul.f32 0.03125, %v429_v62 }
 0x42a   :  { %v572_v48 = vpop.eup %571  ;;  %v432_v6 = vpop.xlane.xlu1 %431 }
 0x42b   :  { %v459_v7 = vmul.f32 %v572_v48, %v749_v5  ;;  %581 = vrsqrt.f32 %v446_v1  ;;  %v447_v17 = vadd.f32 1e-05, %v439_v2  ;;  %v440_v10 = vmul.f32 0.03125, %v432_v6 }
 0x42c   :  { %v574_v11 = vpop.eup %573 }
 0x42d   :  { %v471_v14 = vmul.f32 %v468_v0, %v459_v7  ;;  %v460_v55 = vmul.f32 %v574_v11, %v751_v8  ;;  %583 = vrsqrt.f32 %v447_v17  ;;  %v448_v37 = vadd.f32 1e-05, %v440_v10 }
 0x42e   :  { %v576_v47 = vpop.eup %575 }
 0x42f   :  { %v483_v19 = vadd.f32 %v480_v3, %v471_v14  ;;  %v472_v20 = vmul.f32 %v468_v0, %v460_v55  ;;  %v457_v21 = vmul.f32 %v576_v47, %v755_v12  ;;  %585 = vrsqrt.f32 %v448_v37 }
 0x430   :  { %v578_v15 = vpop.eup %577 }
 0x431   :  { %v491_v45 = vmax.f32 %v483_v19, 0.0  ;;  %v484_v13 = vadd.f32 %v480_v3, %v472_v20  ;;  %v469_v54 = vmul.f32 %v468_v0, %v457_v21  ;;  %v458_v5 = vmul.f32 %v578_v15, %v760_v18 }
 0x433   :  { %v580_v22 = vpop.eup %579  ;;  %499 = vst.msk [vmem:[%s840_s5 + $0x10] sm:$0xff] %vm121_vm2, %v491_v45  ;;  %v492_v8 = vmax.f32 %v484_v13, 0.0  ;;  %v481_v23 = vadd.f32 %v480_v3, %v469_v54  ;;  %v470_v63 = vmul.f32 %v468_v0, %v458_v5 }
 0x434   :  { %v461_v25 = vmul.f32 %v580_v22, %v768_v24 }
 0x435   :  { %v582_v26 = vpop.eup %581  ;;  %500 = vst.msk [vmem:[%s840_s5 + $0x18] sm:$0xff] %vm121_vm2, %v492_v8  ;;  %v489_v12 = vmax.f32 %v481_v23, 0.0  ;;  %v482_v27 = vadd.f32 %v480_v3, %v470_v63 }
 0x436   :  { %v473_v18 = vmul.f32 %v468_v0, %v461_v25  ;;  %v462_v4 = vmul.f32 %v582_v26, %v771_v28 }
 0x437   :  { %v584_v29 = vpop.eup %583  ;;  %497 = vst.msk [vmem:[%s840_s5] sm:$0xff] %vm121_vm2, %v489_v12  ;;  %v490_v30 = vmax.f32 %v482_v27, 0.0 }
 0x438   :  { %v485_v9 = vadd.f32 %v480_v3, %v473_v18  ;;  %v474_v24 = vmul.f32 %v468_v0, %v462_v4  ;;  %v463_v32 = vmul.f32 %v584_v29, %v775_v31 }
 0x439   :  { %v586_v33 = vpop.eup %585  ;;  %498 = vst.msk [vmem:[%s840_s5 + $0x8] sm:$0xff] %vm121_vm2, %v490_v30 }
 0x43a   :  { %v493_v35 = vmax.f32 %v485_v9, 0.0  ;;  %v486_v36 = vadd.f32 %v480_v3, %v474_v24  ;;  %v475_v28 = vmul.f32 %v468_v0, %v463_v32  ;;  %v464_v38 = vmul.f32 %v586_v33, %v780_v34 }
 0x43c   :  { %501 = vst.msk [vmem:[%s840_s5 + $0x20] sm:$0xff] %vm121_vm2, %v493_v35  ;;  %v494_v39 = vmax.f32 %v486_v36, 0.0  ;;  %v487_v40 = vadd.f32 %v480_v3, %v475_v28  ;;  %v476_v41 = vmul.f32 %v468_v0, %v464_v38 }
 0x43e   :  { %502 = vst.msk [vmem:[%s840_s5 + $0x28] sm:$0xff] %vm121_vm2, %v494_v39  ;;  %v495_v31 = vmax.f32 %v487_v40, 0.0  ;;  %v488_v42 = vadd.f32 %v480_v3, %v476_v41 }
 0x440   :  { %503 = vst.msk [vmem:[%s840_s5 + $0x30] sm:$0xff] %vm121_vm2, %v495_v31  ;;  %v496_v34 = vmax.f32 %v488_v42, 0.0 }
 0x442   :  { %504 = vst.msk [vmem:[%s840_s5 + $0x38] sm:$0xff] %vm121_vm2, %v496_v34 }

// kernel: _lambda_.9
= control target key start
LH: loop header
LB: loop body
LE: loop exit
PB: predicated region body
PF: predicated region fallthrough
CT: control target
= control target key end

     0   :  { %v45_v0 = vlaneseq  ;;  %vm34_vm0 = vcmask 261120   ;;  %v1037_v4 = vmov 0.0   ;;  %s1468_s1 = inlined_call_operand.vmem [shape: f32[128,32], index: 1, kind: input, shape index: {}]   ;;  %s1469_s0 = inlined_call_operand.vmem [shape: s32[2,128], index: 0, kind: input, shape index: {}]   ;;  %s1470_s4 = inlined_call_operand.vmem [shape: bf16[32,32], index: 4, kind: input, shape index: {}]   ;;  %s1471_s3 = inlined_call_operand.vmem [shape: bf16[32,32], index: 3, kind: input, shape index: {}]   ;;  %s1472_s2 = inlined_call_operand.vmem [shape: f32[64,32], index: 2, kind: input, shape index: {}]   ;;  %s1473_s5 = inlined_call_operand.vmem [shape: f32[3,32], index: 5, kind: input, shape index: {}]   ;;  %s1474_s6 = inlined_call_operand.vmem [shape: bf16[32,32], index: 6, kind: input, shape index: {}]   ;;  %s1475_s7 = inlined_call_operand.vmem [shape: f32[3,32], index: 7, kind: input, shape index: {}]   ;;  %s1476_s8 = inlined_call_operand.vmem [shape: f32[64,32], index: 8, kind: output, shape index: {}]  }
   0x1   :  { %v139_v1 = vld [vmem:[%s1468_s1] sm:$0xff]  ;;  %v140_v2 = vld [vmem:[%s1468_s1 + $0x8] sm:$0xff]  ;;  %v141_v3 = vld [vmem:[%s1468_s1 + $0x10] sm:$0xff]  ;;  %37 = vst.msk [vmem:[#allocation2 + $0x10] sm:$0xff] %vm34_vm0, %v1037_v4 }
   0x2   :  { %35 = vst.msk [vmem:[#allocation2] sm:$0xff] %vm34_vm0, %v1037_v4  ;;  %36 = vst.msk [vmem:[#allocation2 + $0x8] sm:$0xff] %vm34_vm0, %v1037_v4  ;;  %v155_v5 = vpack.c.bf16 %v140_v2, %v139_v1  ;;  %v142_v6 = vld [vmem:[%s1468_s1 + $0x18] sm:$0xff]  ;;  %v1111_v7 = vshrl.u32 %v45_v0, 7  ;;  %v143_v9 = vld [vmem:[%s1468_s1 + $0x20] sm:$0xff] }
   0x3   :  { %38 = vst.msk [vmem:[#allocation2 + $0x18] sm:$0xff] %vm34_vm0, %v1037_v4  ;;  %39 = vst.msk [vmem:[#allocation2 + $0x20] sm:$0xff] %vm34_vm0, %v1037_v4  ;;  %v156_v8 = vpack.c.bf16 %v142_v6, %v141_v3  ;;  %v144_v10 = vld [vmem:[%s1468_s1 + $0x28] sm:$0xff]  ;;  %v145_v13 = vld [vmem:[%s1468_s1 + $0x30] sm:$0xff] }
   0x4   :  { %40 = vst.msk [vmem:[#allocation2 + $0x28] sm:$0xff] %vm34_vm0, %v1037_v4  ;;  %41 = vst.msk [vmem:[#allocation2 + $0x30] sm:$0xff] %vm34_vm0, %v1037_v4  ;;  %930 = vmatprep.subr.bf16.mxu0 %v155_v5  ;;  %v1120_v11 = vsub.s32 0, %v1111_v7  ;;  %v1123_v12 = vsub.s32 1, %v1111_v7  ;;  %v146_v14 = vld [vmem:[%s1468_s1 + $0x38] sm:$0xff]  ;;  %v47_v15 = vadd.s32 8, %v1111_v7  ;;  %v157_v16 = vpack.c.bf16 %v144_v10, %v143_v9 }
   0x5   :  { %42 = vst.msk [vmem:[#allocation2 + $0x38] sm:$0xff] %vm34_vm0, %v1037_v4  ;;  %931 = vmatpush3.bf16.msra.mxu0 %v155_v5  ;;  %v43_v17 = vld [vmem:[%s1469_s0] sm:$0x3]  ;;  %v158_v20 = vpack.c.bf16 %v146_v14, %v145_v13  ;;  %v148_v26 = vld [vmem:[%s1468_s1 + $0x48] sm:$0xff]  ;;  %v149_v31 = vld [vmem:[%s1468_s1 + $0x50] sm:$0xff]  ;;  %v48_v36 = vadd.s32 16, %v1111_v7 }
   0x6   :  { %932 = vmatprep.subr.bf16.mxu0 %v156_v8  ;;  %v1136_v18 = vrot.slane %v43_v17, %v1120_v11  ;;  %v1139_v19 = vrot.slane %v43_v17, %v1123_v12  ;;  %v147_v25 = vld [vmem:[%s1468_s1 + $0x40] sm:$0xff]  ;;  %v150_v32 = vld [vmem:[%s1468_s1 + $0x58] sm:$0xff]  ;;  %v152_v35 = vld [vmem:[%s1468_s1 + $0x68] sm:$0xff]  ;;  %v49_v37 = vadd.s32 24, %v1111_v7  ;;  %v50_v38 = vadd.s32 32, %v1111_v7 }
   0x7   :  { %v159_v30 = vpack.c.bf16 %v148_v26, %v147_v25  ;;  %v160_v33 = vpack.c.bf16 %v150_v32, %v149_v31  ;;  %v151_v34 = vld [vmem:[%s1468_s1 + $0x60] sm:$0xff]  ;;  %v51_v39 = vadd.s32 40, %v1111_v7  ;;  %v153_v41 = vld [vmem:[%s1468_s1 + $0x70] sm:$0xff]  ;;  %v154_v42 = vld [vmem:[%s1468_s1 + $0x78] sm:$0xff]  ;;  %v52_v44 = vadd.s32 48, %v1111_v7 }
   0x8   :  { %vm67_vm1 = vcmp.eq.s32.totalorder %v1111_v7, %v1136_v18  ;;  %vm68_vm2 = vcmp.eq.s32.totalorder %v47_v15, %v1136_v18  ;;  %vm95_vm3 = vcmp.eq.s32.totalorder %v1111_v7, %v1139_v19  ;;  %vm96_vm4 = vcmp.eq.s32.totalorder %v47_v15, %v1139_v19  ;;  %v999_v3 = vld [vmem:[%s1470_s4] sm:$0xff]   ;;  %v1000_v5 = vld [vmem:[%s1470_s4 + $0x8] sm:$0xff]   ;;  %v129_v6 = vld [vmem:[#allocation2 + $0x10] sm:$0xff] }
   0x9   :  { %933 = vmatpush3.bf16.msra.mxu0 %v156_v8  ;;  %v866_v21 = vsel %vm67_vm1, 1.0, %v1037_v4  ;;  %v867_v22 = vsel %vm68_vm2, 1.0, %v1037_v4  ;;  %v874_v23 = vsel %vm95_vm3, 1.0, %v1037_v4  ;;  %v875_v24 = vsel %vm96_vm4, 1.0, %v1037_v4  ;;  %954 = vmatprep.subr.bf16.mxu1 %v999_v3  ;;  %v127_v8 = vld [vmem:[#allocation2] sm:$0xff]  ;;  %v128_v15 = vld [vmem:[#allocation2 + $0x8] sm:$0xff] }
   0xa   :  { %934 = vmatprep.subr.bf16.mxu0 %v157_v16  ;;  %v119_v27 = vadd.f32 %v874_v23, %v866_v21  ;;  %v120_v28 = vadd.f32 %v875_v24, %v867_v22  ;;  %v161_v40 = vpack.c.bf16 %v152_v35, %v151_v34  ;;  %vm69_vm5 = vcmp.eq.s32.totalorder %v48_v36, %v1136_v18  ;;  %v130_v10 = vld [vmem:[#allocation2 + $0x18] sm:$0xff]  ;;  %v131_v22 = vld [vmem:[#allocation2 + $0x20] sm:$0xff] }
   0xb   :  { %vm70_vm6 = vcmp.eq.s32.totalorder %v49_v37, %v1136_v18  ;;  %vm97_vm7 = vcmp.eq.s32.totalorder %v48_v36, %v1139_v19  ;;  %vm98_vm8 = vcmp.eq.s32.totalorder %v49_v37, %v1139_v19  ;;  %vm71_vm9 = vcmp.eq.s32.totalorder %v50_v38, %v1136_v18  ;;  %955 = vmatpush3.bf16.msra.mxu1 %v999_v3  ;;  %v133_v21 = vld [vmem:[#allocation2 + $0x30] sm:$0xff] }
   0xc   :  { %v135_v29 = vpack.c.bf16 %v120_v28, %v119_v27  ;;  %vm72_vm10 = vcmp.eq.s32.totalorder %v51_v39, %v1136_v18  ;;  %vm99_vm11 = vcmp.eq.s32.totalorder %v50_v38, %v1139_v19  ;;  %vm100_vm12 = vcmp.eq.s32.totalorder %v51_v39, %v1139_v19  ;;  %956 = vmatprep.subr.bf16.mxu1 %v1000_v5  ;;  %v134_v24 = vld [vmem:[#allocation2 + $0x38] sm:$0xff]  ;;  %v132_v27 = vld [vmem:[#allocation2 + $0x28] sm:$0xff] }
   0xd   :  { %935 = vmatpush3.bf16.msra.mxu0 %v157_v16  ;;  %v162_v43 = vpack.c.bf16 %v154_v42, %v153_v41  ;;  %v53_v45 = vadd.s32 56, %v1111_v7  ;;  %v868_v46 = vsel %vm69_vm5, 1.0, %v1037_v4  ;;  %v869_v47 = vsel %vm70_vm6, 1.0, %v1037_v4  ;;  %v1002_v39 = vld [vmem:[%s1471_s3 + $0x8] sm:$0xff]  }
   0xe   :  { %936 = vmatprep.subr.bf16.mxu0 %v158_v20  ;;  %946 = vmatprep.mubr.bf16.mxu0 %v135_v29  ;;  %v876_v48 = vsel %vm97_vm7, 1.0, %v1037_v4  ;;  %v877_v49 = vsel %vm98_vm8, 1.0, %v1037_v4  ;;  %v870_v50 = vsel %vm71_vm9, 1.0, %v1037_v4  ;;  %v871_v51 = vsel %vm72_vm10, 1.0, %v1037_v4  ;;  %v1235_v41 = vld [vmem:[%s1472_s2 + $0x8] sm:$0xff] }
   0xf   :  { %v878_v52 = vsel %vm99_vm11, 1.0, %v1037_v4  ;;  %v879_v53 = vsel %vm100_vm12, 1.0, %v1037_v4  ;;  %v121_v54 = vadd.f32 %v876_v48, %v868_v46  ;;  %v122_v55 = vadd.f32 %v877_v49, %v869_v47  ;;  %957 = vmatpush3.bf16.msra.mxu1 %v1000_v5  ;;  %v1245_v49 = vld [vmem:[%s1472_s2 + $0x10] sm:$0xff] }
  0x10   :  { %v123_v56 = vadd.f32 %v878_v52, %v870_v50  ;;  %v124_v57 = vadd.f32 %v879_v53, %v871_v51  ;;  %vm73_vm13 = vcmp.eq.s32.totalorder %v52_v44, %v1136_v18  ;;  %vm74_vm14 = vcmp.eq.s32.totalorder %v53_v45, %v1136_v18  ;;  %v1250_v50 = vld [vmem:[%s1472_s2 + $0x18] sm:$0xff]  ;;  %v1255_v51 = vld [vmem:[%s1472_s2 + $0x20] sm:$0xff]  ;;  %v1260_v52 = vld [vmem:[%s1472_s2 + $0x28] sm:$0xff] }
  0x11   :  { %937 = vmatpush3.bf16.msra.mxu0 %v158_v20  ;;  %vm101_vm15 = vcmp.eq.s32.totalorder %v52_v44, %v1139_v19  ;;  %vm102_vm1 = vcmp.eq.s32.totalorder %v53_v45, %v1139_v19  ;;  %v136_v58 = vpack.c.bf16 %v122_v55, %v121_v54  ;;  %v872_v59 = vsel %vm73_vm13, 1.0, %v1037_v4  ;;  %v1271_v55 = vld [vmem:[%s1472_s2 + $0x30] sm:$0xff] }
  0x12   :  { %938 = vmatprep.subr.bf16.mxu0 %v159_v30  ;;  %v137_v60 = vpack.c.bf16 %v124_v57, %v123_v56  ;;  %v873_v61 = vsel %vm74_vm14, 1.0, %v1037_v4  ;;  %v880_v62 = vsel %vm101_vm15, 1.0, %v1037_v4  ;;  %v881_v63 = vsel %vm102_vm1, 1.0, %v1037_v4  ;;  %v1001_v4 = vld [vmem:[%s1471_s3] sm:$0xff]   ;;  %v1276_v56 = vld [vmem:[%s1472_s2 + $0x38] sm:$0xff] }
  0x13   :  { %v125_v0 = vadd.f32 %v880_v62, %v872_v59  ;;  %v126_v1 = vadd.f32 %v881_v63, %v873_v61  ;;  %966 = vmatprep.subr.bf16.mxu1 %v1001_v4  ;;  %v269_v53 = vpack.c.bf16 %v1250_v50, %v1245_v49  ;;  %v270_v54 = vpack.c.bf16 %v1260_v52, %v1255_v51 }
  0x14   :  { %v271_v57 = vpack.c.bf16 %v1276_v56, %v1271_v55 }
  0x15   :  { %939 = vmatpush3.bf16.msra.mxu0 %v159_v30  ;;  %v138_v2 = vpack.c.bf16 %v126_v1, %v125_v0 }
  0x16   :  { %940 = vmatprep.subr.bf16.mxu0 %v160_v33 }
  0x19   :  { %941 = vmatpush3.bf16.msra.mxu0 %v160_v33 }
  0x1a   :  { %942 = vmatprep.subr.bf16.mxu0 %v161_v40 }
  0x1d   :  { %943 = vmatpush3.bf16.msra.mxu0 %v161_v40  ;;  %v1230_v40 = vld [vmem:[%s1472_s2] sm:$0xff] }
  0x1e   :  { %944 = vmatprep.subr.bf16.mxu0 %v162_v43  ;;  %v268_v47 = vpack.c.bf16 %v1235_v41, %v1230_v40 }
  0x21   :  { %945 = vmatpush3.bf16.msra.mxu0 %v162_v43 }
  0x24   :  { %947 = vmatmul.mubr.bf16.vlgmr.msra.gmra.mrb[0].mxu0 %v136_v58  ;;  %v1284_v58 = vld [vmem:[%s1473_s5] sm:$0x7] }
  0x25   :  { %950 = vmatprep.mubr.bf16.mxu0 %v137_v60  ;;  %v462_v59 = vrot.slane %v1284_v58, %v1120_v11 }
  0x2c   :  { %951 = vmatmul.mubr.bf16.gmra.mrb[4].mxu0 %v138_v2 }
  0xf7   :  { %v948_v9 = vpop.f32.mrb[0].mxu0 }
  0xf8   :  { %v230_v13 = vadd.f32 %v948_v9, %v129_v6  ;;  %v197_v14 = vpop.f32.mrb[1].mxu0 }
  0xf9   :  { %v228_v16 = vadd.f32 %v197_v14, %v127_v8  ;;  %v949_v17 = vpop.f32.mrb[2].mxu0 }
  0xfa   :  { %239 = vst.msk [vmem:[#allocation2 + $0x10] sm:$0xff] %vm34_vm0, %v230_v13  ;;  %v231_v18 = vadd.f32 %v949_v17, %v130_v10  ;;  %v200_v19 = vpop.f32.mrb[3].mxu0 }
  0xfb   :  { %237 = vst.msk [vmem:[#allocation2] sm:$0xff] %vm34_vm0, %v228_v16  ;;  %v229_v20 = vadd.f32 %v200_v19, %v128_v15 }
  0xfc   :  { %240 = vst.msk [vmem:[#allocation2 + $0x18] sm:$0xff] %vm34_vm0, %v231_v18 }
  0xfd   :  { %238 = vst.msk [vmem:[#allocation2 + $0x8] sm:$0xff] %vm34_vm0, %v229_v20 }
  0xff   :  { %v952_v23 = vpop.f32.mrb[4].mxu0 }
 0x100   :  { %v234_v25 = vadd.f32 %v952_v23, %v133_v21  ;;  %v213_v26 = vpop.f32.mrb[5].mxu0 }
 0x101   :  { %v232_v28 = vadd.f32 %v213_v26, %v131_v22  ;;  %v953_v29 = vpop.f32.mrb[6].mxu0  ;;  %v258_v37 = vld [vmem:[#allocation2 + $0x10] sm:$0xff] }
 0x102   :  { %243 = vst.msk [vmem:[#allocation2 + $0x30] sm:$0xff] %vm34_vm0, %v234_v25  ;;  %v235_v30 = vadd.f32 %v953_v29, %v134_v24  ;;  %v216_v31 = vpop.f32.mrb[7].mxu0  ;;  %v256_v34 = vld [vmem:[#allocation2] sm:$0xff] }
 0x103   :  { %241 = vst.msk [vmem:[#allocation2 + $0x20] sm:$0xff] %vm34_vm0, %v232_v28  ;;  %v233_v32 = vadd.f32 %v216_v31, %v132_v27  ;;  %v259_v33 = vld [vmem:[#allocation2 + $0x18] sm:$0xff] }
 0x104   :  { %244 = vst.msk [vmem:[#allocation2 + $0x38] sm:$0xff] %vm34_vm0, %v235_v30  ;;  %v257_v35 = vld [vmem:[#allocation2 + $0x8] sm:$0xff]  ;;  %v277_v38 = vpack.c.bf16 %v259_v33, %v258_v37 }
 0x105   :  { %242 = vst.msk [vmem:[#allocation2 + $0x28] sm:$0xff] %vm34_vm0, %v233_v32  ;;  %v276_v36 = vpack.c.bf16 %v257_v35, %v256_v34 }
 0x107   :  { %958 = vmatprep.mubr.msk.bf16.mxu1 %vm34_vm0, %v276_v36 }
 0x108   :  { %959 = vmatmul.mubr.msk.bf16.vlgmr.msra.gmra.mrb[0].mxu1 %vm34_vm0, %v277_v38 }
 0x109   :  { %967 = vmatpush3.bf16.msra.mxu1 %v1001_v4  ;;  %v262_v46 = vld [vmem:[#allocation2 + $0x30] sm:$0xff] }
 0x10a   :  { %968 = vmatprep.subr.bf16.mxu1 %v1002_v39  ;;  %v260_v43 = vld [vmem:[#allocation2 + $0x20] sm:$0xff] }
 0x10b   :  { %v263_v42 = vld [vmem:[#allocation2 + $0x38] sm:$0xff] }
 0x10c   :  { %v261_v44 = vld [vmem:[#allocation2 + $0x28] sm:$0xff]  ;;  %v279_v48 = vpack.c.bf16 %v263_v42, %v262_v46 }
 0x10d   :  { %v278_v45 = vpack.c.bf16 %v261_v44, %v260_v43  ;;  %969 = vmatpush3.bf16.msra.mxu1 %v1002_v39 }
 0x10f   :  { %962 = vmatprep.mubr.msk.bf16.mxu1 %vm34_vm0, %v278_v45 }
 0x110   :  { %963 = vmatmul.mubr.msk.bf16.gmra.mrb[4].mxu1 %vm34_vm0, %v279_v48 }
 0x111   :  { %970 = vmatprep.mubr.msk.bf16.mxu1 %vm34_vm0, %v268_v47 }
 0x118   :  { %971 = vmatmul.mubr.msk.bf16.vlgmr.msra.gmra.mrb[0].mxu1 %vm34_vm0, %v269_v53 }
 0x119   :  { %974 = vmatprep.mubr.msk.bf16.mxu1 %vm34_vm0, %v270_v54 }
 0x120   :  { %975 = vmatmul.mubr.msk.bf16.gmra.mrb[4].mxu1 %vm34_vm0, %v271_v57 }
 0x1eb   :  { %v972_v60 = vpop.f32.mrb[0].mxu1 }
 0x1ec   :  { %v465_v61 = vadd.f32 %v972_v60, %v462_v59  ;;  %v427_v62 = vpop.f32.mrb[1].mxu1 }
 0x1ed   :  { %v463_v63 = vadd.f32 %v462_v59, %v427_v62  ;;  %v973_v0 = vpop.f32.mrb[2].mxu1 }
 0x1ee   :  { %v466_v1 = vadd.f32 %v973_v0, %v462_v59  ;;  %v430_v2 = vpop.f32.mrb[3].mxu1  ;;  %v477_v3 = vsel %vm34_vm0, %v465_v61, 0.0 }
 0x1ef   :  { %v464_v5 = vadd.f32 %v462_v59, %v430_v2  ;;  %478 = vadd.xlane.f32.xlu1 %v477_v3  ;;  %v471_v4 = vsel %vm34_vm0, %v463_v63, 0.0 }
 0x1f0   :  { %472 = vadd.xlane.f32.xlu0 %v471_v4  ;;  %v480_v6 = vsel %vm34_vm0, %v466_v1, 0.0 }
 0x1f1   :  { %v474_v9 = vsel %vm34_vm0, %v464_v5, 0.0 }
 0x1f3   :  { %481 = vadd.xlane.f32.xlu1 %v480_v6  ;;  %v976_v8 = vpop.f32.mrb[4].mxu1 }
 0x1f4   :  { %475 = vadd.xlane.f32.xlu0 %v474_v9  ;;  %v443_v10 = vpop.f32.mrb[5].mxu1  ;;  %v469_v16 = vadd.f32 %v976_v8, %v462_v59  ;;  %v1003_v9 = vld [vmem:[%s1474_s6] sm:$0xff]  }
 0x1f5   :  { %v467_v13 = vadd.f32 %v462_v59, %v443_v10  ;;  %v977_v14 = vpop.f32.mrb[6].mxu1  ;;  %978 = vmatprep.subr.bf16.mxu1 %v1003_v9  ;;  %v1004_v10 = vld [vmem:[%s1474_s6 + $0x8] sm:$0xff]  }
 0x1f6   :  { %v446_v15 = vpop.f32.mrb[7].mxu1  ;;  %v470_v19 = vadd.f32 %v977_v14, %v462_v59  ;;  %v489_v21 = vsel %vm34_vm0, %v469_v16, 0.0  ;;  %979 = vmatpush3.bf16.msra.mxu1 %v1003_v9 }
 0x1f7   :  { %v468_v17 = vadd.f32 %v462_v59, %v446_v15  ;;  %v483_v18 = vsel %vm34_vm0, %v467_v13, 0.0  ;;  %980 = vmatprep.subr.bf16.mxu1 %v1004_v10 }
 0x1f8   :  { %484 = vadd.xlane.f32.xlu0 %v483_v18  ;;  %v492_v22 = vsel %vm34_vm0, %v470_v19, 0.0 }
 0x1f9   :  { %v486_v20 = vsel %vm34_vm0, %v468_v17, 0.0 }
 0x1fa   :  { %487 = vadd.xlane.f32.xlu1 %v486_v20  ;;  %981 = vmatpush3.bf16.msra.mxu1 %v1004_v10 }
 0x1fc   :  { %490 = vadd.xlane.f32.xlu0 %v489_v21 }
 0x1fe   :  { %493 = vadd.xlane.f32.xlu1 %v492_v22 }
 0x27c   :  { %v479_v23 = vpop.xlane.xlu1 %478 }
 0x27d   :  { %v498_v24 = vmul.f32 0.03125, %v479_v23  ;;  %v473_v25 = vpop.xlane.xlu0 %472 }
 0x27e   :  { %v496_v26 = vmul.f32 0.03125, %v473_v25 }
 0x27f   :  { %v1296_v27 = vsub.f32 %v465_v61, %v498_v24 }
 0x280   :  { %v1298_v28 = vsub.f32 %v463_v63, %v496_v26  ;;  %v482_v29 = vpop.xlane.xlu1 %481 }
 0x281   :  { %v499_v30 = vmul.f32 0.03125, %v482_v29  ;;  %v476_v31 = vpop.xlane.xlu0 %475  ;;  %v514_v37 = vmul.f32 %v1296_v27, %v1296_v27 }
 0x282   :  { %v497_v32 = vmul.f32 0.03125, %v476_v31  ;;  %v512_v33 = vmul.f32 %v1298_v28, %v1298_v28 }
 0x283   :  { %v1302_v34 = vsub.f32 %v466_v1, %v499_v30  ;;  %v526_v47 = vsel %vm34_vm0, %v514_v37, 0.0  ;;  %v590_v37 = vsub.s32 2, %v1111_v7 }
 0x284   :  { %v1304_v35 = vsub.f32 %v464_v5, %v497_v32  ;;  %v520_v36 = vsel %vm34_vm0, %v512_v33, 0.0 }
 0x285   :  { %521 = vadd.xlane.f32.xlu0 %v520_v36  ;;  %v485_v38 = vpop.xlane.xlu0 %484  ;;  %v515_v44 = vmul.f32 %v1302_v34, %v1302_v34  ;;  %v579_v36 = vrot.slane %v1284_v58, %v1123_v12 }
 0x286   :  { %v500_v39 = vmul.f32 0.03125, %v485_v38  ;;  %v513_v42 = vmul.f32 %v1304_v35, %v1304_v35 }
 0x287   :  { %v488_v43 = vpop.xlane.xlu1 %487  ;;  %v529_v61 = vsel %vm34_vm0, %v515_v44, 0.0 }
 0x288   :  { %v1313_v45 = vsub.f32 %v467_v13, %v500_v39  ;;  %v501_v46 = vmul.f32 0.03125, %v488_v43  ;;  %v523_v48 = vsel %vm34_vm0, %v513_v42, 0.0 }
 0x289   :  { %527 = vadd.xlane.f32.xlu0 %v526_v47  ;;  %v491_v53 = vpop.xlane.xlu0 %490  ;;  %524 = vadd.xlane.f32.xlu1 %v523_v48  ;;  %v591_v47 = vrot.slane %v1284_v58, %v590_v37 }
 0x28a   :  { %v1317_v54 = vsub.f32 %v468_v17, %v501_v46  ;;  %v502_v57 = vmul.f32 0.03125, %v491_v53  ;;  %v516_v59 = vmul.f32 %v1313_v45, %v1313_v45 }
 0x28b   :  { %v494_v60 = vpop.xlane.xlu1 %493 }
 0x28c   :  { %v1322_v62 = vsub.f32 %v469_v16, %v502_v57  ;;  %v503_v63 = vmul.f32 0.03125, %v494_v60  ;;  %v532_v0 = vsel %vm34_vm0, %v516_v59, 0.0  ;;  %v517_v1 = vmul.f32 %v1317_v54, %v1317_v54 }
 0x28d   :  { %533 = vadd.xlane.f32.xlu0 %v532_v0  ;;  %530 = vadd.xlane.f32.xlu1 %v529_v61 }
 0x28e   :  { %v1327_v2 = vsub.f32 %v470_v19, %v503_v63  ;;  %v518_v3 = vmul.f32 %v1322_v62, %v1322_v62  ;;  %v535_v4 = vsel %vm34_vm0, %v517_v1, 0.0 }
 0x290   :  { %v538_v5 = vsel %vm34_vm0, %v518_v3, 0.0  ;;  %v519_v6 = vmul.f32 %v1327_v2, %v1327_v2 }
 0x291   :  { %539 = vadd.xlane.f32.xlu0 %v538_v5  ;;  %536 = vadd.xlane.f32.xlu1 %v535_v4 }
 0x292   :  { %v541_v8 = vsel %vm34_vm0, %v519_v6, 0.0 }
 0x295   :  { %542 = vadd.xlane.f32.xlu1 %v541_v8 }
 0x312   :  { %v522_v13 = vpop.xlane.xlu0 %521 }
 0x313   :  { %v544_v14 = vmul.f32 0.03125, %v522_v13 }
 0x315   :  { %v552_v15 = vadd.f32 1e-05, %v544_v14 }
 0x316   :  { %v528_v16 = vpop.xlane.xlu0 %527  ;;  %v525_v17 = vpop.xlane.xlu1 %524 }
 0x317   :  { %1005 = vrsqrt.f32 %v552_v15  ;;  %v546_v18 = vmul.f32 0.03125, %v528_v16  ;;  %v545_v19 = vmul.f32 0.03125, %v525_v17 }
 0x319   :  { %v554_v20 = vadd.f32 1e-05, %v546_v18  ;;  %v553_v21 = vadd.f32 1e-05, %v545_v19 }
 0x31a   :  { %v534_v22 = vpop.xlane.xlu0 %533  ;;  %v531_v23 = vpop.xlane.xlu1 %530 }
 0x31b   :  { %1007 = vrsqrt.f32 %v554_v20  ;;  %v548_v24 = vmul.f32 0.03125, %v534_v22  ;;  %v547_v25 = vmul.f32 0.03125, %v531_v23 }
 0x31c   :  { %1009 = vrsqrt.f32 %v553_v21 }
 0x31d   :  { %v556_v26 = vadd.f32 1e-05, %v548_v24  ;;  %v555_v29 = vadd.f32 1e-05, %v547_v25 }
 0x31e   :  { %v540_v30 = vpop.xlane.xlu0 %539  ;;  %v537_v31 = vpop.xlane.xlu1 %536 }
 0x31f   :  { %1011 = vrsqrt.f32 %v556_v26  ;;  %v550_v32 = vmul.f32 0.03125, %v540_v30  ;;  %v549_v33 = vmul.f32 0.03125, %v537_v31 }
 0x320   :  { %1013 = vrsqrt.f32 %v555_v29 }
 0x321   :  { %v1006_v38 = vpop.eup %1005  ;;  %v558_v39 = vadd.f32 1e-05, %v550_v32  ;;  %v557_v42 = vadd.f32 1e-05, %v549_v33 }
 0x322   :  { %v568_v43 = vmul.f32 %v1006_v38, %v1298_v28  ;;  %v543_v44 = vpop.xlane.xlu1 %542 }
 0x323   :  { %1015 = vrsqrt.f32 %v558_v39  ;;  %v551_v46 = vmul.f32 0.03125, %v543_v44 }
 0x324   :  { %1017 = vrsqrt.f32 %v557_v42  ;;  %v580_v48 = vmul.f32 %v579_v36, %v568_v43 }
 0x325   :  { %v1008_v53 = vpop.eup %1007  ;;  %v559_v57 = vadd.f32 1e-05, %v551_v46 }
 0x326   :  { %v1010_v59 = vpop.eup %1009  ;;  %v570_v60 = vmul.f32 %v1008_v53, %v1296_v27  ;;  %v592_v63 = vadd.f32 %v591_v47, %v580_v48 }
 0x327   :  { %v569_v61 = vmul.f32 %v1010_v59, %v1304_v35  ;;  %1019 = vrsqrt.f32 %v559_v57 }
 0x328   :  { %v582_v28 = vmul.f32 %v579_v36, %v570_v60  ;;  %v600_v6 = vmax.f32 %v592_v63, 0.0 }
 0x329   :  { %v1012_v0 = vpop.eup %1011  ;;  %v581_v1 = vmul.f32 %v579_v36, %v569_v61 }
 0x32a   :  { %v1014_v3 = vpop.eup %1013  ;;  %v572_v5 = vmul.f32 %v1012_v0, %v1313_v45  ;;  %v594_v9 = vadd.f32 %v591_v47, %v582_v28 }
 0x32b   :  { %v571_v4 = vmul.f32 %v1014_v3, %v1302_v34  ;;  %v593_v58 = vadd.f32 %v591_v47, %v581_v1 }
 0x32c   :  { %v584_v14 = vmul.f32 %v579_v36, %v572_v5  ;;  %v602_v20 = vmax.f32 %v594_v9, 0.0 }
 0x32d   :  { %v1016_v8 = vpop.eup %1015  ;;  %v583_v10 = vmul.f32 %v579_v36, %v571_v4  ;;  %v601_v13 = vmax.f32 %v593_v58, 0.0 }
 0x32e   :  { %v1018_v27 = vpop.eup %1017  ;;  %v574_v35 = vmul.f32 %v1016_v8, %v1322_v62  ;;  %v596_v21 = vadd.f32 %v591_v47, %v584_v14 }
 0x32f   :  { %v595_v15 = vadd.f32 %v591_v47, %v583_v10  ;;  %v573_v16 = vmul.f32 %v1018_v27, %v1317_v54  ;;  %v612_v17 = vpack.c.bf16 %v601_v13, %v600_v6 }
 0x330   :  { %v586_v18 = vmul.f32 %v579_v36, %v574_v35  ;;  %v604_v62 = vmax.f32 %v596_v21, 0.0 }
 0x331   :  { %v1020_v19 = vpop.eup %1019  ;;  %v603_v45 = vmax.f32 %v595_v15, 0.0  ;;  %982 = vmatprep.mubr.msk.bf16.mxu1 %vm34_vm0, %v612_v17  ;;  %v585_v34 = vmul.f32 %v579_v36, %v573_v16 }
 0x332   :  { %v575_v22 = vmul.f32 %v1020_v19, %v1327_v2  ;;  %v598_v26 = vadd.f32 %v591_v47, %v586_v18  ;;  %v1363_v2 = vld [vmem:[%s1475_s7] sm:$0x7] }
 0x333   :  { %v613_v23 = vpack.c.bf16 %v603_v45, %v602_v20  ;;  %v597_v24 = vadd.f32 %v591_v47, %v585_v34 }
 0x334   :  { %v587_v25 = vmul.f32 %v579_v36, %v575_v22  ;;  %v606_v31 = vmax.f32 %v598_v26, 0.0  ;;  %v620_v36 = vrot.slane %v1363_v2, %v1120_v11 }
 0x335   :  { %983 = vmatmul.mubr.msk.bf16.vlgmr.msra.gmra.mrb[8].mxu1 %vm34_vm0, %v613_v23  ;;  %v605_v29 = vmax.f32 %v597_v24, 0.0 }
 0x336   :  { %v599_v54 = vadd.f32 %v591_v47, %v587_v25 }
 0x337   :  { %v614_v30 = vpack.c.bf16 %v605_v29, %v604_v62 }
 0x338   :  { %v607_v32 = vmax.f32 %v599_v54, 0.0 }
 0x339   :  { %986 = vmatprep.mubr.msk.bf16.mxu1 %vm34_vm0, %v614_v30 }
 0x33a   :  { %v615_v33 = vpack.c.bf16 %v607_v32, %v606_v31 }
 0x33d   :  { %987 = vmatmul.mubr.msk.bf16.gmra.mrb[12].mxu1 %vm34_vm0, %v615_v33 }
 0x408   :  { %v984_v38 = vpop.f32.mrb[8].mxu1 }
 0x409   :  { %v688_v39 = vadd.f32 %v984_v38, %v620_v36  ;;  %v679_v42 = vpop.f32.mrb[9].mxu1 }
 0x40a   :  { %v985_v43 = vpop.f32.mrb[10].mxu1  ;;  %v680_v44 = vadd.f32 %v679_v42, %v620_v36 }
 0x40b   :  { %v691_v46 = vadd.f32 %v985_v43, %v620_v36  ;;  %v682_v47 = vpop.f32.mrb[11].mxu1  ;;  %v716_v48 = vsel %vm34_vm0, %v688_v39, 0.0 }
 0x40c   :  { %717 = vadd.xlane.f32.xlu0 %v716_v48  ;;  %v683_v53 = vadd.f32 %v682_v47, %v620_v36  ;;  %v710_v59 = vsel %vm34_vm0, %v680_v44, 0.0 }
 0x40d   :  { %v719_v57 = vsel %vm34_vm0, %v691_v46, 0.0 }
 0x40e   :  { %720 = vadd.xlane.f32.xlu1 %v719_v57  ;;  %v713_v11 = vsel %vm34_vm0, %v683_v53, 0.0 }
 0x410   :  { %711 = vadd.xlane.f32.xlu0 %v710_v59  ;;  %v988_v60 = vpop.f32.mrb[12].mxu1 }
 0x411   :  { %v695_v61 = vpop.f32.mrb[13].mxu1  ;;  %v704_v1 = vadd.f32 %v988_v60, %v620_v36 }
 0x412   :  { %v696_v63 = vadd.f32 %v695_v61, %v620_v36  ;;  %714 = vadd.xlane.f32.xlu1 %v713_v11  ;;  %v989_v0 = vpop.f32.mrb[14].mxu1 }
 0x413   :  { %v698_v28 = vpop.f32.mrb[15].mxu1  ;;  %v707_v4 = vadd.f32 %v989_v0, %v620_v36  ;;  %v728_v6 = vsel %vm34_vm0, %v704_v1, 0.0 }
 0x414   :  { %v699_v3 = vadd.f32 %v698_v28, %v620_v36  ;;  %v722_v5 = vsel %vm34_vm0, %v696_v63, 0.0 }
 0x415   :  { %723 = vadd.xlane.f32.xlu0 %v722_v5  ;;  %v731_v8 = vsel %vm34_vm0, %v707_v4, 0.0 }
 0x416   :  { %v725_v58 = vsel %vm34_vm0, %v699_v3, 0.0 }
 0x417   :  { %726 = vadd.xlane.f32.xlu1 %v725_v58 }
 0x419   :  { %729 = vadd.xlane.f32.xlu0 %v728_v6 }
 0x41b   :  { %732 = vadd.xlane.f32.xlu1 %v731_v8 }
 0x499   :  { %v718_v9 = vpop.xlane.xlu0 %717 }
 0x49a   :  { %v736_v10 = vmul.f32 0.03125, %v718_v9 }
 0x49b   :  { %v721_v13 = vpop.xlane.xlu1 %720 }
 0x49c   :  { %v1375_v14 = vsub.f32 %v688_v39, %v736_v10  ;;  %v737_v27 = vmul.f32 0.03125, %v721_v13 }
 0x49d   :  { %v712_v35 = vpop.xlane.xlu0 %711 }
 0x49e   :  { %v1377_v15 = vsub.f32 %v691_v46, %v737_v27  ;;  %v734_v16 = vmul.f32 0.03125, %v712_v35  ;;  %v752_v17 = vmul.f32 %v1375_v14, %v1375_v14 }
 0x49f   :  { %v715_v18 = vpop.xlane.xlu1 %714 }
 0x4a0   :  { %v1381_v19 = vsub.f32 %v680_v44, %v734_v16  ;;  %v735_v20 = vmul.f32 0.03125, %v715_v18  ;;  %v764_v45 = vsel %vm34_vm0, %v752_v17, 0.0  ;;  %v753_v34 = vmul.f32 %v1377_v15, %v1377_v15 }
 0x4a1   :  { %765 = vadd.xlane.f32.xlu0 %v764_v45  ;;  %v817_v17 = vrot.slane %v1363_v2, %v1123_v12 }
 0x4a2   :  { %v1386_v21 = vsub.f32 %v683_v53, %v735_v20  ;;  %v724_v22 = vpop.xlane.xlu0 %723  ;;  %v767_v23 = vsel %vm34_vm0, %v753_v34, 0.0  ;;  %v750_v24 = vmul.f32 %v1381_v19, %v1381_v19  ;;  %v829_v34 = vrot.slane %v1363_v2, %v590_v37 }
 0x4a3   :  { %v738_v25 = vmul.f32 0.03125, %v724_v22  ;;  %768 = vadd.xlane.f32.xlu1 %v767_v23 }
 0x4a4   :  { %v727_v26 = vpop.xlane.xlu1 %726  ;;  %v758_v62 = vsel %vm34_vm0, %v750_v24, 0.0  ;;  %v751_v29 = vmul.f32 %v1386_v21, %v1386_v21 }
 0x4a5   :  { %v1394_v54 = vsub.f32 %v696_v63, %v738_v25  ;;  %v739_v30 = vmul.f32 0.03125, %v727_v26  ;;  %759 = vadd.xlane.f32.xlu0 %v758_v62 }
 0x4a6   :  { %v730_v31 = vpop.xlane.xlu0 %729  ;;  %v761_v32 = vsel %vm34_vm0, %v751_v29, 0.0 }
 0x4a7   :  { %v1397_v33 = vsub.f32 %v699_v3, %v739_v30  ;;  %v740_v36 = vmul.f32 0.03125, %v730_v31  ;;  %762 = vadd.xlane.f32.xlu1 %v761_v32  ;;  %v754_v38 = vmul.f32 %v1394_v54, %v1394_v54 }
 0x4a8   :  { %v733_v39 = vpop.xlane.xlu1 %732 }
 0x4a9   :  { %v1401_v42 = vsub.f32 %v704_v1, %v740_v36  ;;  %v741_v43 = vmul.f32 0.03125, %v733_v39  ;;  %v770_v44 = vsel %vm34_vm0, %v754_v38, 0.0  ;;  %v755_v46 = vmul.f32 %v1397_v33, %v1397_v33 }
 0x4aa   :  { %771 = vadd.xlane.f32.xlu0 %v770_v44 }
 0x4ab   :  { %v1406_v47 = vsub.f32 %v707_v4, %v741_v43  ;;  %v773_v48 = vsel %vm34_vm0, %v755_v46, 0.0  ;;  %v756_v53 = vmul.f32 %v1401_v42, %v1401_v42 }
 0x4ac   :  { %774 = vadd.xlane.f32.xlu1 %v773_v48 }
 0x4ad   :  { %v776_v57 = vsel %vm34_vm0, %v756_v53, 0.0  ;;  %v757_v59 = vmul.f32 %v1406_v47, %v1406_v47 }
 0x4ae   :  { %777 = vadd.xlane.f32.xlu0 %v776_v57 }
 0x4af   :  { %v779_v60 = vsel %vm34_vm0, %v757_v59, 0.0 }
 0x4b0   :  { %780 = vadd.xlane.f32.xlu1 %v779_v60 }
 0x52e   :  { %v766_v61 = vpop.xlane.xlu0 %765 }
 0x52f   :  { %v784_v11 = vmul.f32 0.03125, %v766_v61 }
 0x530   :  { %v769_v63 = vpop.xlane.xlu1 %768 }
 0x531   :  { %v792_v0 = vadd.f32 1e-05, %v784_v11  ;;  %v785_v28 = vmul.f32 0.03125, %v769_v63 }
 0x532   :  { %v760_v1 = vpop.xlane.xlu0 %759 }
 0x533   :  { %1021 = vrsqrt.f32 %v792_v0  ;;  %v793_v3 = vadd.f32 1e-05, %v785_v28  ;;  %v782_v5 = vmul.f32 0.03125, %v760_v1 }
 0x534   :  { %v763_v4 = vpop.xlane.xlu1 %762 }
 0x535   :  { %1023 = vrsqrt.f32 %v793_v3  ;;  %v790_v58 = vadd.f32 1e-05, %v782_v5  ;;  %v783_v6 = vmul.f32 0.03125, %v763_v4 }
 0x537   :  { %1025 = vrsqrt.f32 %v790_v58  ;;  %v791_v8 = vadd.f32 1e-05, %v783_v6  ;;  %v772_v9 = vpop.xlane.xlu0 %771 }
 0x538   :  { %v786_v10 = vmul.f32 0.03125, %v772_v9 }
 0x539   :  { %1027 = vrsqrt.f32 %v791_v8  ;;  %v775_v13 = vpop.xlane.xlu1 %774 }
 0x53a   :  { %v794_v27 = vadd.f32 1e-05, %v786_v10  ;;  %v787_v35 = vmul.f32 0.03125, %v775_v13 }
 0x53b   :  { %v778_v16 = vpop.xlane.xlu0 %777 }
 0x53c   :  { %1029 = vrsqrt.f32 %v794_v27  ;;  %v795_v18 = vadd.f32 1e-05, %v787_v35  ;;  %v788_v20 = vmul.f32 0.03125, %v778_v16 }
 0x53d   :  { %v1022_v45 = vpop.eup %1021  ;;  %v781_v22 = vpop.xlane.xlu1 %780 }
 0x53e   :  { %v808_v23 = vmul.f32 %v1022_v45, %v1375_v14  ;;  %1031 = vrsqrt.f32 %v795_v18  ;;  %v796_v24 = vadd.f32 1e-05, %v788_v20  ;;  %v789_v25 = vmul.f32 0.03125, %v781_v22 }
 0x53f   :  { %v1024_v26 = vpop.eup %1023 }
 0x540   :  { %v820_v62 = vmul.f32 %v817_v17, %v808_v23  ;;  %v809_v29 = vmul.f32 %v1024_v26, %v1377_v15  ;;  %1033 = vrsqrt.f32 %v796_v24  ;;  %v797_v12 = vadd.f32 1e-05, %v789_v25 }
 0x541   :  { %v1026_v30 = vpop.eup %1025 }
 0x542   :  { %v832_v31 = vadd.f32 %v829_v34, %v820_v62  ;;  %v821_v32 = vmul.f32 %v817_v17, %v809_v29  ;;  %v806_v36 = vmul.f32 %v1026_v30, %v1381_v19  ;;  %1035 = vrsqrt.f32 %v797_v12 }
 0x543   :  { %v1028_v7 = vpop.eup %1027 }
 0x544   :  { %v840_v37 = vmax.f32 %v832_v31, 0.0  ;;  %v833_v2 = vadd.f32 %v829_v34, %v821_v32  ;;  %v818_v38 = vmul.f32 %v817_v17, %v806_v36  ;;  %v807_v14 = vmul.f32 %v1028_v7, %v1386_v21 }
 0x546   :  { %v1030_v39 = vpop.eup %1029  ;;  %v848_v43 = vadd.f32 %v840_v37, %v1245_v49  ;;  %v841_v44 = vmax.f32 %v833_v2, 0.0  ;;  %v830_v46 = vadd.f32 %v829_v34, %v818_v38  ;;  %v819_v15 = vmul.f32 %v817_v17, %v807_v14 }
 0x547   :  { %v810_v48 = vmul.f32 %v1030_v39, %v1394_v54 }
 0x548   :  { %v1032_v53 = vpop.eup %1031  ;;  %856 = vst.msk [vmem:[%s1476_s8 + $0x10] sm:$0xff] %vm34_vm0, %v848_v43  ;;  %v849_v19 = vadd.f32 %v841_v44, %v1250_v50  ;;  %v838_v57 = vmax.f32 %v830_v46, 0.0  ;;  %v831_v59 = vadd.f32 %v829_v34, %v819_v15 }
 0x549   :  { %v822_v60 = vmul.f32 %v817_v17, %v810_v48  ;;  %v811_v21 = vmul.f32 %v1032_v53, %v1397_v33 }
 0x54a   :  { %v1034_v61 = vpop.eup %1033  ;;  %857 = vst.msk [vmem:[%s1476_s8 + $0x18] sm:$0xff] %vm34_vm0, %v849_v19  ;;  %v846_v49 = vadd.f32 %v838_v57, %v1230_v40  ;;  %v839_v54 = vmax.f32 %v831_v59, 0.0 }
 0x54b   :  { %v834_v11 = vadd.f32 %v829_v34, %v822_v60  ;;  %v823_v63 = vmul.f32 %v817_v17, %v811_v21  ;;  %v812_v0 = vmul.f32 %v1034_v61, %v1401_v42 }
 0x54c   :  { %v1036_v28 = vpop.eup %1035  ;;  %854 = vst.msk [vmem:[%s1476_s8] sm:$0xff] %vm34_vm0, %v846_v49  ;;  %v847_v50 = vadd.f32 %v839_v54, %v1235_v41 }
 0x54d   :  { %v842_v33 = vmax.f32 %v834_v11, 0.0  ;;  %v835_v1 = vadd.f32 %v829_v34, %v823_v63  ;;  %v824_v3 = vmul.f32 %v817_v17, %v812_v0  ;;  %v813_v5 = vmul.f32 %v1036_v28, %v1406_v47 }
 0x54e   :  { %855 = vst.msk [vmem:[%s1476_s8 + $0x8] sm:$0xff] %vm34_vm0, %v847_v50 }
 0x54f   :  { %v850_v40 = vadd.f32 %v842_v33, %v1255_v51  ;;  %v843_v42 = vmax.f32 %v835_v1, 0.0  ;;  %v836_v4 = vadd.f32 %v829_v34, %v824_v3  ;;  %v825_v58 = vmul.f32 %v817_v17, %v813_v5 }
 0x551   :  { %858 = vst.msk [vmem:[%s1476_s8 + $0x20] sm:$0xff] %vm34_vm0, %v850_v40  ;;  %v851_v41 = vadd.f32 %v843_v42, %v1260_v52  ;;  %v844_v6 = vmax.f32 %v836_v4, 0.0  ;;  %v837_v8 = vadd.f32 %v829_v34, %v825_v58 }
 0x553   :  { %859 = vst.msk [vmem:[%s1476_s8 + $0x28] sm:$0xff] %vm34_vm0, %v851_v41  ;;  %v852_v47 = vadd.f32 %v844_v6, %v1271_v55  ;;  %v845_v51 = vmax.f32 %v837_v8, 0.0 }
 0x555   :  { %860 = vst.msk [vmem:[%s1476_s8 + $0x30] sm:$0xff] %vm34_vm0, %v852_v47  ;;  %v853_v9 = vadd.f32 %v845_v51, %v1276_v56 }
 0x557   :  { %861 = vst.msk [vmem:[%s1476_s8 + $0x38] sm:$0xff] %vm34_vm0, %v853_v9 }

// kernel: _lambda_.10
= control target key start
LH: loop header
LB: loop body
LE: loop exit
PB: predicated region body
PF: predicated region fallthrough
CT: control target
= control target key end

     0   :  { %vm120_vm0 = vcmask 261120   ;;  %s2394_s3 = inlined_call_operand.vmem [shape: bf16[32,32], index: 3, kind: input, shape index: {}]   ;;  %s2395_s0 = inlined_call_operand.vmem [shape: f32[128,32], index: 0, kind: input, shape index: {}]   ;;  %s2396_s5 = inlined_call_operand.vmem [shape: bf16[32,32], index: 5, kind: input, shape index: {}]   ;;  %s2397_s4 = inlined_call_operand.vmem [shape: bf16[32,32], index: 4, kind: input, shape index: {}]   ;;  %s2398_s1 = inlined_call_operand.vmem [shape: f32[128,32], index: 1, kind: input, shape index: {}]   ;;  %s2399_s2 = inlined_call_operand.vmem [shape: f32[128,32], index: 2, kind: input, shape index: {}, may-alias: {2,9}]   ;;  %s2400_s6 = inlined_call_operand.vmem [shape: f32[3,32], index: 6, kind: input, shape index: {}]   ;;  %s2401_s7 = inlined_call_operand.vmem [shape: bf16[32,32], index: 7, kind: input, shape index: {}]   ;;  %s2402_s8 = inlined_call_operand.vmem [shape: f32[3,32], index: 8, kind: input, shape index: {}]   ;;  %s2403_s9 = inlined_call_operand.vmem [shape: f32[128,32], index: 9, kind: input, shape index: {}, may-alias: {2,9}]   ;;  %s2404_s10 = inlined_call_operand.vmem [shape: f32[128,32], index: 10, kind: output, shape index: {}]  }
   0x1   :  { %v1480_v0 = vld [vmem:[%s2394_s3] sm:$0xff]   ;;  %v1481_v1 = vld [vmem:[%s2394_s3 + $0x8] sm:$0xff]   ;;  %v38_v4 = vld [vmem:[%s2395_s0 + $0x10] sm:$0xff] }
   0x2   :  { %1388 = vmatprep.subr.bf16.mxu0 %v1480_v0  ;;  %v36_v2 = vld [vmem:[%s2395_s0] sm:$0xff]  ;;  %v37_v3 = vld [vmem:[%s2395_s0 + $0x8] sm:$0xff]  ;;  %v39_v6 = vld [vmem:[%s2395_s0 + $0x18] sm:$0xff] }
   0x3   :  { %1389 = vmatpush3.bf16.msra.mxu0 %v1480_v0  ;;  %v88_v5 = vpack.c.bf16 %v37_v3, %v36_v2  ;;  %v1482_v7 = vld [vmem:[%s2396_s5] sm:$0xff]   ;;  %v41_v9 = vld [vmem:[%s2395_s0 + $0x28] sm:$0xff]  ;;  %v89_v10 = vpack.c.bf16 %v39_v6, %v38_v4  ;;  %v42_v14 = vld [vmem:[%s2395_s0 + $0x30] sm:$0xff] }
   0x4   :  { %1390 = vmatprep.subr.bf16.mxu0 %v1481_v1  ;;  %v40_v8 = vld [vmem:[%s2395_s0 + $0x20] sm:$0xff]  ;;  %v1483_v12 = vld [vmem:[%s2396_s5 + $0x8] sm:$0xff]   ;;  %v43_v15 = vld [vmem:[%s2395_s0 + $0x38] sm:$0xff] }
   0x5   :  { %1392 = vmatprep.mubr.msk.bf16.mxu0 %vm120_vm0, %v88_v5  ;;  %v90_v11 = vpack.c.bf16 %v41_v9, %v40_v8  ;;  %v1484_v13 = vld [vmem:[%s2397_s4] sm:$0xff]   ;;  %v1485_v17 = vld [vmem:[%s2397_s4 + $0x8] sm:$0xff]   ;;  %v54_v22 = vld [vmem:[%s2398_s1 + $0x10] sm:$0xff]  ;;  %v91_v24 = vpack.c.bf16 %v43_v15, %v42_v14 }
   0x6   :  { %v44_v16 = vld [vmem:[%s2395_s0 + $0x40] sm:$0xff]  ;;  %1368 = vmatprep.subr.bf16.mxu1 %v1484_v13  ;;  %v53_v19 = vld [vmem:[%s2398_s1 + $0x8] sm:$0xff]  ;;  %v55_v23 = vld [vmem:[%s2398_s1 + $0x18] sm:$0xff] }
   0x7   :  { %1391 = vmatpush3.bf16.msra.mxu0 %v1481_v1  ;;  %v52_v18 = vld [vmem:[%s2398_s1] sm:$0xff]  ;;  %v45_v20 = vld [vmem:[%s2395_s0 + $0x48] sm:$0xff]  ;;  %1369 = vmatpush3.bf16.msra.mxu1 %v1484_v13  ;;  %v101_v28 = vpack.c.bf16 %v55_v23, %v54_v22  ;;  %v46_v30 = vld [vmem:[%s2395_s0 + $0x50] sm:$0xff] }
   0x8   :  { %1408 = vmatprep.subr.bf16.mxu0 %v1482_v7  ;;  %v100_v21 = vpack.c.bf16 %v53_v19, %v52_v18  ;;  %1370 = vmatprep.subr.bf16.mxu1 %v1485_v17  ;;  %v56_v25 = vld [vmem:[%s2398_s1 + $0x20] sm:$0xff]  ;;  %v57_v26 = vld [vmem:[%s2398_s1 + $0x28] sm:$0xff]  ;;  %v92_v27 = vpack.c.bf16 %v45_v20, %v44_v16  ;;  %v47_v31 = vld [vmem:[%s2395_s0 + $0x58] sm:$0xff]  ;;  %v537_v20 = vlaneseq }
   0x9   :  { %v102_v29 = vpack.c.bf16 %v57_v26, %v56_v25  ;;  %v48_v32 = vld [vmem:[%s2395_s0 + $0x60] sm:$0xff]  ;;  %v49_v33 = vld [vmem:[%s2395_s0 + $0x68] sm:$0xff]  ;;  %v58_v34 = vld [vmem:[%s2398_s1 + $0x30] sm:$0xff]  ;;  %v93_v38 = vpack.c.bf16 %v47_v31, %v46_v30 }
   0xa   :  { %1393 = vmatmul.mubr.msk.bf16.vlgmr.msra.gmra.mrb[0].mxu0 %vm120_vm0, %v89_v10  ;;  %1372 = vmatprep.mubr.msk.bf16.mxu1 %vm120_vm0, %v100_v21  ;;  %v59_v35 = vld [vmem:[%s2398_s1 + $0x38] sm:$0xff]  ;;  %v60_v36 = vld [vmem:[%s2398_s1 + $0x40] sm:$0xff]  ;;  %v61_v37 = vld [vmem:[%s2398_s1 + $0x48] sm:$0xff]  ;;  %v94_v39 = vpack.c.bf16 %v49_v33, %v48_v32  ;;  %v1793_v23 = vshrl.u32 %v537_v20, 7 }
   0xb   :  { %1409 = vmatpush3.bf16.msra.mxu0 %v1482_v7  ;;  %1396 = vmatprep.mubr.msk.bf16.mxu0 %vm120_vm0, %v90_v11  ;;  %v103_v40 = vpack.c.bf16 %v59_v35, %v58_v34  ;;  %v104_v41 = vpack.c.bf16 %v61_v37, %v60_v36  ;;  %v50_v42 = vld [vmem:[%s2395_s0 + $0x70] sm:$0xff]  ;;  %v51_v43 = vld [vmem:[%s2395_s0 + $0x78] sm:$0xff]  ;;  %v68_v44 = vld [vmem:[%s2399_s2] sm:$0xff] }
   0xc   :  { %1410 = vmatprep.subr.bf16.mxu0 %v1483_v12  ;;  %1371 = vmatpush3.bf16.msra.mxu1 %v1485_v17  ;;  %v69_v45 = vld [vmem:[%s2399_s2 + $0x8] sm:$0xff]  ;;  %v62_v46 = vld [vmem:[%s2398_s1 + $0x50] sm:$0xff]  ;;  %v63_v47 = vld [vmem:[%s2398_s1 + $0x58] sm:$0xff]  ;;  %v95_v50 = vpack.c.bf16 %v51_v43, %v50_v42  ;;  %v539_v26 = vsub.s32 0, %v1793_v23 }
   0xd   :  { %v64_v48 = vld [vmem:[%s2398_s1 + $0x60] sm:$0xff]  ;;  %v65_v49 = vld [vmem:[%s2398_s1 + $0x68] sm:$0xff]  ;;  %v379_v51 = vpack.c.bf16 %v69_v45, %v68_v44  ;;  %v105_v52 = vpack.c.bf16 %v63_v47, %v62_v46  ;;  %v70_v54 = vld [vmem:[%s2399_s2 + $0x10] sm:$0xff] }
   0xe   :  { %v106_v53 = vpack.c.bf16 %v65_v49, %v64_v48  ;;  %v71_v55 = vld [vmem:[%s2399_s2 + $0x18] sm:$0xff]  ;;  %v72_v56 = vld [vmem:[%s2399_s2 + $0x20] sm:$0xff]  ;;  %v73_v57 = vld [vmem:[%s2399_s2 + $0x28] sm:$0xff] }
   0xf   :  { %1411 = vmatpush3.bf16.msra.mxu0 %v1483_v12  ;;  %1373 = vmatmul.mubr.msk.bf16.vlgmr.msra.gmra.mrb[0].mxu1 %vm120_vm0, %v101_v28  ;;  %v66_v58 = vld [vmem:[%s2398_s1 + $0x70] sm:$0xff]  ;;  %v67_v59 = vld [vmem:[%s2398_s1 + $0x78] sm:$0xff]  ;;  %v380_v60 = vpack.c.bf16 %v71_v55, %v70_v54  ;;  %v381_v61 = vpack.c.bf16 %v73_v57, %v72_v56  ;;  %v76_v1 = vld [vmem:[%s2399_s2 + $0x40] sm:$0xff] }
  0x10   :  { %1376 = vmatprep.mubr.msk.bf16.mxu1 %vm120_vm0, %v102_v29  ;;  %v107_v62 = vpack.c.bf16 %v67_v59, %v66_v58  ;;  %v74_v63 = vld [vmem:[%s2399_s2 + $0x30] sm:$0xff]  ;;  %v75_v0 = vld [vmem:[%s2399_s2 + $0x38] sm:$0xff]  ;;  %v77_v2 = vld [vmem:[%s2399_s2 + $0x48] sm:$0xff] }
  0x11   :  { %v382_v3 = vpack.c.bf16 %v75_v0, %v74_v63  ;;  %v383_v4 = vpack.c.bf16 %v77_v2, %v76_v1  ;;  %v78_v5 = vld [vmem:[%s2399_s2 + $0x50] sm:$0xff]  ;;  %v79_v6 = vld [vmem:[%s2399_s2 + $0x58] sm:$0xff]  ;;  %v80_v7 = vld [vmem:[%s2399_s2 + $0x60] sm:$0xff] }
  0x12   :  { %1397 = vmatmul.mubr.msk.bf16.gmra.mrb[4].mxu0 %vm120_vm0, %v91_v24  ;;  %v81_v8 = vld [vmem:[%s2399_s2 + $0x68] sm:$0xff]  ;;  %v384_v9 = vpack.c.bf16 %v79_v6, %v78_v5  ;;  %v82_v11 = vld [vmem:[%s2399_s2 + $0x70] sm:$0xff]  ;;  %v83_v12 = vld [vmem:[%s2399_s2 + $0x78] sm:$0xff] }
  0x13   :  { %1400 = vmatprep.mubr.msk.bf16.mxu0 %vm120_vm0, %v92_v27  ;;  %v385_v10 = vpack.c.bf16 %v81_v8, %v80_v7  ;;  %v386_v13 = vpack.c.bf16 %v83_v12, %v82_v11  ;;  %v1799_v28 = vld [vmem:[%s2400_s6] sm:$0x7] }
  0x14   :  { %v1804_v30 = vrot.slane %v1799_v28, %v539_v26 }
  0x17   :  { %1377 = vmatmul.mubr.msk.bf16.gmra.mrb[4].mxu1 %vm120_vm0, %v103_v40 }
  0x18   :  { %1380 = vmatprep.mubr.msk.bf16.mxu1 %vm120_vm0, %v104_v41 }
  0x1a   :  { %1401 = vmatmul.mubr.msk.bf16.gmra.mrb[8].mxu0 %vm120_vm0, %v93_v38 }
  0x1b   :  { %1404 = vmatprep.mubr.msk.bf16.mxu0 %vm120_vm0, %v94_v39 }
  0x1f   :  { %1381 = vmatmul.mubr.msk.bf16.gmra.mrb[8].mxu1 %vm120_vm0, %v105_v52 }
  0x20   :  { %1384 = vmatprep.mubr.msk.bf16.mxu1 %vm120_vm0, %v106_v53 }
  0x22   :  { %1405 = vmatmul.mubr.msk.bf16.gmra.mrb[12].mxu0 %vm120_vm0, %v95_v50 }
  0x23   :  { %1412 = vmatprep.mubr.msk.bf16.mxu0 %vm120_vm0, %v379_v51 }
  0x27   :  { %1385 = vmatmul.mubr.msk.bf16.gmra.mrb[12].mxu1 %vm120_vm0, %v107_v62 }
  0x2a   :  { %1413 = vmatmul.mubr.msk.bf16.vlgmr.msra.gmra.mrb[0].mxu0 %vm120_vm0, %v380_v60 }
  0x2b   :  { %1416 = vmatprep.mubr.msk.bf16.mxu0 %vm120_vm0, %v381_v61 }
  0x32   :  { %1417 = vmatmul.mubr.msk.bf16.gmra.mrb[4].mxu0 %vm120_vm0, %v382_v3 }
  0x33   :  { %1420 = vmatprep.mubr.msk.bf16.mxu0 %vm120_vm0, %v383_v4 }
  0x3a   :  { %1421 = vmatmul.mubr.msk.bf16.gmra.mrb[8].mxu0 %vm120_vm0, %v384_v9 }
  0x3b   :  { %1424 = vmatprep.mubr.msk.bf16.mxu0 %vm120_vm0, %v385_v10 }
  0x42   :  { %1425 = vmatmul.mubr.msk.bf16.gmra.mrb[12].mxu0 %vm120_vm0, %v386_v13 }
  0xe2   :  { %v1374_v14 = vpop.f32.mrb[0].mxu1 }
  0xe3   :  { %v179_v15 = vpop.f32.mrb[1].mxu1 }
  0xe4   :  { %v1375_v16 = vpop.f32.mrb[2].mxu1 }
  0xe5   :  { %v182_v17 = vpop.f32.mrb[3].mxu1 }
  0xea   :  { %v1378_v18 = vpop.f32.mrb[4].mxu1 }
  0xeb   :  { %v195_v19 = vpop.f32.mrb[5].mxu1 }
  0xec   :  { %v1379_v21 = vpop.f32.mrb[6].mxu1 }
  0xed   :  { %v198_v22 = vpop.f32.mrb[7].mxu1 }
  0xf2   :  { %v1382_v24 = vpop.f32.mrb[8].mxu1 }
  0xf3   :  { %v211_v25 = vpop.f32.mrb[9].mxu1 }
  0xf4   :  { %v1383_v27 = vpop.f32.mrb[10].mxu1 }
  0xf5   :  { %v214_v29 = vpop.f32.mrb[11].mxu1 }
  0xfa   :  { %v1386_v34 = vpop.f32.mrb[12].mxu1 }
  0xfb   :  { %v227_v37 = vpop.f32.mrb[13].mxu1 }
  0xfc   :  { %v1387_v41 = vpop.f32.mrb[14].mxu1 }
  0xfd   :  { %v1414_v31 = vpop.f32.mrb[0].mxu0  ;;  %v230_v44 = vpop.f32.mrb[15].mxu1 }
  0xfe   :  { %v1448_v32 = vadd.f32 %v1414_v31, %v1374_v14  ;;  %v457_v33 = vpop.f32.mrb[1].mxu0 }
  0xff   :  { %v1449_v35 = vadd.f32 %v457_v33, %v179_v15  ;;  %v1415_v36 = vpop.f32.mrb[2].mxu0 }
 0x100   :  { %v1450_v38 = vadd.f32 %v1415_v36, %v1375_v16  ;;  %v460_v39 = vpop.f32.mrb[3].mxu0  ;;  %v1807_v40 = vadd.f32 %v1448_v32, %v1804_v30 }
 0x101   :  { %v1451_v42 = vadd.f32 %v460_v39, %v182_v17  ;;  %v1810_v43 = vadd.f32 %v1449_v35, %v1804_v30 }
 0x102   :  { %v563_v45 = vsel %vm120_vm0, %v1807_v40, 0.0  ;;  %v1815_v46 = vadd.f32 %v1450_v38, %v1804_v30 }
 0x103   :  { %564 = vadd.xlane.f32.xlu1 %v563_v45  ;;  %v557_v47 = vsel %vm120_vm0, %v1810_v43, 0.0  ;;  %v1820_v48 = vadd.f32 %v1451_v42, %v1804_v30 }
 0x104   :  { %558 = vadd.xlane.f32.xlu0 %v557_v47  ;;  %v566_v52 = vsel %vm120_vm0, %v1815_v46, 0.0 }
 0x105   :  { %v1418_v49 = vpop.f32.mrb[4].mxu0  ;;  %v560_v55 = vsel %vm120_vm0, %v1820_v48, 0.0 }
 0x106   :  { %v1452_v50 = vadd.f32 %v1418_v49, %v1378_v18  ;;  %v473_v51 = vpop.f32.mrb[5].mxu0 }
 0x107   :  { %v1453_v53 = vadd.f32 %v473_v51, %v195_v19  ;;  %567 = vadd.xlane.f32.xlu1 %v566_v52  ;;  %v1419_v54 = vpop.f32.mrb[6].mxu0 }
 0x108   :  { %v1454_v56 = vadd.f32 %v1419_v54, %v1379_v21  ;;  %561 = vadd.xlane.f32.xlu0 %v560_v55  ;;  %v476_v57 = vpop.f32.mrb[7].mxu0  ;;  %v1835_v62 = vadd.f32 %v1452_v50, %v1804_v30 }
 0x109   :  { %v1455_v58 = vadd.f32 %v476_v57, %v198_v22  ;;  %v1827_v59 = vadd.f32 %v1453_v53, %v1804_v30 }
 0x10a   :  { %v1840_v1 = vadd.f32 %v1454_v56, %v1804_v30  ;;  %v575_v6 = vsel %vm120_vm0, %v1835_v62, 0.0 }
 0x10b   :  { %v569_v60 = vsel %vm120_vm0, %v1827_v59, 0.0  ;;  %v1832_v61 = vadd.f32 %v1455_v58, %v1804_v30 }
 0x10c   :  { %570 = vadd.xlane.f32.xlu0 %v569_v60  ;;  %v578_v10 = vsel %vm120_vm0, %v1840_v1, 0.0 }
 0x10d   :  { %v1422_v63 = vpop.f32.mrb[8].mxu0  ;;  %v572_v0 = vsel %vm120_vm0, %v1832_v61, 0.0 }
 0x10e   :  { %v1456_v2 = vadd.f32 %v1422_v63, %v1382_v24  ;;  %573 = vadd.xlane.f32.xlu1 %v572_v0  ;;  %v489_v3 = vpop.f32.mrb[9].mxu0 }
 0x10f   :  { %v1457_v4 = vadd.f32 %v489_v3, %v211_v25  ;;  %v1423_v5 = vpop.f32.mrb[10].mxu0 }
 0x110   :  { %v1458_v7 = vadd.f32 %v1423_v5, %v1383_v27  ;;  %576 = vadd.xlane.f32.xlu0 %v575_v6  ;;  %v492_v8 = vpop.f32.mrb[11].mxu0  ;;  %v1855_v14 = vadd.f32 %v1456_v2, %v1804_v30 }
 0x111   :  { %v1459_v9 = vadd.f32 %v492_v8, %v214_v29  ;;  %v1847_v11 = vadd.f32 %v1457_v4, %v1804_v30 }
 0x112   :  { %579 = vadd.xlane.f32.xlu1 %v578_v10  ;;  %v1860_v17 = vadd.f32 %v1458_v7, %v1804_v30  ;;  %v587_v22 = vsel %vm120_vm0, %v1855_v14, 0.0 }
 0x113   :  { %v581_v12 = vsel %vm120_vm0, %v1847_v11, 0.0  ;;  %v1852_v13 = vadd.f32 %v1459_v9, %v1804_v30 }
 0x114   :  { %582 = vadd.xlane.f32.xlu0 %v581_v12  ;;  %v590_v29 = vsel %vm120_vm0, %v1860_v17, 0.0 }
 0x115   :  { %v1426_v15 = vpop.f32.mrb[12].mxu0  ;;  %v584_v16 = vsel %vm120_vm0, %v1852_v13, 0.0 }
 0x116   :  { %v1460_v18 = vadd.f32 %v1426_v15, %v1386_v34  ;;  %585 = vadd.xlane.f32.xlu1 %v584_v16  ;;  %v505_v19 = vpop.f32.mrb[13].mxu0 }
 0x117   :  { %v1461_v20 = vadd.f32 %v505_v19, %v227_v37  ;;  %v1427_v21 = vpop.f32.mrb[14].mxu0 }
 0x118   :  { %v1462_v24 = vadd.f32 %v1427_v21, %v1387_v41  ;;  %588 = vadd.xlane.f32.xlu0 %v587_v22  ;;  %v508_v25 = vpop.f32.mrb[15].mxu0  ;;  %v1875_v34 = vadd.f32 %v1460_v18, %v1804_v30 }
 0x119   :  { %v1463_v27 = vadd.f32 %v508_v25, %v230_v44  ;;  %v1867_v31 = vadd.f32 %v1461_v20, %v1804_v30 }
 0x11a   :  { %591 = vadd.xlane.f32.xlu1 %v590_v29  ;;  %v1880_v36 = vadd.f32 %v1462_v24, %v1804_v30  ;;  %v599_v37 = vsel %vm120_vm0, %v1875_v34, 0.0 }
 0x11b   :  { %v593_v32 = vsel %vm120_vm0, %v1867_v31, 0.0  ;;  %v1872_v33 = vadd.f32 %v1463_v27, %v1804_v30 }
 0x11c   :  { %594 = vadd.xlane.f32.xlu0 %v593_v32  ;;  %v602_v38 = vsel %vm120_vm0, %v1880_v36, 0.0 }
 0x11d   :  { %v596_v35 = vsel %vm120_vm0, %v1872_v33, 0.0 }
 0x11e   :  { %597 = vadd.xlane.f32.xlu1 %v596_v35 }
 0x120   :  { %600 = vadd.xlane.f32.xlu0 %v599_v37 }
 0x122   :  { %603 = vadd.xlane.f32.xlu1 %v602_v38 }
 0x190   :  { %v565_v39 = vpop.xlane.xlu1 %564 }
 0x191   :  { %v608_v41 = vmul.f32 0.03125, %v565_v39  ;;  %v559_v42 = vpop.xlane.xlu0 %558 }
 0x192   :  { %v606_v44 = vmul.f32 0.03125, %v559_v42 }
 0x193   :  { %v1887_v45 = vsub.f32 %v1807_v40, %v608_v41 }
 0x194   :  { %v1890_v47 = vsub.f32 %v1810_v43, %v606_v44  ;;  %v568_v30 = vpop.xlane.xlu1 %567 }
 0x195   :  { %v609_v49 = vmul.f32 0.03125, %v568_v30  ;;  %v562_v50 = vpop.xlane.xlu0 %561  ;;  %v640_v40 = vmul.f32 %v1887_v45, %v1887_v45 }
 0x196   :  { %v607_v51 = vmul.f32 0.03125, %v562_v50  ;;  %v638_v52 = vmul.f32 %v1890_v47, %v1890_v47 }
 0x197   :  { %v1895_v53 = vsub.f32 %v1815_v46, %v609_v49  ;;  %v660_v63 = vsel %vm120_vm0, %v640_v40, 0.0 }
 0x198   :  { %v1898_v54 = vsub.f32 %v1820_v48, %v607_v51  ;;  %v654_v55 = vsel %vm120_vm0, %v638_v52, 0.0 }
 0x199   :  { %v571_v43 = vpop.xlane.xlu0 %570  ;;  %655 = vadd.xlane.f32.xlu0 %v654_v55  ;;  %v641_v60 = vmul.f32 %v1895_v53, %v1895_v53 }
 0x19a   :  { %v610_v56 = vmul.f32 0.03125, %v571_v43  ;;  %v639_v57 = vmul.f32 %v1898_v54, %v1898_v54 }
 0x19b   :  { %v574_v58 = vpop.xlane.xlu1 %573  ;;  %v663_v7 = vsel %vm120_vm0, %v641_v60, 0.0 }
 0x19c   :  { %v1908_v46 = vsub.f32 %v1827_v59, %v610_v56  ;;  %v611_v48 = vmul.f32 0.03125, %v574_v58  ;;  %v657_v0 = vsel %vm120_vm0, %v639_v57, 0.0 }
 0x19d   :  { %v577_v2 = vpop.xlane.xlu0 %576  ;;  %661 = vadd.xlane.f32.xlu0 %v660_v63  ;;  %658 = vadd.xlane.f32.xlu1 %v657_v0 }
 0x19e   :  { %v1913_v3 = vsub.f32 %v1832_v61, %v611_v48  ;;  %v612_v4 = vmul.f32 0.03125, %v577_v2  ;;  %v642_v5 = vmul.f32 %v1908_v46, %v1908_v46  ;;  %v1486_v2 = vld [vmem:[%s2401_s7] sm:$0xff]  }
 0x19f   :  { %v580_v6 = vpop.xlane.xlu1 %579  ;;  %1428 = vmatprep.subr.bf16.mxu1 %v1486_v2 }
 0x1a0   :  { %v1919_v59 = vsub.f32 %v1835_v62, %v612_v4  ;;  %v613_v8 = vmul.f32 0.03125, %v580_v6  ;;  %v666_v9 = vsel %vm120_vm0, %v642_v5, 0.0  ;;  %v643_v10 = vmul.f32 %v1913_v3, %v1913_v3  ;;  %1429 = vmatpush3.bf16.msra.mxu1 %v1486_v2 }
 0x1a1   :  { %v583_v12 = vpop.xlane.xlu0 %582  ;;  %667 = vadd.xlane.f32.xlu0 %v666_v9  ;;  %664 = vadd.xlane.f32.xlu1 %v663_v7 }
 0x1a2   :  { %v1925_v61 = vsub.f32 %v1840_v1, %v613_v8  ;;  %v614_v15 = vmul.f32 0.03125, %v583_v12  ;;  %v644_v16 = vmul.f32 %v1919_v59, %v1919_v59  ;;  %v669_v62 = vsel %vm120_vm0, %v643_v10, 0.0 }
 0x1a3   :  { %v586_v18 = vpop.xlane.xlu1 %585 }
 0x1a4   :  { %v1931_v19 = vsub.f32 %v1847_v11, %v614_v15  ;;  %v615_v20 = vmul.f32 0.03125, %v586_v18  ;;  %v672_v21 = vsel %vm120_vm0, %v644_v16, 0.0  ;;  %v645_v22 = vmul.f32 %v1925_v61, %v1925_v61 }
 0x1a5   :  { %v589_v24 = vpop.xlane.xlu0 %588  ;;  %673 = vadd.xlane.f32.xlu0 %v672_v21  ;;  %670 = vadd.xlane.f32.xlu1 %v669_v62 }
 0x1a6   :  { %v1937_v1 = vsub.f32 %v1852_v13, %v615_v20  ;;  %v616_v25 = vmul.f32 0.03125, %v589_v24  ;;  %v646_v27 = vmul.f32 %v1931_v19, %v1931_v19  ;;  %v675_v11 = vsel %vm120_vm0, %v645_v22, 0.0 }
 0x1a7   :  { %v592_v29 = vpop.xlane.xlu1 %591 }
 0x1a8   :  { %v1943_v32 = vsub.f32 %v1855_v14, %v616_v25  ;;  %v617_v35 = vmul.f32 0.03125, %v592_v29  ;;  %v678_v37 = vsel %vm120_vm0, %v646_v27, 0.0  ;;  %v647_v38 = vmul.f32 %v1937_v1, %v1937_v1 }
 0x1a9   :  { %679 = vadd.xlane.f32.xlu0 %v678_v37  ;;  %v595_v39 = vpop.xlane.xlu0 %594  ;;  %676 = vadd.xlane.f32.xlu1 %v675_v11  ;;  %v768_v25 = vsub.s32 1, %v1793_v23 }
 0x1aa   :  { %v1949_v13 = vsub.f32 %v1860_v17, %v617_v35  ;;  %v618_v41 = vmul.f32 0.03125, %v595_v39  ;;  %v648_v42 = vmul.f32 %v1943_v32, %v1943_v32  ;;  %v681_v14 = vsel %vm120_vm0, %v647_v38, 0.0 }
 0x1ab   :  { %v598_v44 = vpop.xlane.xlu1 %597 }
 0x1ac   :  { %v1955_v30 = vsub.f32 %v1867_v31, %v618_v41  ;;  %v619_v49 = vmul.f32 0.03125, %v598_v44  ;;  %v684_v50 = vsel %vm120_vm0, %v648_v42, 0.0  ;;  %v649_v51 = vmul.f32 %v1949_v13, %v1949_v13 }
 0x1ad   :  { %685 = vadd.xlane.f32.xlu0 %v684_v50  ;;  %v601_v52 = vpop.xlane.xlu0 %600  ;;  %682 = vadd.xlane.f32.xlu1 %v681_v14  ;;  %v1992_v41 = vrot.slane %v1799_v28, %v768_v25  ;;  %v788_v42 = vsub.s32 2, %v1793_v23 }
 0x1ae   :  { %v1961_v17 = vsub.f32 %v1872_v33, %v619_v49  ;;  %v620_v55 = vmul.f32 0.03125, %v601_v52  ;;  %v650_v40 = vmul.f32 %v1955_v30, %v1955_v30  ;;  %v687_v31 = vsel %vm120_vm0, %v649_v51, 0.0 }
 0x1af   :  { %v604_v43 = vpop.xlane.xlu1 %603 }
 0x1b0   :  { %v1967_v56 = vsub.f32 %v1875_v34, %v620_v55  ;;  %v621_v57 = vmul.f32 0.03125, %v604_v43  ;;  %v690_v58 = vsel %vm120_vm0, %v650_v40, 0.0  ;;  %v651_v60 = vmul.f32 %v1961_v17, %v1961_v17 }
 0x1b1   :  { %691 = vadd.xlane.f32.xlu0 %v690_v58  ;;  %688 = vadd.xlane.f32.xlu1 %v687_v31  ;;  %v1999_v31 = vrot.slane %v1799_v28, %v788_v42 }
 0x1b2   :  { %v1973_v33 = vsub.f32 %v1880_v36, %v621_v57  ;;  %v652_v48 = vmul.f32 %v1967_v56, %v1967_v56  ;;  %v693_v0 = vsel %vm120_vm0, %v651_v60, 0.0  ;;  %v1487_v36 = vld [vmem:[%s2401_s7 + $0x8] sm:$0xff]  }
 0x1b3   :  { %1430 = vmatprep.subr.bf16.mxu1 %v1487_v36 }
 0x1b4   :  { %v696_v63 = vsel %vm120_vm0, %v652_v48, 0.0  ;;  %v653_v34 = vmul.f32 %v1973_v33, %v1973_v33  ;;  %1431 = vmatpush3.bf16.msra.mxu1 %v1487_v36 }
 0x1b5   :  { %697 = vadd.xlane.f32.xlu0 %v696_v63  ;;  %694 = vadd.xlane.f32.xlu1 %v693_v0 }
 0x1b6   :  { %v699_v4 = vsel %vm120_vm0, %v653_v34, 0.0 }
 0x1b9   :  { %700 = vadd.xlane.f32.xlu1 %v699_v4 }
 0x226   :  { %v656_v5 = vpop.xlane.xlu0 %655 }
 0x227   :  { %v702_v6 = vmul.f32 0.03125, %v656_v5 }
 0x229   :  { %v718_v7 = vadd.f32 1e-05, %v702_v6 }
 0x22a   :  { %v662_v8 = vpop.xlane.xlu0 %661  ;;  %v659_v9 = vpop.xlane.xlu1 %658 }
 0x22b   :  { %1488 = vrsqrt.f32 %v718_v7  ;;  %v704_v10 = vmul.f32 0.03125, %v662_v8  ;;  %v703_v12 = vmul.f32 0.03125, %v659_v9 }
 0x22d   :  { %v720_v15 = vadd.f32 1e-05, %v704_v10  ;;  %v719_v16 = vadd.f32 1e-05, %v703_v12 }
 0x22e   :  { %v668_v18 = vpop.xlane.xlu0 %667  ;;  %v665_v62 = vpop.xlane.xlu1 %664 }
 0x22f   :  { %1490 = vrsqrt.f32 %v720_v15  ;;  %v706_v20 = vmul.f32 0.03125, %v668_v18  ;;  %v705_v21 = vmul.f32 0.03125, %v665_v62 }
 0x230   :  { %1492 = vrsqrt.f32 %v719_v16 }
 0x231   :  { %v722_v22 = vadd.f32 1e-05, %v706_v20  ;;  %v721_v24 = vadd.f32 1e-05, %v705_v21 }
 0x232   :  { %v674_v27 = vpop.xlane.xlu0 %673  ;;  %v671_v29 = vpop.xlane.xlu1 %670 }
 0x233   :  { %1494 = vrsqrt.f32 %v722_v22  ;;  %v708_v11 = vmul.f32 0.03125, %v674_v27  ;;  %v707_v35 = vmul.f32 0.03125, %v671_v29 }
 0x234   :  { %1496 = vrsqrt.f32 %v721_v24 }
 0x235   :  { %v1489_v37 = vpop.eup %1488  ;;  %v724_v38 = vadd.f32 1e-05, %v708_v11  ;;  %v723_v39 = vadd.f32 1e-05, %v707_v35 }
 0x236   :  { %v750_v44 = vmul.f32 %v1489_v37, %v1890_v47  ;;  %v680_v14 = vpop.xlane.xlu0 %679  ;;  %v677_v49 = vpop.xlane.xlu1 %676 }
 0x237   :  { %1498 = vrsqrt.f32 %v724_v38  ;;  %v710_v50 = vmul.f32 0.03125, %v680_v14  ;;  %v709_v51 = vmul.f32 0.03125, %v677_v49 }
 0x238   :  { %1500 = vrsqrt.f32 %v723_v39  ;;  %v770_v47 = vmul.f32 %v1992_v41, %v750_v44 }
 0x239   :  { %v1491_v52 = vpop.eup %1490  ;;  %v726_v55 = vadd.f32 1e-05, %v710_v50  ;;  %v725_v40 = vadd.f32 1e-05, %v709_v51 }
 0x23a   :  { %v1493_v43 = vpop.eup %1492  ;;  %v752_v57 = vmul.f32 %v1491_v52, %v1887_v45  ;;  %v686_v58 = vpop.xlane.xlu0 %685  ;;  %v790_v8 = vadd.f32 %v1999_v31, %v770_v47 }
 0x23b   :  { %v683_v60 = vpop.xlane.xlu1 %682  ;;  %v751_v48 = vmul.f32 %v1493_v43, %v1898_v54  ;;  %1502 = vrsqrt.f32 %v726_v55  ;;  %v712_v63 = vmul.f32 0.03125, %v686_v58 }
 0x23c   :  { %v711_v0 = vmul.f32 0.03125, %v683_v60  ;;  %v772_v34 = vmul.f32 %v1992_v41, %v752_v57  ;;  %1504 = vrsqrt.f32 %v725_v40  ;;  %v806_v27 = vmax.f32 %v790_v8, 0.0 }
 0x23d   :  { %v1495_v2 = vpop.eup %1494  ;;  %v728_v4 = vadd.f32 1e-05, %v712_v63  ;;  %v771_v28 = vmul.f32 %v1992_v41, %v751_v48 }
 0x23e   :  { %v727_v36 = vadd.f32 1e-05, %v711_v0  ;;  %v1497_v5 = vpop.eup %1496  ;;  %v754_v45 = vmul.f32 %v1495_v2, %v1908_v46  ;;  %v692_v6 = vpop.xlane.xlu0 %691  ;;  %v792_v12 = vadd.f32 %v1999_v31, %v772_v34 }
 0x23f   :  { %v689_v7 = vpop.xlane.xlu1 %688  ;;  %v753_v54 = vmul.f32 %v1497_v5, %v1895_v53  ;;  %1506 = vrsqrt.f32 %v728_v4  ;;  %v714_v9 = vmul.f32 0.03125, %v692_v6  ;;  %v791_v15 = vadd.f32 %v1999_v31, %v771_v28 }
 0x240   :  { %v713_v10 = vmul.f32 0.03125, %v689_v7  ;;  %1508 = vrsqrt.f32 %v727_v36  ;;  %v774_v29 = vmul.f32 %v1992_v41, %v754_v45  ;;  %v808_v38 = vmax.f32 %v792_v12, 0.0 }
 0x241   :  { %v1499_v16 = vpop.eup %1498  ;;  %v773_v18 = vmul.f32 %v1992_v41, %v753_v54  ;;  %v730_v62 = vadd.f32 1e-05, %v714_v9  ;;  %v807_v53 = vmax.f32 %v791_v15, 0.0 }
 0x242   :  { %v729_v20 = vadd.f32 1e-05, %v713_v10  ;;  %v1501_v46 = vpop.eup %1500  ;;  %v756_v21 = vmul.f32 %v1499_v16, %v1919_v59  ;;  %v698_v22 = vpop.xlane.xlu0 %697  ;;  %v794_v43 = vadd.f32 %v1999_v31, %v774_v29 }
 0x243   :  { %v695_v24 = vpop.xlane.xlu1 %694  ;;  %v793_v11 = vadd.f32 %v1999_v31, %v773_v18  ;;  %v755_v35 = vmul.f32 %v1501_v46, %v1913_v3  ;;  %1510 = vrsqrt.f32 %v730_v62  ;;  %v716_v37 = vmul.f32 0.03125, %v698_v22 }
 0x244   :  { %1512 = vrsqrt.f32 %v729_v20  ;;  %v715_v39 = vmul.f32 0.03125, %v695_v24  ;;  %v826_v44 = vpack.c.bf16 %v807_v53, %v806_v27  ;;  %v776_v51 = vmul.f32 %v1992_v41, %v756_v21 }
 0x245   :  { %v1503_v14 = vpop.eup %1502  ;;  %v809_v49 = vmax.f32 %v793_v11, 0.0  ;;  %v732_v50 = vadd.f32 1e-05, %v716_v37  ;;  %v775_v59 = vmul.f32 %v1992_v41, %v755_v35 }
 0x246   :  { %v1505_v52 = vpop.eup %1504  ;;  %v758_v55 = vmul.f32 %v1503_v14, %v1931_v19  ;;  %v731_v40 = vadd.f32 1e-05, %v715_v39  ;;  %1432 = vmatprep.mubr.msk.bf16.mxu1 %vm120_vm0, %v826_v44  ;;  %v796_v34 = vadd.f32 %v1999_v31, %v776_v51 }
 0x247   :  { %v701_v3 = vpop.xlane.xlu1 %700  ;;  %v757_v57 = vmul.f32 %v1505_v52, %v1925_v61  ;;  %1514 = vrsqrt.f32 %v732_v50  ;;  %v827_v60 = vpack.c.bf16 %v809_v49, %v808_v38  ;;  %v795_v47 = vadd.f32 %v1999_v31, %v775_v59 }
 0x248   :  { %v717_v58 = vmul.f32 0.03125, %v701_v3  ;;  %1516 = vrsqrt.f32 %v731_v40  ;;  %v778_v48 = vmul.f32 %v1992_v41, %v758_v55  ;;  %v810_v61 = vmax.f32 %v794_v43, 0.0 }
 0x249   :  { %v1507_v63 = vpop.eup %1506  ;;  %1433 = vmatmul.mubr.msk.bf16.vlgmr.msra.gmra.mrb[16].mxu1 %vm120_vm0, %v827_v60  ;;  %v777_v19 = vmul.f32 %v1992_v41, %v757_v57  ;;  %v811_v36 = vmax.f32 %v795_v47, 0.0  ;;  %v812_v8 = vmax.f32 %v796_v34, 0.0 }
 0x24a   :  { %v733_v0 = vadd.f32 1e-05, %v717_v58  ;;  %v1509_v2 = vpop.eup %1508  ;;  %v760_v4 = vmul.f32 %v1507_v63, %v1943_v32  ;;  %v798_v6 = vadd.f32 %v1999_v31, %v778_v48 }
 0x24b   :  { %v759_v28 = vmul.f32 %v1509_v2, %v1937_v1  ;;  %v797_v5 = vadd.f32 %v1999_v31, %v777_v19  ;;  %v828_v45 = vpack.c.bf16 %v811_v36, %v810_v61 }
 0x24c   :  { %1518 = vrsqrt.f32 %v733_v0  ;;  %v780_v10 = vmul.f32 %v1992_v41, %v760_v4  ;;  %v814_v18 = vmax.f32 %v798_v6, 0.0 }
 0x24d   :  { %v1511_v7 = vpop.eup %1510  ;;  %v813_v54 = vmax.f32 %v797_v5, 0.0  ;;  %v779_v9 = vmul.f32 %v1992_v41, %v759_v28  ;;  %1436 = vmatprep.mubr.msk.bf16.mxu1 %vm120_vm0, %v828_v45 }
 0x24e   :  { %v1513_v12 = vpop.eup %1512  ;;  %v762_v32 = vmul.f32 %v1511_v7, %v1955_v30  ;;  %v800_v21 = vadd.f32 %v1999_v31, %v780_v10 }
 0x24f   :  { %v761_v1 = vmul.f32 %v1513_v12, %v1949_v13  ;;  %v829_v15 = vpack.c.bf16 %v813_v54, %v812_v8  ;;  %v799_v16 = vadd.f32 %v1999_v31, %v779_v9 }
 0x250   :  { %v782_v22 = vmul.f32 %v1992_v41, %v762_v32  ;;  %v816_v35 = vmax.f32 %v800_v21, 0.0 }
 0x251   :  { %v1515_v62 = vpop.eup %1514  ;;  %1437 = vmatmul.mubr.msk.bf16.gmra.mrb[20].mxu1 %vm120_vm0, %v829_v15  ;;  %v815_v20 = vmax.f32 %v799_v16, 0.0  ;;  %v781_v46 = vmul.f32 %v1992_v41, %v761_v1 }
 0x252   :  { %v1517_v24 = vpop.eup %1516  ;;  %v764_v30 = vmul.f32 %v1515_v62, %v1967_v56  ;;  %v802_v39 = vadd.f32 %v1999_v31, %v782_v22 }
 0x253   :  { %v763_v27 = vmul.f32 %v1517_v24, %v1961_v17  ;;  %v830_v13 = vpack.c.bf16 %v815_v20, %v814_v18  ;;  %v801_v53 = vadd.f32 %v1999_v31, %v781_v46 }
 0x254   :  { %v784_v29 = vmul.f32 %v1992_v41, %v764_v30  ;;  %v818_v50 = vmax.f32 %v802_v39, 0.0 }
 0x255   :  { %1440 = vmatprep.mubr.msk.bf16.mxu1 %vm120_vm0, %v830_v13  ;;  %v817_v37 = vmax.f32 %v801_v53, 0.0  ;;  %v783_v38 = vmul.f32 %v1992_v41, %v763_v27 }
 0x256   :  { %v1519_v11 = vpop.eup %1518  ;;  %v804_v49 = vadd.f32 %v1999_v31, %v784_v29 }
 0x257   :  { %v765_v44 = vmul.f32 %v1519_v11, %v1973_v33  ;;  %v831_v14 = vpack.c.bf16 %v817_v37, %v816_v35  ;;  %v803_v56 = vadd.f32 %v1999_v31, %v783_v38  ;;  %v2059_v33 = vld [vmem:[%s2402_s8] sm:$0x7] }
 0x258   :  { %v820_v55 = vmax.f32 %v804_v49, 0.0 }
 0x259   :  { %v785_v17 = vmul.f32 %v1992_v41, %v765_v44  ;;  %1441 = vmatmul.mubr.msk.bf16.gmra.mrb[24].mxu1 %vm120_vm0, %v831_v14  ;;  %v819_v59 = vmax.f32 %v803_v56, 0.0  ;;  %v838_v41 = vrot.slane %v2059_v33, %v539_v26 }
 0x25b   :  { %v805_v51 = vadd.f32 %v1999_v31, %v785_v17  ;;  %v832_v52 = vpack.c.bf16 %v819_v59, %v818_v50 }
 0x25d   :  { %v821_v40 = vmax.f32 %v805_v51, 0.0  ;;  %1444 = vmatprep.mubr.msk.bf16.mxu1 %vm120_vm0, %v832_v52 }
 0x25f   :  { %v833_v3 = vpack.c.bf16 %v821_v40, %v820_v55 }
 0x261   :  { %1445 = vmatmul.mubr.msk.bf16.gmra.mrb[28].mxu1 %vm120_vm0, %v833_v3 }
 0x31c   :  { %v1434_v43 = vpop.f32.mrb[16].mxu1 }
 0x31d   :  { %v2064_v57 = vadd.f32 %v1434_v43, %v838_v41  ;;  %v909_v31 = vpop.f32.mrb[17].mxu1 }
 0x31e   :  { %v1435_v58 = vpop.f32.mrb[18].mxu1  ;;  %v2066_v60 = vadd.f32 %v909_v31, %v838_v41 }
 0x31f   :  { %v2068_v47 = vadd.f32 %v1435_v58, %v838_v41  ;;  %v912_v48 = vpop.f32.mrb[19].mxu1  ;;  %v978_v63 = vsel %vm120_vm0, %v2064_v57, 0.0 }
 0x320   :  { %979 = vadd.xlane.f32.xlu0 %v978_v63  ;;  %v2072_v0 = vadd.f32 %v912_v48, %v838_v41  ;;  %v972_v26 = vsel %vm120_vm0, %v2066_v60, 0.0 }
 0x321   :  { %v981_v19 = vsel %vm120_vm0, %v2068_v47, 0.0 }
 0x322   :  { %982 = vadd.xlane.f32.xlu1 %v981_v19  ;;  %v975_v61 = vsel %vm120_vm0, %v2072_v0, 0.0 }
 0x324   :  { %973 = vadd.xlane.f32.xlu0 %v972_v26  ;;  %v1438_v34 = vpop.f32.mrb[20].mxu1 }
 0x325   :  { %v2078_v2 = vadd.f32 %v1438_v34, %v838_v41  ;;  %v925_v4 = vpop.f32.mrb[21].mxu1 }
 0x326   :  { %976 = vadd.xlane.f32.xlu1 %v975_v61  ;;  %v1439_v36 = vpop.f32.mrb[22].mxu1  ;;  %v2082_v28 = vadd.f32 %v925_v4, %v838_v41 }
 0x327   :  { %v2084_v5 = vadd.f32 %v1439_v36, %v838_v41  ;;  %v928_v45 = vpop.f32.mrb[23].mxu1  ;;  %v990_v6 = vsel %vm120_vm0, %v2078_v2, 0.0 }
 0x328   :  { %991 = vadd.xlane.f32.xlu0 %v990_v6  ;;  %v2088_v7 = vadd.f32 %v928_v45, %v838_v41  ;;  %v984_v54 = vsel %vm120_vm0, %v2082_v28, 0.0 }
 0x329   :  { %v993_v8 = vsel %vm120_vm0, %v2084_v5, 0.0 }
 0x32a   :  { %994 = vadd.xlane.f32.xlu1 %v993_v8  ;;  %v987_v32 = vsel %vm120_vm0, %v2088_v7, 0.0 }
 0x32c   :  { %985 = vadd.xlane.f32.xlu0 %v984_v54  ;;  %v1442_v9 = vpop.f32.mrb[24].mxu1 }
 0x32d   :  { %v2094_v10 = vadd.f32 %v1442_v9, %v838_v41  ;;  %v941_v12 = vpop.f32.mrb[25].mxu1 }
 0x32e   :  { %988 = vadd.xlane.f32.xlu1 %v987_v32  ;;  %v1443_v1 = vpop.f32.mrb[26].mxu1  ;;  %v2098_v15 = vadd.f32 %v941_v12, %v838_v41 }
 0x32f   :  { %v2100_v16 = vadd.f32 %v1443_v1, %v838_v41  ;;  %v944_v18 = vpop.f32.mrb[27].mxu1  ;;  %v1002_v62 = vsel %vm120_vm0, %v2094_v10, 0.0 }
 0x330   :  { %1003 = vadd.xlane.f32.xlu0 %v1002_v62  ;;  %v2104_v20 = vadd.f32 %v944_v18, %v838_v41  ;;  %v996_v21 = vsel %vm120_vm0, %v2098_v15, 0.0 }
 0x331   :  { %v1005_v46 = vsel %vm120_vm0, %v2100_v16, 0.0 }
 0x332   :  { %1006 = vadd.xlane.f32.xlu1 %v1005_v46  ;;  %v999_v30 = vsel %vm120_vm0, %v2104_v20, 0.0 }
 0x334   :  { %997 = vadd.xlane.f32.xlu0 %v996_v21  ;;  %v1446_v22 = vpop.f32.mrb[28].mxu1 }
 0x335   :  { %v957_v24 = vpop.f32.mrb[29].mxu1  ;;  %v2114_v29 = vadd.f32 %v1446_v22, %v838_v41 }
 0x336   :  { %v2112_v27 = vadd.f32 %v957_v24, %v838_v41  ;;  %1000 = vadd.xlane.f32.xlu1 %v999_v30  ;;  %v1447_v13 = vpop.f32.mrb[30].mxu1 }
 0x337   :  { %v960_v53 = vpop.f32.mrb[31].mxu1  ;;  %v2120_v37 = vadd.f32 %v1447_v13, %v838_v41  ;;  %v1014_v39 = vsel %vm120_vm0, %v2114_v29, 0.0 }
 0x338   :  { %v2116_v11 = vadd.f32 %v960_v53, %v838_v41  ;;  %v1008_v35 = vsel %vm120_vm0, %v2112_v27, 0.0 }
 0x339   :  { %1009 = vadd.xlane.f32.xlu0 %v1008_v35  ;;  %v1017_v44 = vsel %vm120_vm0, %v2120_v37, 0.0 }
 0x33a   :  { %v1011_v38 = vsel %vm120_vm0, %v2116_v11, 0.0 }
 0x33b   :  { %1012 = vadd.xlane.f32.xlu1 %v1011_v38 }
 0x33d   :  { %1015 = vadd.xlane.f32.xlu0 %v1014_v39 }
 0x33f   :  { %1018 = vadd.xlane.f32.xlu1 %v1017_v44 }
 0x3ad   :  { %v980_v14 = vpop.xlane.xlu0 %979 }
 0x3ae   :  { %v1022_v56 = vmul.f32 0.03125, %v980_v14 }
 0x3af   :  { %v983_v17 = vpop.xlane.xlu1 %982 }
 0x3b0   :  { %v2129_v49 = vsub.f32 %v2064_v57, %v1022_v56  ;;  %v1023_v50 = vmul.f32 0.03125, %v983_v17 }
 0x3b1   :  { %v974_v59 = vpop.xlane.xlu0 %973 }
 0x3b2   :  { %v2132_v51 = vsub.f32 %v2068_v47, %v1023_v50  ;;  %v1020_v52 = vmul.f32 0.03125, %v974_v59  ;;  %v1054_v55 = vmul.f32 %v2129_v49, %v2129_v49 }
 0x3b3   :  { %v977_v40 = vpop.xlane.xlu1 %976 }
 0x3b4   :  { %v2137_v3 = vsub.f32 %v2066_v60, %v1020_v52  ;;  %v1021_v41 = vmul.f32 0.03125, %v977_v40  ;;  %v1074_v43 = vsel %vm120_vm0, %v1054_v55, 0.0  ;;  %v1055_v57 = vmul.f32 %v2132_v51, %v2132_v51 }
 0x3b5   :  { %v992_v31 = vpop.xlane.xlu0 %991  ;;  %1075 = vadd.xlane.f32.xlu0 %v1074_v43 }
 0x3b6   :  { %v2143_v58 = vsub.f32 %v2072_v0, %v1021_v41  ;;  %v1026_v47 = vmul.f32 0.03125, %v992_v31  ;;  %v1077_v48 = vsel %vm120_vm0, %v1055_v57, 0.0  ;;  %v1052_v63 = vmul.f32 %v2137_v3, %v2137_v3 }
 0x3b7   :  { %1078 = vadd.xlane.f32.xlu1 %v1077_v48  ;;  %v995_v60 = vpop.xlane.xlu1 %994 }
 0x3b8   :  { %v2149_v19 = vsub.f32 %v2078_v2, %v1026_v47  ;;  %v1027_v26 = vmul.f32 0.03125, %v995_v60  ;;  %v1068_v34 = vsel %vm120_vm0, %v1052_v63, 0.0  ;;  %v1053_v4 = vmul.f32 %v2143_v58, %v2143_v58 }
 0x3b9   :  { %v986_v61 = vpop.xlane.xlu0 %985  ;;  %1069 = vadd.xlane.f32.xlu0 %v1068_v34 }
 0x3ba   :  { %v2155_v0 = vsub.f32 %v2084_v5, %v1027_v26  ;;  %v1024_v36 = vmul.f32 0.03125, %v986_v61  ;;  %v1071_v45 = vsel %vm120_vm0, %v1053_v4, 0.0  ;;  %v1058_v6 = vmul.f32 %v2149_v19, %v2149_v19 }
 0x3bb   :  { %1072 = vadd.xlane.f32.xlu1 %v1071_v45  ;;  %v989_v2 = vpop.xlane.xlu1 %988 }
 0x3bc   :  { %v2161_v8 = vsub.f32 %v2082_v28, %v1024_v36  ;;  %v1025_v54 = vmul.f32 0.03125, %v989_v2  ;;  %v1086_v9 = vsel %vm120_vm0, %v1058_v6, 0.0  ;;  %v1059_v12 = vmul.f32 %v2155_v0, %v2155_v0 }
 0x3bd   :  { %v1004_v32 = vpop.xlane.xlu0 %1003  ;;  %1087 = vadd.xlane.f32.xlu0 %v1086_v9 }
 0x3be   :  { %v2167_v5 = vsub.f32 %v2088_v7, %v1025_v54  ;;  %v1030_v1 = vmul.f32 0.03125, %v1004_v32  ;;  %v1089_v18 = vsel %vm120_vm0, %v1059_v12, 0.0  ;;  %v1056_v62 = vmul.f32 %v2161_v8, %v2161_v8 }
 0x3bf   :  { %1090 = vadd.xlane.f32.xlu1 %v1089_v18  ;;  %v1007_v28 = vpop.xlane.xlu1 %1006 }
 0x3c0   :  { %v2173_v46 = vsub.f32 %v2094_v10, %v1030_v1  ;;  %v1031_v21 = vmul.f32 0.03125, %v1007_v28  ;;  %v1080_v22 = vsel %vm120_vm0, %v1056_v62, 0.0  ;;  %v1057_v24 = vmul.f32 %v2167_v5, %v2167_v5 }
 0x3c1   :  { %v998_v30 = vpop.xlane.xlu0 %997  ;;  %1081 = vadd.xlane.f32.xlu0 %v1080_v22 }
 0x3c2   :  { %v2179_v7 = vsub.f32 %v2100_v16, %v1031_v21  ;;  %v1028_v13 = vmul.f32 0.03125, %v998_v30  ;;  %v1083_v53 = vsel %vm120_vm0, %v1057_v24, 0.0  ;;  %v1062_v35 = vmul.f32 %v2173_v46, %v2173_v46 }
 0x3c3   :  { %1084 = vadd.xlane.f32.xlu1 %v1083_v53  ;;  %v1001_v10 = vpop.xlane.xlu1 %1000 }
 0x3c4   :  { %v2185_v38 = vsub.f32 %v2098_v15, %v1028_v13  ;;  %v1029_v39 = vmul.f32 0.03125, %v1001_v10  ;;  %v1098_v44 = vsel %vm120_vm0, %v1062_v35, 0.0  ;;  %v1063_v14 = vmul.f32 %v2179_v7, %v2179_v7 }
 0x3c5   :  { %1099 = vadd.xlane.f32.xlu0 %v1098_v44 }
 0x3c6   :  { %v2191_v16 = vsub.f32 %v2104_v20, %v1029_v39  ;;  %v1010_v56 = vpop.xlane.xlu0 %1009  ;;  %v1101_v17 = vsel %vm120_vm0, %v1063_v14, 0.0  ;;  %v1060_v50 = vmul.f32 %v2185_v38, %v2185_v38  ;;  %v2227_v39 = vrot.slane %v2059_v33, %v768_v25 }
 0x3c7   :  { %v1032_v59 = vmul.f32 0.03125, %v1010_v56  ;;  %1102 = vadd.xlane.f32.xlu1 %v1101_v17 }
 0x3c8   :  { %v1013_v15 = vpop.xlane.xlu1 %1012  ;;  %v1092_v52 = vsel %vm120_vm0, %v1060_v50, 0.0  ;;  %v1061_v55 = vmul.f32 %v2191_v16, %v2191_v16  ;;  %v2232_v50 = vrot.slane %v2059_v33, %v788_v42 }
 0x3c9   :  { %v2200_v40 = vsub.f32 %v2112_v27, %v1032_v59  ;;  %v1033_v41 = vmul.f32 0.03125, %v1013_v15  ;;  %1093 = vadd.xlane.f32.xlu0 %v1092_v52 }
 0x3ca   :  { %v1016_v20 = vpop.xlane.xlu0 %1015  ;;  %v1095_v43 = vsel %vm120_vm0, %v1061_v55, 0.0 }
 0x3cb   :  { %v2204_v57 = vsub.f32 %v2116_v11, %v1033_v41  ;;  %v1034_v31 = vmul.f32 0.03125, %v1016_v20  ;;  %1096 = vadd.xlane.f32.xlu1 %v1095_v43  ;;  %v1064_v47 = vmul.f32 %v2200_v40, %v2200_v40 }
 0x3cc   :  { %v1019_v48 = vpop.xlane.xlu1 %1018 }
 0x3cd   :  { %v2209_v63 = vsub.f32 %v2114_v29, %v1034_v31  ;;  %v1035_v60 = vmul.f32 0.03125, %v1019_v48  ;;  %v1104_v27 = vsel %vm120_vm0, %v1064_v47, 0.0  ;;  %v1065_v26 = vmul.f32 %v2204_v57, %v2204_v57 }
 0x3ce   :  { %1105 = vadd.xlane.f32.xlu0 %v1104_v27  ;;  %v1238_v27 = vld [vmem:[%s2403_s9 + $0x10] sm:$0xff] }
 0x3cf   :  { %v2215_v34 = vsub.f32 %v2120_v37, %v1035_v60  ;;  %v1107_v11 = vsel %vm120_vm0, %v1065_v26, 0.0  ;;  %v1066_v4 = vmul.f32 %v2209_v63, %v2209_v63 }
 0x3d0   :  { %1108 = vadd.xlane.f32.xlu1 %v1107_v11 }
 0x3d1   :  { %v1110_v61 = vsel %vm120_vm0, %v1066_v4, 0.0  ;;  %v1067_v29 = vmul.f32 %v2215_v34, %v2215_v34 }
 0x3d2   :  { %1111 = vadd.xlane.f32.xlu0 %v1110_v61 }
 0x3d3   :  { %v1113_v36 = vsel %vm120_vm0, %v1067_v29, 0.0 }
 0x3d4   :  { %1114 = vadd.xlane.f32.xlu1 %v1113_v36 }
 0x442   :  { %v1076_v45 = vpop.xlane.xlu0 %1075 }
 0x443   :  { %v1118_v6 = vmul.f32 0.03125, %v1076_v45 }
 0x444   :  { %v1079_v2 = vpop.xlane.xlu1 %1078 }
 0x445   :  { %v1134_v37 = vadd.f32 1e-05, %v1118_v6  ;;  %v1119_v54 = vmul.f32 0.03125, %v1079_v2 }
 0x446   :  { %v1070_v9 = vpop.xlane.xlu0 %1069 }
 0x447   :  { %1520 = vrsqrt.f32 %v1134_v37  ;;  %v1135_v12 = vadd.f32 1e-05, %v1119_v54  ;;  %v1116_v32 = vmul.f32 0.03125, %v1070_v9 }
 0x448   :  { %v1073_v1 = vpop.xlane.xlu1 %1072 }
 0x449   :  { %1522 = vrsqrt.f32 %v1135_v12  ;;  %v1132_v18 = vadd.f32 1e-05, %v1116_v32  ;;  %v1117_v62 = vmul.f32 0.03125, %v1073_v1 }
 0x44a   :  { %v1088_v28 = vpop.xlane.xlu0 %1087 }
 0x44b   :  { %1524 = vrsqrt.f32 %v1132_v18  ;;  %v1133_v21 = vadd.f32 1e-05, %v1117_v62  ;;  %v1122_v22 = vmul.f32 0.03125, %v1088_v28 }
 0x44c   :  { %v1091_v24 = vpop.xlane.xlu1 %1090 }
 0x44d   :  { %1526 = vrsqrt.f32 %v1133_v21  ;;  %v1138_v30 = vadd.f32 1e-05, %v1122_v22  ;;  %v1123_v13 = vmul.f32 0.03125, %v1091_v24 }
 0x44e   :  { %v1082_v53 = vpop.xlane.xlu0 %1081 }
 0x44f   :  { %1528 = vrsqrt.f32 %v1138_v30  ;;  %v1139_v35 = vadd.f32 1e-05, %v1123_v13  ;;  %v1120_v10 = vmul.f32 0.03125, %v1082_v53  ;;  %v1237_v13 = vld [vmem:[%s2403_s9 + $0x8] sm:$0xff] }
 0x450   :  { %v1085_v44 = vpop.xlane.xlu1 %1084 }
 0x451   :  { %v1521_v14 = vpop.eup %1520  ;;  %1530 = vrsqrt.f32 %v1139_v35  ;;  %v1136_v56 = vadd.f32 1e-05, %v1120_v10  ;;  %v1121_v17 = vmul.f32 0.03125, %v1085_v44 }
 0x452   :  { %v1166_v59 = vmul.f32 %v1521_v14, %v2129_v49  ;;  %v1100_v15 = vpop.xlane.xlu0 %1099 }
 0x453   :  { %v1523_v52 = vpop.eup %1522  ;;  %1532 = vrsqrt.f32 %v1136_v56  ;;  %v1137_v55 = vadd.f32 1e-05, %v1121_v17  ;;  %v1126_v41 = vmul.f32 0.03125, %v1100_v15 }
 0x454   :  { %v1186_v25 = vmul.f32 %v2227_v39, %v1166_v59  ;;  %v1167_v20 = vmul.f32 %v1523_v52, %v2132_v51  ;;  %v1103_v43 = vpop.xlane.xlu1 %1102 }
 0x455   :  { %v1525_v31 = vpop.eup %1524  ;;  %1534 = vrsqrt.f32 %v1137_v55  ;;  %v1142_v47 = vadd.f32 1e-05, %v1126_v41  ;;  %v1127_v48 = vmul.f32 0.03125, %v1103_v43  ;;  %v1242_v41 = vld [vmem:[%s2403_s9 + $0x30] sm:$0xff] }
 0x456   :  { %v1206_v23 = vadd.f32 %v2232_v50, %v1186_v25  ;;  %v1187_v42 = vmul.f32 %v2227_v39, %v1167_v20  ;;  %v1164_v33 = vmul.f32 %v1525_v31, %v2137_v3  ;;  %v1094_v49 = vpop.xlane.xlu0 %1093  ;;  %v1239_v3 = vld [vmem:[%s2403_s9 + $0x18] sm:$0xff] }
 0x457   :  { %v1527_v60 = vpop.eup %1526  ;;  %1536 = vrsqrt.f32 %v1142_v47  ;;  %v1143_v26 = vadd.f32 1e-05, %v1127_v48  ;;  %v1124_v51 = vmul.f32 0.03125, %v1094_v49  ;;  %v1243_v47 = vld [vmem:[%s2403_s9 + $0x38] sm:$0xff] }
 0x458   :  { %v1222_v11 = vmax.f32 %v1206_v23, 0.0  ;;  %v1207_v4 = vadd.f32 %v2232_v50, %v1187_v42  ;;  %v1184_v61 = vmul.f32 %v2227_v39, %v1164_v33  ;;  %v1165_v29 = vmul.f32 %v1527_v60, %v2143_v58  ;;  %v1097_v36 = vpop.xlane.xlu1 %1096  ;;  %v1236_v58 = vld [vmem:[%s2403_s9] sm:$0xff] }
 0x459   :  { %v1529_v45 = vpop.eup %1528  ;;  %1538 = vrsqrt.f32 %v1143_v26  ;;  %v1140_v6 = vadd.f32 1e-05, %v1124_v51  ;;  %v1125_v2 = vmul.f32 0.03125, %v1097_v36  ;;  %v1240_v51 = vld [vmem:[%s2403_s9 + $0x20] sm:$0xff] }
 0x45a   :  { %v1254_v37 = vadd.f32 %v1238_v27, %v1222_v11  ;;  %v1223_v54 = vmax.f32 %v1207_v4, 0.0  ;;  %v1204_v9 = vadd.f32 %v2232_v50, %v1184_v61  ;;  %v1185_v12 = vmul.f32 %v2227_v39, %v1165_v29 }
 0x45b   :  { %v1531_v32 = vpop.eup %1530  ;;  %v1170_v1 = vmul.f32 %v1529_v45, %v2149_v19  ;;  %1540 = vrsqrt.f32 %v1140_v6  ;;  %v1141_v18 = vadd.f32 1e-05, %v1125_v2  ;;  %v1106_v62 = vpop.xlane.xlu0 %1105 }
 0x45c   :  { %1270 = vst.msk [vmem:[%s2404_s10 + $0x10] sm:$0xff] %vm120_vm0, %v1254_v37  ;;  %v1255_v28 = vadd.f32 %v1239_v3, %v1223_v54  ;;  %v1220_v21 = vmax.f32 %v1204_v9, 0.0  ;;  %v1205_v22 = vadd.f32 %v2232_v50, %v1185_v12  ;;  %v1171_v24 = vmul.f32 %v1531_v32, %v2155_v0 }
 0x45d   :  { %v1533_v30 = vpop.eup %1532  ;;  %v1190_v19 = vmul.f32 %v2227_v39, %v1170_v1  ;;  %1542 = vrsqrt.f32 %v1141_v18  ;;  %v1128_v53 = vmul.f32 0.03125, %v1106_v62  ;;  %v1109_v35 = vpop.xlane.xlu1 %1108 }
 0x45e   :  { %1271 = vst.msk [vmem:[%s2404_s10 + $0x18] sm:$0xff] %vm120_vm0, %v1255_v28  ;;  %v1252_v10 = vadd.f32 %v1236_v58, %v1220_v21  ;;  %v1221_v44 = vmax.f32 %v1205_v22, 0.0  ;;  %v1191_v14 = vmul.f32 %v2227_v39, %v1171_v24  ;;  %v1168_v0 = vmul.f32 %v1533_v30, %v2161_v8  ;;  %v1246_v58 = vld [vmem:[%s2403_s9 + $0x50] sm:$0xff]  ;;  %v1247_v22 = vld [vmem:[%s2403_s9 + $0x58] sm:$0xff] }
 0x45f   :  { %v1535_v56 = vpop.eup %1534  ;;  %v1210_v17 = vadd.f32 %v2232_v50, %v1190_v19  ;;  %v1144_v59 = vadd.f32 1e-05, %v1128_v53  ;;  %v1129_v15 = vmul.f32 0.03125, %v1109_v35  ;;  %v1112_v52 = vpop.xlane.xlu0 %1111 }
 0x460   :  { %1268 = vst.msk [vmem:[%s2404_s10] sm:$0xff] %vm120_vm0, %v1252_v10  ;;  %v1253_v55 = vadd.f32 %v1237_v13, %v1221_v44  ;;  %v1211_v25 = vadd.f32 %v2232_v50, %v1191_v14  ;;  %v1188_v8 = vmul.f32 %v2227_v39, %v1168_v0  ;;  %v1169_v20 = vmul.f32 %v1535_v56, %v2167_v5  ;;  %v1245_v0 = vld [vmem:[%s2403_s9 + $0x48] sm:$0xff] }
 0x461   :  { %v1537_v43 = vpop.eup %1536  ;;  %v1226_v31 = vmax.f32 %v1210_v17, 0.0  ;;  %1544 = vrsqrt.f32 %v1144_v59  ;;  %v1145_v48 = vadd.f32 1e-05, %v1129_v15  ;;  %v1130_v23 = vmul.f32 0.03125, %v1112_v52  ;;  %v1115_v42 = vpop.xlane.xlu1 %1114 }
 0x462   :  { %1269 = vst.msk [vmem:[%s2404_s10 + $0x8] sm:$0xff] %vm120_vm0, %v1253_v55  ;;  %v1227_v33 = vmax.f32 %v1211_v25, 0.0  ;;  %v1208_v49 = vadd.f32 %v2232_v50, %v1188_v8  ;;  %v1189_v5 = vmul.f32 %v2227_v39, %v1169_v20  ;;  %v1174_v60 = vmul.f32 %v1537_v43, %v2173_v46  ;;  %v1241_v46 = vld [vmem:[%s2403_s9 + $0x28] sm:$0xff] }
 0x463   :  { %v1539_v27 = vpop.eup %1538  ;;  %v1258_v26 = vadd.f32 %v1242_v41, %v1226_v31  ;;  %1546 = vrsqrt.f32 %v1145_v48  ;;  %v1146_v11 = vadd.f32 1e-05, %v1130_v23  ;;  %v1131_v4 = vmul.f32 0.03125, %v1115_v42 }
 0x464   :  { %v1259_v61 = vadd.f32 %v1243_v47, %v1227_v33  ;;  %v1224_v29 = vmax.f32 %v1208_v49, 0.0  ;;  %v1209_v36 = vadd.f32 %v2232_v50, %v1189_v5  ;;  %v1194_v45 = vmul.f32 %v2227_v39, %v1174_v60  ;;  %v1250_v49 = vld [vmem:[%s2403_s9 + $0x70] sm:$0xff] }
 0x465   :  { %v1541_v3 = vpop.eup %1540  ;;  %1274 = vst.msk [vmem:[%s2404_s10 + $0x30] sm:$0xff] %vm120_vm0, %v1258_v26  ;;  %v1175_v6 = vmul.f32 %v1539_v27, %v2179_v7  ;;  %1548 = vrsqrt.f32 %v1146_v11  ;;  %v1147_v2 = vadd.f32 1e-05, %v1131_v4  ;;  %v1251_v27 = vld [vmem:[%s2403_s9 + $0x78] sm:$0xff] }
 0x466   :  { %1275 = vst.msk [vmem:[%s2404_s10 + $0x38] sm:$0xff] %vm120_vm0, %v1259_v61  ;;  %v1256_v37 = vadd.f32 %v1240_v51, %v1224_v29  ;;  %v1225_v54 = vmax.f32 %v1209_v36, 0.0  ;;  %v1214_v9 = vadd.f32 %v2232_v50, %v1194_v45  ;;  %v1172_v12 = vmul.f32 %v1541_v3, %v2185_v38 }
 0x467   :  { %v1543_v32 = vpop.eup %1542  ;;  %v1195_v7 = vmul.f32 %v2227_v39, %v1175_v6  ;;  %1550 = vrsqrt.f32 %v1147_v2 }
 0x468   :  { %1272 = vst.msk [vmem:[%s2404_s10 + $0x20] sm:$0xff] %vm120_vm0, %v1256_v37  ;;  %v1257_v1 = vadd.f32 %v1241_v46, %v1225_v54  ;;  %v1230_v18 = vmax.f32 %v1214_v9, 0.0  ;;  %v1192_v62 = vmul.f32 %v2227_v39, %v1172_v12  ;;  %v1173_v28 = vmul.f32 %v1543_v32, %v2191_v16  ;;  %v1244_v16 = vld [vmem:[%s2403_s9 + $0x40] sm:$0xff] }
 0x469   :  { %v1215_v38 = vadd.f32 %v2232_v50, %v1195_v7 }
 0x46a   :  { %1273 = vst.msk [vmem:[%s2404_s10 + $0x28] sm:$0xff] %vm120_vm0, %v1257_v1  ;;  %v1262_v21 = vadd.f32 %v1246_v58, %v1230_v18  ;;  %v1212_v24 = vadd.f32 %v2232_v50, %v1192_v62  ;;  %v1193_v30 = vmul.f32 %v2227_v39, %v1173_v28 }
 0x46b   :  { %v1545_v13 = vpop.eup %1544  ;;  %v1231_v19 = vmax.f32 %v1215_v38, 0.0 }
 0x46c   :  { %1278 = vst.msk [vmem:[%s2404_s10 + $0x50] sm:$0xff] %vm120_vm0, %v1262_v21  ;;  %v1228_v53 = vmax.f32 %v1212_v24, 0.0  ;;  %v1213_v35 = vadd.f32 %v2232_v50, %v1193_v30  ;;  %v1176_v10 = vmul.f32 %v1545_v13, %v2200_v40 }
 0x46d   :  { %v1547_v44 = vpop.eup %1546  ;;  %v1263_v14 = vadd.f32 %v1247_v22, %v1231_v19 }
 0x46e   :  { %v1260_v56 = vadd.f32 %v1244_v16, %v1228_v53  ;;  %v1229_v17 = vmax.f32 %v1213_v35, 0.0  ;;  %v1196_v59 = vmul.f32 %v2227_v39, %v1176_v10  ;;  %v1177_v15 = vmul.f32 %v1547_v44, %v2204_v57  ;;  %v1248_v57 = vld [vmem:[%s2403_s9 + $0x60] sm:$0xff] }
 0x46f   :  { %v1549_v52 = vpop.eup %1548  ;;  %1279 = vst.msk [vmem:[%s2404_s10 + $0x58] sm:$0xff] %vm120_vm0, %v1263_v14 }
 0x470   :  { %1276 = vst.msk [vmem:[%s2404_s10 + $0x40] sm:$0xff] %vm120_vm0, %v1260_v56  ;;  %v1261_v40 = vadd.f32 %v1245_v0, %v1229_v17  ;;  %v1216_v55 = vadd.f32 %v2232_v50, %v1196_v59  ;;  %v1197_v41 = vmul.f32 %v2227_v39, %v1177_v15  ;;  %v1178_v25 = vmul.f32 %v1549_v52, %v2209_v63  ;;  %v1249_v63 = vld [vmem:[%s2403_s9 + $0x68] sm:$0xff] }
 0x471   :  { %v1551_v8 = vpop.eup %1550 }
 0x472   :  { %1277 = vst.msk [vmem:[%s2404_s10 + $0x48] sm:$0xff] %vm120_vm0, %v1261_v40  ;;  %v1232_v20 = vmax.f32 %v1216_v55, 0.0  ;;  %v1217_v43 = vadd.f32 %v2232_v50, %v1197_v41  ;;  %v1198_v31 = vmul.f32 %v2227_v39, %v1178_v25  ;;  %v1179_v47 = vmul.f32 %v1551_v8, %v2215_v34 }
 0x474   :  { %v1264_v48 = vadd.f32 %v1248_v57, %v1232_v20  ;;  %v1233_v23 = vmax.f32 %v1217_v43, 0.0  ;;  %v1218_v42 = vadd.f32 %v2232_v50, %v1198_v31  ;;  %v1199_v33 = vmul.f32 %v2227_v39, %v1179_v47 }
 0x476   :  { %1280 = vst.msk [vmem:[%s2404_s10 + $0x60] sm:$0xff] %vm120_vm0, %v1264_v48  ;;  %v1265_v34 = vadd.f32 %v1249_v63, %v1233_v23  ;;  %v1234_v5 = vmax.f32 %v1218_v42, 0.0  ;;  %v1219_v60 = vadd.f32 %v2232_v50, %v1199_v33 }
 0x478   :  { %1281 = vst.msk [vmem:[%s2404_s10 + $0x68] sm:$0xff] %vm120_vm0, %v1265_v34  ;;  %v1266_v39 = vadd.f32 %v1250_v49, %v1234_v5  ;;  %v1235_v26 = vmax.f32 %v1219_v60, 0.0 }
 0x47a   :  { %1282 = vst.msk [vmem:[%s2404_s10 + $0x70] sm:$0xff] %vm120_vm0, %v1266_v39  ;;  %v1267_v51 = vadd.f32 %v1251_v27, %v1235_v26 }
 0x47c   :  { %1283 = vst.msk [vmem:[%s2404_s10 + $0x78] sm:$0xff] %vm120_vm0, %v1267_v51 }

// kernel: _lambda_.13
= control target key start
LH: loop header
LB: loop body
LE: loop exit
PB: predicated region body
PF: predicated region fallthrough
CT: control target
= control target key end

     0   :  { %vm54_vm0 = vcmask 261120   ;;  %v38_v14 = vlaneseq  ;;  %vm379_vm1 = vcmask 130048   ;;  %s729_s1 = inlined_call_operand.vmem [shape: bf16[32,32], index: 1, kind: input, shape index: {}]   ;;  %s730_s0 = inlined_call_operand.vmem [shape: f32[64,32], index: 0, kind: input, shape index: {}]   ;;  %s731_s2 = inlined_call_operand.vmem [shape: f32[3,32], index: 2, kind: input, shape index: {}]   ;;  %s732_s3 = inlined_call_operand.vmem [shape: bf16[32,16], index: 3, kind: input, shape index: {}]   ;;  %s733_s4 = inlined_call_operand.vmem [shape: f32[3,16], index: 4, kind: input, shape index: {}]   ;;  %s734_s5 = inlined_call_operand.vmem [shape: f32[64,16], index: 5, kind: output, shape index: {}]  }
   0x1   :  { %v488_v0 = vld [vmem:[%s729_s1] sm:$0xff]   ;;  %v489_v1 = vld [vmem:[%s729_s1 + $0x8] sm:$0xff]   ;;  %v23_v5 = vld [vmem:[%s730_s0 + $0x10] sm:$0xff] }
   0x2   :  { %464 = vmatprep.subr.bf16.mxu0 %v488_v0  ;;  %v21_v2 = vld [vmem:[%s730_s0] sm:$0xff]  ;;  %v22_v3 = vld [vmem:[%s730_s0 + $0x8] sm:$0xff]  ;;  %v24_v6 = vld [vmem:[%s730_s0 + $0x18] sm:$0xff]  ;;  %v588_v15 = vshrl.u32 %v38_v14, 7 }
   0x3   :  { %465 = vmatpush3.bf16.msra.mxu0 %v488_v0  ;;  %v33_v4 = vpack.c.bf16 %v22_v3, %v21_v2  ;;  %v25_v7 = vld [vmem:[%s730_s0 + $0x20] sm:$0xff]  ;;  %v26_v8 = vld [vmem:[%s730_s0 + $0x28] sm:$0xff]  ;;  %v34_v9 = vpack.c.bf16 %v24_v6, %v23_v5  ;;  %v27_v11 = vld [vmem:[%s730_s0 + $0x30] sm:$0xff] }
   0x4   :  { %466 = vmatprep.subr.bf16.mxu0 %v489_v1  ;;  %v35_v10 = vpack.c.bf16 %v26_v8, %v25_v7  ;;  %v28_v12 = vld [vmem:[%s730_s0 + $0x38] sm:$0xff]  ;;  %v40_v16 = vsub.s32 0, %v588_v15  ;;  %v594_v17 = vld [vmem:[%s731_s2] sm:$0x7] }
   0x5   :  { %468 = vmatprep.mubr.msk.bf16.mxu0 %vm54_vm0, %v33_v4  ;;  %v36_v13 = vpack.c.bf16 %v28_v12, %v27_v11 }
   0x6   :  { %v41_v18 = vrot.slane %v594_v17, %v40_v16 }
   0x7   :  { %467 = vmatpush3.bf16.msra.mxu0 %v489_v1 }
   0xa   :  { %469 = vmatmul.mubr.msk.bf16.vlgmr.msra.gmra.mrb[0].mxu0 %vm54_vm0, %v34_v9 }
   0xb   :  { %472 = vmatprep.mubr.msk.bf16.mxu0 %vm54_vm0, %v35_v10 }
  0x12   :  { %473 = vmatmul.mubr.msk.bf16.gmra.mrb[4].mxu0 %vm54_vm0, %v36_v13 }
  0xdd   :  { %v470_v19 = vpop.f32.mrb[0].mxu0 }
  0xde   :  { %v110_v20 = vadd.f32 %v470_v19, %v41_v18  ;;  %v101_v21 = vpop.f32.mrb[1].mxu0 }
  0xdf   :  { %v102_v22 = vadd.f32 %v101_v21, %v41_v18  ;;  %v471_v23 = vpop.f32.mrb[2].mxu0 }
  0xe0   :  { %v113_v24 = vadd.f32 %v471_v23, %v41_v18  ;;  %v104_v25 = vpop.f32.mrb[3].mxu0  ;;  %v138_v26 = vsel %vm54_vm0, %v110_v20, 0.0  ;;  %v491_v23 = vld [vmem:[%s732_s3 + $0x8] sm:$0xff]  }
  0xe1   :  { %v105_v27 = vadd.f32 %v104_v25, %v41_v18  ;;  %139 = vadd.xlane.f32.xlu1 %v138_v26  ;;  %v132_v28 = vsel %vm54_vm0, %v102_v22, 0.0 }
  0xe2   :  { %133 = vadd.xlane.f32.xlu0 %v132_v28  ;;  %v141_v29 = vsel %vm54_vm0, %v113_v24, 0.0 }
  0xe3   :  { %v135_v31 = vsel %vm54_vm0, %v105_v27, 0.0 }
  0xe5   :  { %142 = vadd.xlane.f32.xlu1 %v141_v29  ;;  %v474_v30 = vpop.f32.mrb[4].mxu0 }
  0xe6   :  { %v117_v32 = vpop.f32.mrb[5].mxu0  ;;  %136 = vadd.xlane.f32.xlu0 %v135_v31  ;;  %v126_v36 = vadd.f32 %v474_v30, %v41_v18 }
  0xe7   :  { %v118_v33 = vadd.f32 %v117_v32, %v41_v18  ;;  %v475_v34 = vpop.f32.mrb[6].mxu0 }
  0xe8   :  { %v120_v35 = vpop.f32.mrb[7].mxu0  ;;  %v129_v39 = vadd.f32 %v475_v34, %v41_v18  ;;  %v150_v41 = vsel %vm54_vm0, %v126_v36, 0.0 }
  0xe9   :  { %v121_v37 = vadd.f32 %v120_v35, %v41_v18  ;;  %v144_v38 = vsel %vm54_vm0, %v118_v33, 0.0 }
  0xea   :  { %145 = vadd.xlane.f32.xlu0 %v144_v38  ;;  %v153_v42 = vsel %vm54_vm0, %v129_v39, 0.0 }
  0xeb   :  { %v147_v40 = vsel %vm54_vm0, %v121_v37, 0.0 }
  0xec   :  { %148 = vadd.xlane.f32.xlu1 %v147_v40 }
  0xee   :  { %151 = vadd.xlane.f32.xlu0 %v150_v41 }
  0xf0   :  { %154 = vadd.xlane.f32.xlu1 %v153_v42 }
 0x16e   :  { %v140_v43 = vpop.xlane.xlu1 %139 }
 0x16f   :  { %v159_v44 = vmul.f32 0.03125, %v140_v43  ;;  %v134_v45 = vpop.xlane.xlu0 %133 }
 0x170   :  { %v157_v46 = vmul.f32 0.03125, %v134_v45  ;;  %v251_v45 = vsub.s32 2, %v588_v15 }
 0x171   :  { %v607_v47 = vsub.f32 %v110_v20, %v159_v44 }
 0x172   :  { %v609_v48 = vsub.f32 %v102_v22, %v157_v46  ;;  %v143_v49 = vpop.xlane.xlu1 %142  ;;  %v490_v22 = vld [vmem:[%s732_s3] sm:$0xff]  }
 0x173   :  { %v160_v50 = vmul.f32 0.03125, %v143_v49  ;;  %v137_v51 = vpop.xlane.xlu0 %136  ;;  %v175_v57 = vmul.f32 %v607_v47, %v607_v47  ;;  %476 = vmatprep.subr.bf16.mxu1 %v490_v22 }
 0x174   :  { %v158_v52 = vmul.f32 0.03125, %v137_v51  ;;  %v173_v53 = vmul.f32 %v609_v48, %v609_v48  ;;  %477 = vmatpush3.bf16.msra.mxu1 %v490_v22 }
 0x175   :  { %v613_v54 = vsub.f32 %v113_v24, %v160_v50  ;;  %v187_v1 = vsel %vm54_vm0, %v175_v57, 0.0  ;;  %478 = vmatprep.subr.bf16.mxu1 %v491_v23  ;;  %v252_v57 = vrot.slane %v594_v17, %v251_v45 }
 0x176   :  { %v615_v55 = vsub.f32 %v105_v27, %v158_v52  ;;  %v181_v56 = vsel %vm54_vm0, %v173_v53, 0.0 }
 0x177   :  { %182 = vadd.xlane.f32.xlu0 %v181_v56  ;;  %v146_v58 = vpop.xlane.xlu0 %145  ;;  %v176_v62 = vmul.f32 %v613_v54, %v613_v54 }
 0x178   :  { %v161_v59 = vmul.f32 0.03125, %v146_v58  ;;  %v174_v60 = vmul.f32 %v615_v55, %v615_v55  ;;  %479 = vmatpush3.bf16.msra.mxu1 %v491_v23 }
 0x179   :  { %v149_v61 = vpop.xlane.xlu1 %148  ;;  %v190_v8 = vsel %vm54_vm0, %v176_v62, 0.0 }
 0x17a   :  { %v624_v63 = vsub.f32 %v118_v33, %v161_v59  ;;  %v162_v0 = vmul.f32 0.03125, %v149_v61  ;;  %v184_v2 = vsel %vm54_vm0, %v174_v60, 0.0 }
 0x17b   :  { %188 = vadd.xlane.f32.xlu0 %v187_v1  ;;  %185 = vadd.xlane.f32.xlu1 %v184_v2  ;;  %v152_v3 = vpop.xlane.xlu0 %151 }
 0x17c   :  { %v628_v4 = vsub.f32 %v121_v37, %v162_v0  ;;  %v163_v5 = vmul.f32 0.03125, %v152_v3  ;;  %v177_v6 = vmul.f32 %v624_v63, %v624_v63  ;;  %v239_v37 = vsub.s32 1, %v588_v15 }
 0x17d   :  { %v155_v7 = vpop.xlane.xlu1 %154 }
 0x17e   :  { %v633_v9 = vsub.f32 %v126_v36, %v163_v5  ;;  %v164_v10 = vmul.f32 0.03125, %v155_v7  ;;  %v193_v11 = vsel %vm54_vm0, %v177_v6, 0.0  ;;  %v178_v12 = vmul.f32 %v628_v4, %v628_v4 }
 0x17f   :  { %191 = vadd.xlane.f32.xlu1 %v190_v8  ;;  %194 = vadd.xlane.f32.xlu0 %v193_v11  ;;  %v240_v44 = vrot.slane %v594_v17, %v239_v37 }
 0x180   :  { %v638_v13 = vsub.f32 %v129_v39, %v164_v10  ;;  %v179_v14 = vmul.f32 %v633_v9, %v633_v9  ;;  %v196_v18 = vsel %vm54_vm0, %v178_v12, 0.0 }
 0x182   :  { %v199_v19 = vsel %vm54_vm0, %v179_v14, 0.0  ;;  %v180_v20 = vmul.f32 %v638_v13, %v638_v13 }
 0x183   :  { %197 = vadd.xlane.f32.xlu1 %v196_v18  ;;  %200 = vadd.xlane.f32.xlu0 %v199_v19 }
 0x184   :  { %v202_v21 = vsel %vm54_vm0, %v180_v20, 0.0 }
 0x187   :  { %203 = vadd.xlane.f32.xlu1 %v202_v21 }
 0x204   :  { %v183_v24 = vpop.xlane.xlu0 %182 }
 0x205   :  { %v205_v25 = vmul.f32 0.03125, %v183_v24 }
 0x207   :  { %v213_v26 = vadd.f32 1e-05, %v205_v25 }
 0x208   :  { %v186_v27 = vpop.xlane.xlu1 %185  ;;  %v189_v28 = vpop.xlane.xlu0 %188 }
 0x209   :  { %492 = vrsqrt.f32 %v213_v26  ;;  %v206_v29 = vmul.f32 0.03125, %v186_v27  ;;  %v207_v30 = vmul.f32 0.03125, %v189_v28 }
 0x20b   :  { %v214_v31 = vadd.f32 1e-05, %v206_v29  ;;  %v215_v32 = vadd.f32 1e-05, %v207_v30 }
 0x20c   :  { %v192_v33 = vpop.xlane.xlu1 %191  ;;  %v195_v34 = vpop.xlane.xlu0 %194 }
 0x20d   :  { %494 = vrsqrt.f32 %v214_v31  ;;  %v208_v35 = vmul.f32 0.03125, %v192_v33  ;;  %v209_v36 = vmul.f32 0.03125, %v195_v34 }
 0x20e   :  { %496 = vrsqrt.f32 %v215_v32 }
 0x20f   :  { %v216_v38 = vadd.f32 1e-05, %v208_v35  ;;  %v217_v39 = vadd.f32 1e-05, %v209_v36 }
 0x210   :  { %v198_v40 = vpop.xlane.xlu1 %197  ;;  %v201_v41 = vpop.xlane.xlu0 %200 }
 0x211   :  { %498 = vrsqrt.f32 %v216_v38  ;;  %v210_v42 = vmul.f32 0.03125, %v198_v40  ;;  %v211_v43 = vmul.f32 0.03125, %v201_v41 }
 0x212   :  { %500 = vrsqrt.f32 %v217_v39 }
 0x213   :  { %v493_v46 = vpop.eup %492  ;;  %v218_v49 = vadd.f32 1e-05, %v210_v42  ;;  %v219_v50 = vadd.f32 1e-05, %v211_v43 }
 0x214   :  { %v204_v51 = vpop.xlane.xlu1 %203  ;;  %v229_v52 = vmul.f32 %v493_v46, %v609_v48 }
 0x215   :  { %502 = vrsqrt.f32 %v218_v49  ;;  %v212_v53 = vmul.f32 0.03125, %v204_v51 }
 0x216   :  { %504 = vrsqrt.f32 %v219_v50  ;;  %v241_v56 = vmul.f32 %v240_v44, %v229_v52 }
 0x217   :  { %v495_v58 = vpop.eup %494  ;;  %v220_v59 = vadd.f32 1e-05, %v212_v53 }
 0x218   :  { %v497_v60 = vpop.eup %496  ;;  %v230_v61 = vmul.f32 %v495_v58, %v615_v55  ;;  %v253_v1 = vadd.f32 %v252_v57, %v241_v56 }
 0x219   :  { %v231_v62 = vmul.f32 %v497_v60, %v607_v47  ;;  %506 = vrsqrt.f32 %v220_v59 }
 0x21a   :  { %v242_v0 = vmul.f32 %v240_v44, %v230_v61  ;;  %v261_v8 = vmax.f32 %v253_v1, 0.0 }
 0x21b   :  { %v499_v2 = vpop.eup %498  ;;  %v243_v3 = vmul.f32 %v240_v44, %v231_v62 }
 0x21c   :  { %v501_v5 = vpop.eup %500  ;;  %v232_v48 = vmul.f32 %v499_v2, %v613_v54  ;;  %v254_v6 = vadd.f32 %v252_v57, %v242_v0 }
 0x21d   :  { %v233_v7 = vmul.f32 %v501_v5, %v624_v63  ;;  %v255_v11 = vadd.f32 %v252_v57, %v243_v3 }
 0x21e   :  { %v262_v17 = vmax.f32 %v254_v6, 0.0  ;;  %v244_v10 = vmul.f32 %v240_v44, %v232_v48 }
 0x21f   :  { %v503_v12 = vpop.eup %502  ;;  %v245_v14 = vmul.f32 %v240_v44, %v233_v7  ;;  %v263_v21 = vmax.f32 %v255_v11, 0.0 }
 0x220   :  { %v505_v55 = vpop.eup %504  ;;  %v234_v47 = vmul.f32 %v503_v12, %v628_v4  ;;  %v273_v18 = vpack.c.bf16 %v262_v17, %v261_v8  ;;  %v256_v19 = vadd.f32 %v252_v57, %v244_v10 }
 0x221   :  { %v235_v20 = vmul.f32 %v505_v55, %v633_v9  ;;  %v257_v23 = vadd.f32 %v252_v57, %v245_v14 }
 0x222   :  { %480 = vmatprep.mubr.msk.bf16.mxu1 %vm54_vm0, %v273_v18  ;;  %v264_v54 = vmax.f32 %v256_v19, 0.0  ;;  %v246_v22 = vmul.f32 %v240_v44, %v234_v47 }
 0x223   :  { %v507_v63 = vpop.eup %506  ;;  %v247_v24 = vmul.f32 %v240_v44, %v235_v20  ;;  %v265_v28 = vmax.f32 %v257_v23, 0.0 }
 0x224   :  { %v236_v25 = vmul.f32 %v507_v63, %v638_v13  ;;  %v274_v26 = vpack.c.bf16 %v264_v54, %v263_v21  ;;  %v258_v27 = vadd.f32 %v252_v57, %v246_v22  ;;  %v277_v13 = vld [vmem:[%s733_s4] sm:$0x7] }
 0x225   :  { %v259_v30 = vadd.f32 %v252_v57, %v247_v24  ;;  %v281_v35 = vrot.slane %v277_v13, %v40_v16 }
 0x226   :  { %481 = vmatmul.mubr.msk.bf16.vlgmr.msra.gmra.mrb[0].mxu1 %vm54_vm0, %v274_v26  ;;  %v266_v4 = vmax.f32 %v258_v27, 0.0  ;;  %v248_v29 = vmul.f32 %v240_v44, %v236_v25 }
 0x227   :  { %v267_v32 = vmax.f32 %v259_v30, 0.0 }
 0x228   :  { %v275_v31 = vpack.c.bf16 %v266_v4, %v265_v28  ;;  %v260_v9 = vadd.f32 %v252_v57, %v248_v29 }
 0x22a   :  { %484 = vmatprep.mubr.msk.bf16.mxu1 %vm54_vm0, %v275_v31  ;;  %v268_v33 = vmax.f32 %v260_v9, 0.0 }
 0x22c   :  { %v276_v34 = vpack.c.bf16 %v268_v33, %v267_v32 }
 0x22e   :  { %485 = vmatmul.mubr.msk.bf16.gmra.mrb[4].mxu1 %vm54_vm0, %v276_v34 }
 0x2f9   :  { %v482_v36 = vpop.f32.mrb[0].mxu1 }
 0x2fa   :  { %v349_v37 = vadd.f32 %v482_v36, %v281_v35  ;;  %v340_v38 = vpop.f32.mrb[1].mxu1 }
 0x2fb   :  { %v674_v39 = vadd.f32 %v340_v38, %v281_v35  ;;  %v483_v40 = vpop.f32.mrb[2].mxu1 }
 0x2fc   :  { %v352_v41 = vadd.f32 %v483_v40, %v281_v35  ;;  %v343_v42 = vpop.f32.mrb[3].mxu1  ;;  %v373_v43 = vmul.f32 %v349_v37, %v349_v37 }
 0x2fd   :  { %v676_v44 = vadd.f32 %v343_v42, %v281_v35  ;;  %v371_v49 = vmul.f32 %v674_v39, %v674_v39 }
 0x2fe   :  { %v386_v45 = vsel %vm379_vm1, %v373_v43, 0.0  ;;  %v374_v46 = vmul.f32 %v352_v41, %v352_v41 }
 0x2ff   :  { %387 = vadd.xlane.f32.xlu0 %v386_v45  ;;  %v372_v16 = vmul.f32 %v676_v44, %v676_v44  ;;  %v380_v52 = vsel %vm379_vm1, %v371_v49, 0.0 }
 0x300   :  { %v389_v15 = vsel %vm379_vm1, %v374_v46, 0.0 }
 0x301   :  { %390 = vadd.xlane.f32.xlu1 %v389_v15  ;;  %v486_v50 = vpop.f32.mrb[4].mxu1  ;;  %v383_v59 = vsel %vm379_vm1, %v372_v16, 0.0 }
 0x302   :  { %v356_v51 = vpop.f32.mrb[5].mxu1  ;;  %v685_v53 = vadd.f32 %v486_v50, %v281_v35 }
 0x303   :  { %v357_v56 = vadd.f32 %v356_v51, %v281_v35  ;;  %381 = vadd.xlane.f32.xlu0 %v380_v52  ;;  %v487_v57 = vpop.f32.mrb[6].mxu1 }
 0x304   :  { %v359_v58 = vpop.f32.mrb[7].mxu1  ;;  %v368_v60 = vadd.f32 %v487_v57, %v281_v35  ;;  %v377_v2 = vmul.f32 %v685_v53, %v685_v53 }
 0x305   :  { %v360_v61 = vadd.f32 %v359_v58, %v281_v35  ;;  %384 = vadd.xlane.f32.xlu1 %v383_v59  ;;  %v375_v62 = vmul.f32 %v357_v56, %v357_v56 }
 0x306   :  { %v378_v5 = vmul.f32 %v368_v60, %v368_v60  ;;  %v398_v48 = vsel %vm379_vm1, %v377_v2, 0.0 }
 0x307   :  { %v392_v0 = vsel %vm379_vm1, %v375_v62, 0.0  ;;  %v376_v1 = vmul.f32 %v360_v61, %v360_v61 }
 0x308   :  { %393 = vadd.xlane.f32.xlu0 %v392_v0  ;;  %v401_v6 = vsel %vm379_vm1, %v378_v5, 0.0 }
 0x309   :  { %v395_v3 = vsel %vm379_vm1, %v376_v1, 0.0 }
 0x30a   :  { %396 = vadd.xlane.f32.xlu1 %v395_v3 }
 0x30c   :  { %399 = vadd.xlane.f32.xlu0 %v398_v48 }
 0x30e   :  { %402 = vadd.xlane.f32.xlu1 %v401_v6 }
 0x38c   :  { %v388_v7 = vpop.xlane.xlu0 %387 }
 0x38d   :  { %v406_v8 = vmax.f32 %v388_v7, 1e-24 }
 0x38e   :  { %v391_v17 = vpop.xlane.xlu1 %390 }
 0x38f   :  { %508 = vrsqrt.f32 %v406_v8  ;;  %v407_v10 = vmax.f32 %v391_v17, 1e-24 }
 0x390   :  { %v382_v11 = vpop.xlane.xlu0 %381 }
 0x391   :  { %510 = vrsqrt.f32 %v407_v10  ;;  %v404_v12 = vmax.f32 %v382_v11, 1e-24 }
 0x392   :  { %v385_v14 = vpop.xlane.xlu1 %384 }
 0x393   :  { %512 = vrsqrt.f32 %v404_v12  ;;  %v405_v55 = vmax.f32 %v385_v14, 1e-24 }
 0x395   :  { %514 = vrsqrt.f32 %v405_v55  ;;  %v394_v47 = vpop.xlane.xlu0 %393 }
 0x396   :  { %v408_v18 = vmax.f32 %v394_v47, 1e-24 }
 0x397   :  { %v397_v19 = vpop.xlane.xlu1 %396 }
 0x398   :  { %516 = vrsqrt.f32 %v408_v18  ;;  %v409_v20 = vmax.f32 %v397_v19, 1e-24 }
 0x399   :  { %v509_v21 = vpop.eup %508  ;;  %v400_v54 = vpop.xlane.xlu0 %399 }
 0x39a   :  { %v422_v22 = vmul.f32 %v509_v21, %v349_v37  ;;  %518 = vrsqrt.f32 %v409_v20  ;;  %v410_v23 = vmax.f32 %v400_v54, 1e-24 }
 0x39b   :  { %v511_v63 = vpop.eup %510  ;;  %v403_v24 = vpop.xlane.xlu1 %402 }
 0x39c   :  { %430 = vst.msk [vmem:[%s734_s5 + $0x10] sm:$0xff] %vm379_vm1, %v422_v22  ;;  %v423_v25 = vmul.f32 %v511_v63, %v352_v41  ;;  %520 = vrsqrt.f32 %v410_v23  ;;  %v411_v26 = vmax.f32 %v403_v24, 1e-24 }
 0x39d   :  { %v513_v27 = vpop.eup %512 }
 0x39e   :  { %431 = vst.msk [vmem:[%s734_s5 + $0x18] sm:$0xff] %vm379_vm1, %v423_v25  ;;  %v420_v28 = vmul.f32 %v513_v27, %v674_v39  ;;  %522 = vrsqrt.f32 %v411_v26 }
 0x39f   :  { %v515_v4 = vpop.eup %514 }
 0x3a0   :  { %428 = vst.msk [vmem:[%s734_s5] sm:$0xff] %vm379_vm1, %v420_v28  ;;  %v421_v29 = vmul.f32 %v515_v4, %v676_v44 }
 0x3a2   :  { %v517_v30 = vpop.eup %516  ;;  %429 = vst.msk [vmem:[%s734_s5 + $0x8] sm:$0xff] %vm379_vm1, %v421_v29 }
 0x3a3   :  { %v424_v31 = vmul.f32 %v517_v30, %v357_v56 }
 0x3a4   :  { %v519_v9 = vpop.eup %518 }
 0x3a5   :  { %432 = vst.msk [vmem:[%s734_s5 + $0x20] sm:$0xff] %vm379_vm1, %v424_v31  ;;  %v425_v32 = vmul.f32 %v519_v9, %v360_v61 }
 0x3a6   :  { %v521_v33 = vpop.eup %520 }
 0x3a7   :  { %433 = vst.msk [vmem:[%s734_s5 + $0x28] sm:$0xff] %vm379_vm1, %v425_v32  ;;  %v426_v34 = vmul.f32 %v521_v33, %v685_v53 }
 0x3a8   :  { %v523_v13 = vpop.eup %522 }
 0x3a9   :  { %434 = vst.msk [vmem:[%s734_s5 + $0x30] sm:$0xff] %vm379_vm1, %v426_v34  ;;  %v427_v35 = vmul.f32 %v523_v13, %v368_v60 }
 0x3ab   :  { %435 = vst.msk [vmem:[%s734_s5 + $0x38] sm:$0xff] %vm379_vm1, %v427_v35 }

</bundles_post_ra>
